<compile_context>
chip_gen: v7x
topology: tpu7x:2x2x1
jax: 0.10.0
libtpu: 0.0.40
codegen_flags: <defaults>
</compile_context>

<pallas_src>
import functools

import jax
import jax.numpy as jnp
from jax.experimental import pallas as pl
from jax.experimental.pallas import tpu as pltpu


# ----------------------------------------------------------------------------
# Kernels
# ----------------------------------------------------------------------------
def input_layer_kernel(x_ref, w_ref, b_ref, o_ref):
    # x: (B, VggFc7), w: (VggFc7, H) (already transposed), b: (1, H)
    o_ref[...] = jnp.tanh(
        jnp.dot(x_ref[...], w_ref[...], preferred_element_type=jnp.float32)
        + b_ref[...]
    )


def xgate_kernel(x_ref, w_ref, b_ref, o_ref):
    # Layer-0 x-side gate preactivations for every timestep at once.
    # x: (T*B, E), w: (E, 3H), b: (1, 3H) -> (T*B, 3H)
    o_ref[...] = (
        jnp.dot(x_ref[...], w_ref[...], preferred_element_type=jnp.float32)
        + b_ref[...]
    )


def make_vocab_proj_kernel(batch):
    def kernel(h_ref, w_ref, b_ref, o_ref):
        # h: (B, T_tile, H), w: (H, V), b: (1, V) -> o: (B, T_tile, V)
        w = w_ref[...]
        b = b_ref[...]
        for bb in range(batch):
            o_ref[bb] = (
                jnp.dot(h_ref[bb], w, preferred_element_type=jnp.float32) + b)
    return kernel


def make_gru_seq_kernel(num_layers, t_blk, hidden):
    """Stacked-GRU recurrence; processes t_blk timesteps per grid step.

    Parameter layout (flat_params):
      layer 0      : wh_ur (H, 2H), wh_n (H, H)        [x-side precomputed]
      layer l > 0  : wx3 (H, 3H), b3 (1, 3H), wh_ur (H, 2H), wh_n (H, H)
    """
    H = hidden
    n_params = 2 + (num_layers - 1) * 4

    def kernel(*refs):
        xpre_ref = refs[0]                   # (T_BLK, B, 3H) layer-0 x-side preact (+bias)
        h0_ref = refs[1]                     # (B, H) initial hidden state
        params = refs[2:2 + n_params]
        h_top_ref = refs[2 + n_params]       # (B, T_BLK, H) top-layer hidden out
        hfin_ref = refs[2 + n_params + 1]    # (L, B, H) carried hidden state / final out

        @pl.when(pl.program_id(0) == 0)
        def _():
            h0 = h0_ref[...]
            for layer in range(num_layers):
                hfin_ref[layer] = h0

        # Hoist weight loads out of the timestep loop.
        wts = []
        for layer in range(num_layers):
            if layer == 0:
                wts.append((None, None, params[0][...], params[1][...]))
            else:
                base = 2 + (layer - 1) * 4
                wts.append((params[base][...], params[base + 1][...],
                            params[base + 2][...], params[base + 3][...]))

        for tt in range(t_blk):
            x = None
            for layer in range(num_layers):
                wx3, b3, wh_ur, wh_n = wts[layer]
                h_old = hfin_ref[layer]                               # (B, H)
                if layer == 0:
                    xpre = xpre_ref[tt]                               # (B, 3H), bias folded
                else:
                    xpre = jnp.dot(x, wx3,
                                   preferred_element_type=jnp.float32) + b3
                hur = jnp.dot(h_old, wh_ur,
                              preferred_element_type=jnp.float32)     # (B, 2H)
                u = jax.nn.sigmoid(xpre[:, :H] + hur[:, :H])
                r = jax.nn.sigmoid(xpre[:, H:2 * H] + hur[:, H:2 * H])
                h_hat = jnp.tanh(
                    xpre[:, 2 * H:]
                    + jnp.dot(r * h_old, wh_n,
                              preferred_element_type=jnp.float32))
                h_new = u * h_old + (1.0 - u) * h_hat
                hfin_ref[layer] = h_new
                x = h_new
            h_top_ref[:, pl.ds(tt, 1), :] = x[:, None, :]

    return kernel


# ----------------------------------------------------------------------------
# Wrappers
# ----------------------------------------------------------------------------
def pallas_input_layer(vgg, w_in_t, b_in):
    B = vgg.shape[0]
    H = w_in_t.shape[1]
    return pl.pallas_call(
        input_layer_kernel,
        out_shape=jax.ShapeDtypeStruct((B, H), jnp.float32),
    )(vgg, w_in_t, b_in)


def pallas_xgate(x_flat, wx3, b3):
    M = x_flat.shape[0]
    H3 = wx3.shape[1]
    return pl.pallas_call(
        xgate_kernel,
        out_shape=jax.ShapeDtypeStruct((M, H3), jnp.float32),
    )(x_flat, wx3, b3)


def pallas_vocab_proj(h_top_bth, out_w_t, out_b):
    B, T, H = h_top_bth.shape
    V = out_w_t.shape[1]
    t_tile = T  # whole sequence per tile at these sizes (T=8 satisfies sublane tiling)
    return pl.pallas_call(
        make_vocab_proj_kernel(B),
        out_shape=jax.ShapeDtypeStruct((B, T, V), jnp.float32),
        grid_spec=pltpu.PrefetchScalarGridSpec(
            num_scalar_prefetch=0,
            grid=(T // t_tile,),
            in_specs=[
                pl.BlockSpec((B, t_tile, H), lambda i: (0, i, 0)),
                pl.BlockSpec((H, V), lambda i: (0, 0)),
                pl.BlockSpec((1, V), lambda i: (0, 0)),
            ],
            out_specs=pl.BlockSpec((B, t_tile, V), lambda i: (0, i, 0)),
        ),
        compiler_params=pltpu.CompilerParams(
            dimension_semantics=("parallel",)),
    )(h_top_bth, out_w_t, out_b)


def pallas_gru_rollout(x_pre_tb3h, h_init, split_layers, num_layers, hidden, t_blk):
    """x_pre_tb3h: (T, B, 3H) f32 ; h_init: (B, H) f32."""
    T, B, H3 = x_pre_tb3h.shape
    H = hidden
    assert T % t_blk == 0

    flat_params = [split_layers[0]["wh_ur"], split_layers[0]["wh_n"]]
    for layer in range(1, num_layers):
        lp = split_layers[layer]
        flat_params.extend([lp["wx3"], lp["b3"], lp["wh_ur"], lp["wh_n"]])

    kernel = make_gru_seq_kernel(num_layers, t_blk, H)

    in_specs = [
        pl.BlockSpec((t_blk, B, H3), lambda tb: (tb, 0, 0)),   # x-side preactivations
        pl.BlockSpec((B, H), lambda tb: (0, 0)),               # h_init (resident)
    ]
    for p in flat_params:
        in_specs.append(
            pl.BlockSpec(p.shape, lambda tb, nd=p.ndim: (0,) * nd))

    out_specs = [
        pl.BlockSpec((B, t_blk, H), lambda tb: (0, tb, 0)),          # top-layer hidden [B,T,H]
        pl.BlockSpec((num_layers, B, H), lambda tb: (0, 0, 0)),      # final hidden (carried)
    ]
    out_shape = [
        jax.ShapeDtypeStruct((B, T, H), jnp.float32),
        jax.ShapeDtypeStruct((num_layers, B, H), jnp.float32),
    ]

    h_top, h_final = pl.pallas_call(
        kernel,
        grid_spec=pltpu.PrefetchScalarGridSpec(
            num_scalar_prefetch=0,
            grid=(T // t_blk,),
            in_specs=in_specs,
            out_specs=out_specs,
        ),
        out_shape=out_shape,
        compiler_params=pltpu.CompilerParams(
            dimension_semantics=("arbitrary",)),
    )(x_pre_tb3h, h_init, *flat_params)
    return h_top, h_final


@functools.partial(jax.jit, static_argnames=("num_rnn_layers",))
def image_caption_forward(prepared, vgg_fc7, x_tokens, num_rnn_layers):
    """Equivalent of imageCaptionModel.forward(vgg_fc7, xTokens, is_train=True)."""
    B, T = x_tokens.shape
    H = prepared["in_w_t"].shape[1]

    # 1) initial hidden state (B, H) = tanh(inputLayer(vgg)); broadcast to layers
    #    happens inside the recurrent kernel (no (L,B,H) HBM materialization).
    h_init = pallas_input_layer(vgg_fc7, prepared["in_w_t"], prepared["in_b"])

    # 2) embedding gather directly in time-major layout (glue), then the layer-0
    #    x-side gate preactivations for all T steps in one parallel matmul.
    x_emb_tbe = jnp.take(prepared["emb"], x_tokens.T, axis=0)       # (T, B, E)
    E = x_emb_tbe.shape[-1]
    l0 = prepared["gru_split"][0]
    x_pre = pallas_xgate(x_emb_tbe.reshape(T * B, E), l0["wx3"], l0["b3"])
    x_pre = x_pre.reshape(T, B, 3 * H)

    # 3) sequential recurrence (only h-dependent matmuls remain inside).
    t_blk = T if T <= 8 else 8
    h_top, h_final = pallas_gru_rollout(
        x_pre, h_init, prepared["gru_split"], num_rnn_layers, H, t_blk)

    # 4) vocab projection emitted directly in [B, T, V] (no transpose round-trip).
    logits = pallas_vocab_proj(h_top, prepared["out_w_t"], prepared["out_b"])
    return logits, h_final


# ----------------------------------------------------------------------------
# Parameter preparation: split concatenated GRU weights into x/h parts and fuse
# ----------------------------------------------------------------------------
def prepare_params(params, num_rnn_layers, emb_size, hidden):
    layers = []
    for layer in range(num_rnn_layers):
        wu, wr, w, bu, br, b = params["gru_layers"][layer]
        in_sz = emb_size if layer == 0 else hidden
        # rows [0:in_sz] multiply x, rows [in_sz:] multiply h (cat((x, h), 1) order)
        wx3 = jnp.concatenate([wu[:in_sz], wr[:in_sz], w[:in_sz]], axis=1)   # (in_sz, 3H)
        b3 = jnp.concatenate([bu, br, b], axis=1)                            # (1, 3H)
        wh_ur = jnp.concatenate([wu[in_sz:], wr[in_sz:]], axis=1)            # (H, 2H)
        wh_n = w[in_sz:]                                                     # (H, H)
        layers.append({"wx3": wx3, "b3": b3, "wh_ur": wh_ur, "wh_n": wh_n})
    return {
        "emb": params["emb"],
        "in_w_t": params["in_w_t"], "in_b": params["in_b"],
        "out_w_t": params["out_w_t"], "out_b": params["out_b"],
        "gru_split": layers,
    }


# ----------------------------------------------------------------------------
# Pure-JAX reference (mirrors the PyTorch module exactly) for verification
# ----------------------------------------------------------------------------
def reference_forward(params, vgg_fc7, x_tokens, num_rnn_layers):
    h_init = jnp.tanh(vgg_fc7 @ params["in_w_t"] + params["in_b"])
    h_old = jnp.broadcast_to(h_init[None], (num_rnn_layers,) + h_init.shape)
    x_emb = params["emb"][x_tokens]
    T = x_tokens.shape[1]
    logits_list = []
    for ii in range(T):
        x = x_emb[:, ii, :]
        h_new = []
        for layer in range(num_rnn_layers):
            wu, wr, w, bu, br, b = params["gru_layers"][layer]
            ho = h_old[layer]
            xc = jnp.concatenate([x, ho], axis=1)
            u = jax.nn.sigmoid(xc @ wu + bu)
            r = jax.nn.sigmoid(xc @ wr + br)
            hh = jnp.tanh(jnp.concatenate([x, r * ho], axis=1) @ w + b)
            out = u * ho + (1.0 - u) * hh
            h_new.append(out)
            x = out
        logits_list.append(x @ params["out_w_t"] + params["out_b"])
        h_old = jnp.stack(h_new, axis=0)
    logits = jnp.stack(logits_list, axis=1)
    return logits, h_old


# ----------------------------------------------------------------------------
# Deterministic parameter construction (synthetic, matches __init__ shapes)
# ----------------------------------------------------------------------------
def build_params(key, vocab, emb_size, vgg_size, hidden, num_layers):
    keys = jax.random.split(key, 8 + num_layers * 3)
    k = iter(keys)

    emb = jax.random.normal(next(k), (vocab, emb_size), jnp.float32)

    # nn.Linear(VggFc7Size, hidden): store transposed weight (VggFc7, H)
    lim_in = 1.0 / jnp.sqrt(vgg_size)
    in_w_t = jax.random.uniform(next(k), (vgg_size, hidden), jnp.float32,
                                -lim_in, lim_in)
    in_b = jax.random.uniform(next(k), (1, hidden), jnp.float32, -lim_in, lim_in)

    # nn.Linear(hidden, vocab): store transposed weight (H, V)
    lim_out = 1.0 / jnp.sqrt(hidden)
    out_w_t = jax.random.uniform(next(k), (hidden, vocab), jnp.float32,
                                 -lim_out, lim_out)
    out_b = jax.random.uniform(next(k), (1, vocab), jnp.float32,
                               -lim_out, lim_out)

    gru_layers = []
    for layer in range(num_layers):
        in_sz = emb_size if layer == 0 else hidden
        n = hidden + in_sz
        scale = 1.0 / jnp.sqrt(n)
        wu = jax.random.normal(next(k), (n, hidden), jnp.float32) * scale
        wr = jax.random.normal(next(k), (n, hidden), jnp.float32) * scale
        w = jax.random.normal(next(k), (n, hidden), jnp.float32) * scale
        bu = jnp.zeros((1, hidden), jnp.float32)
        br = jnp.zeros((1, hidden), jnp.float32)
        b = jnp.zeros((1, hidden), jnp.float32)
        gru_layers.append((wu, wr, w, bu, br, b))

    return {"emb": emb, "in_w_t": in_w_t, "in_b": in_b,
            "out_w_t": out_w_t, "out_b": out_b, "gru_layers": gru_layers}


# ----------------------------------------------------------------------------
if __name__ == "__main__":
    # config (small, 'GRU' cell type, is_train=True path)
    B, T = 2, 8
    VOCAB, EMB, VGG, HID, LAYERS = 64, 32, 64, 32, 2

    key = jax.random.PRNGKey(0)
    k_par, k_vgg, k_tok = jax.random.split(key, 3)

    params = build_params(k_par, VOCAB, EMB, VGG, HID, LAYERS)
    prepared = prepare_params(params, LAYERS, EMB, HID)
    vgg_fc7 = jax.random.normal(k_vgg, (B, VGG), jnp.float32)
    x_tokens = jax.random.randint(k_tok, (B, T), 0, VOCAB, jnp.int32)

    logits, h_final = image_caption_forward(prepared, vgg_fc7, x_tokens, LAYERS)
    logits = jax.block_until_ready(logits)
    h_final = jax.block_until_ready(h_final)

    # verify against pure-JAX reference of the PyTorch semantics
    ref_logits, ref_h = reference_forward(params, vgg_fc7, x_tokens, LAYERS)
    assert logits.shape == (B, T, VOCAB)
    assert h_final.shape == (LAYERS, B, HID)
    assert jnp.allclose(logits, ref_logits, atol=1e-4, rtol=1e-4)
    assert jnp.allclose(h_final, ref_h, atol=1e-4, rtol=1e-4)

    print("KERNEL_OK")
</pallas_src>

<mosaic_0001>
module attributes {stable_mosaic.version = 11 : i64} {
  func.func @xgate_kernel(%arg0: memref<16x32xf32, #tpu.memory_space<vmem>>, %arg1: memref<32x96xf32, #tpu.memory_space<vmem>>, %arg2: memref<1x96xf32, #tpu.memory_space<vmem>>, %arg3: memref<16x96xf32, #tpu.memory_space<vmem>>) attributes {dimension_semantics = [], scalar_prefetch = 0 : i64, scratch_operands = 0 : i64, tpu.core_type = #tpu.core_type<tc>} {
    %c0 = arith.constant 0 : index
    %c0_0 = arith.constant 0 : index
    %0 = vector.load %arg0[%c0, %c0_0] : memref<16x32xf32, #tpu.memory_space<vmem>>, vector<16x32xf32>
    %c0_1 = arith.constant 0 : index
    %c0_2 = arith.constant 0 : index
    %1 = vector.load %arg1[%c0_1, %c0_2] : memref<32x96xf32, #tpu.memory_space<vmem>>, vector<32x96xf32>
    %cst = arith.constant dense<0.000000e+00> : vector<16x96xf32>
    %2 = tpu.matmul %0, %1, %cst {dimension_numbers = #tpu.dot_dimension_numbers<[1], [0], [0], [1], [0, 0, 1, 1], [], []>} : vector<16x32xf32>, vector<32x96xf32>, vector<16x96xf32> -> vector<16x96xf32>
    %c0_3 = arith.constant 0 : index
    %c0_4 = arith.constant 0 : index
    %3 = vector.load %arg2[%c0_3, %c0_4] : memref<1x96xf32, #tpu.memory_space<vmem>>, vector<1x96xf32>
    %4 = vector.broadcast %3 : vector<1x96xf32> to vector<16x96xf32>
    %5 = arith.addf %2, %4 : vector<16x96xf32>
    %c0_5 = arith.constant 0 : index
    %c0_6 = arith.constant 0 : index
    %6 = vector.load %arg3[%c0_5, %c0_6] : memref<16x96xf32, #tpu.memory_space<vmem>>, vector<16x96xf32>
    tpu.vector_store %arg3[%c0_5, %c0_6], %5 {strides = array<i32>} : memref<16x96xf32, #tpu.memory_space<vmem>>, vector<16x96xf32>,
    return
  }
}

module attributes {stable_mosaic.version = 11 : i64} {
  func.func @input_layer_kernel(%arg0: memref<2x64xf32, #tpu.memory_space<vmem>>, %arg1: memref<64x32xf32, #tpu.memory_space<vmem>>, %arg2: memref<1x32xf32, #tpu.memory_space<vmem>>, %arg3: memref<2x32xf32, #tpu.memory_space<vmem>>) attributes {dimension_semantics = [], scalar_prefetch = 0 : i64, scratch_operands = 0 : i64, tpu.core_type = #tpu.core_type<tc>} {
    %c0 = arith.constant 0 : index
    %c0_0 = arith.constant 0 : index
    %0 = vector.load %arg0[%c0, %c0_0] : memref<2x64xf32, #tpu.memory_space<vmem>>, vector<2x64xf32>
    %c0_1 = arith.constant 0 : index
    %c0_2 = arith.constant 0 : index
    %1 = vector.load %arg1[%c0_1, %c0_2] : memref<64x32xf32, #tpu.memory_space<vmem>>, vector<64x32xf32>
    %cst = arith.constant dense<0.000000e+00> : vector<2x32xf32>
    %2 = tpu.matmul %0, %1, %cst {dimension_numbers = #tpu.dot_dimension_numbers<[1], [0], [0], [1], [0, 0, 1, 1], [], []>} : vector<2x64xf32>, vector<64x32xf32>, vector<2x32xf32> -> vector<2x32xf32>
    %c0_3 = arith.constant 0 : index
    %c0_4 = arith.constant 0 : index
    %3 = vector.load %arg2[%c0_3, %c0_4] : memref<1x32xf32, #tpu.memory_space<vmem>>, vector<1x32xf32>
    %4 = vector.broadcast %3 : vector<1x32xf32> to vector<2x32xf32>
    %5 = arith.addf %2, %4 : vector<2x32xf32>
    %6 = math.tanh %5 : vector<2x32xf32>
    %c0_5 = arith.constant 0 : index
    %c0_6 = arith.constant 0 : index
    %7 = vector.load %arg3[%c0_5, %c0_6] : memref<2x32xf32, #tpu.memory_space<vmem>>, vector<2x32xf32>
    tpu.vector_store %arg3[%c0_5, %c0_6], %6 {strides = array<i32>} : memref<2x32xf32, #tpu.memory_space<vmem>>, vector<2x32xf32>,
    return
  }
}

module attributes {stable_mosaic.version = 11 : i64} {
  func.func @kernel(%arg0: i32, %arg1: memref<2x8x32xf32, #tpu.memory_space<vmem>>, %arg2: memref<32x64xf32, #tpu.memory_space<vmem>>, %arg3: memref<1x64xf32, #tpu.memory_space<vmem>>, %arg4: memref<2x8x64xf32, #tpu.memory_space<vmem>>) attributes {dimension_semantics = [#tpu.dimension_semantics<parallel>], iteration_bounds = array<i64: 1>, scalar_prefetch = 0 : i64, scratch_operands = 0 : i64, tpu.core_type = #tpu.core_type<tc>, window_params = [{transform_indices = @transform_0, window_bounds = array<i64: 2, 8, 32>}, {pipeline_mode = #tpu.pipeline_mode<synchronous>, transform_indices = @transform_1, window_bounds = array<i64: 32, 64>}, {pipeline_mode = #tpu.pipeline_mode<synchronous>, transform_indices = @transform_2, window_bounds = array<i64: 1, 64>}, {transform_indices = @transform_3, window_bounds = array<i64: 2, 8, 64>}]} {
    %c0 = arith.constant 0 : index
    %c0_0 = arith.constant 0 : index
    %0 = vector.load %arg2[%c0, %c0_0] : memref<32x64xf32, #tpu.memory_space<vmem>>, vector<32x64xf32>
    %c0_1 = arith.constant 0 : index
    %c0_2 = arith.constant 0 : index
    %1 = vector.load %arg3[%c0_1, %c0_2] : memref<1x64xf32, #tpu.memory_space<vmem>>, vector<1x64xf32>
    %c0_3 = arith.constant 0 : index
    %c0_4 = arith.constant 0 : index
    %c0_5 = arith.constant 0 : index
    %2 = vector.load %arg1[%c0_3, %c0_4, %c0_5] : memref<2x8x32xf32, #tpu.memory_space<vmem>>, vector<1x8x32xf32>
    %3 = vector.shape_cast %2 : vector<1x8x32xf32> to vector<8x32xf32>
    %cst = arith.constant dense<0.000000e+00> : vector<8x64xf32>
    %4 = tpu.matmul %3, %0, %cst {dimension_numbers = #tpu.dot_dimension_numbers<[1], [0], [0], [1], [0, 0, 1, 1], [], []>} : vector<8x32xf32>, vector<32x64xf32>, vector<8x64xf32> -> vector<8x64xf32>
    %5 = vector.broadcast %1 : vector<1x64xf32> to vector<8x64xf32>
    %6 = arith.addf %4, %5 : vector<8x64xf32>
    %c0_6 = arith.constant 0 : index
    %c0_7 = arith.constant 0 : index
    %c0_8 = arith.constant 0 : index
    %7 = vector.load %arg4[%c0_6, %c0_7, %c0_8] : memref<2x8x64xf32, #tpu.memory_space<vmem>>, vector<1x8x64xf32>
    %8 = vector.shape_cast %7 : vector<1x8x64xf32> to vector<8x64xf32>
    %9 = vector.shape_cast %6 : vector<8x64xf32> to vector<1x8x64xf32>
    tpu.vector_store %arg4[%c0_6, %c0_7, %c0_8], %9 {strides = array<i32>} : memref<2x8x64xf32, #tpu.memory_space<vmem>>, vector<1x8x64xf32>,
    %c1 = arith.constant 1 : index
    %c0_9 = arith.constant 0 : index
    %c0_10 = arith.constant 0 : index
    %10 = vector.load %arg1[%c1, %c0_9, %c0_10] : memref<2x8x32xf32, #tpu.memory_space<vmem>>, vector<1x8x32xf32>
    %11 = vector.shape_cast %10 : vector<1x8x32xf32> to vector<8x32xf32>
    %cst_11 = arith.constant dense<0.000000e+00> : vector<8x64xf32>
    %12 = tpu.matmul %11, %0, %cst_11 {dimension_numbers = #tpu.dot_dimension_numbers<[1], [0], [0], [1], [0, 0, 1, 1], [], []>} : vector<8x32xf32>, vector<32x64xf32>, vector<8x64xf32> -> vector<8x64xf32>
    %13 = vector.broadcast %1 : vector<1x64xf32> to vector<8x64xf32>
    %14 = arith.addf %12, %13 : vector<8x64xf32>
    %c1_12 = arith.constant 1 : index
    %c0_13 = arith.constant 0 : index
    %c0_14 = arith.constant 0 : index
    %15 = vector.load %arg4[%c1_12, %c0_13, %c0_14] : memref<2x8x64xf32, #tpu.memory_space<vmem>>, vector<1x8x64xf32>
    %16 = vector.shape_cast %15 : vector<1x8x64xf32> to vector<8x64xf32>
    %17 = vector.shape_cast %14 : vector<8x64xf32> to vector<1x8x64xf32>
    tpu.vector_store %arg4[%c1_12, %c0_13, %c0_14], %17 {strides = array<i32>} : memref<2x8x64xf32, #tpu.memory_space<vmem>>, vector<1x8x64xf32>,
    return
  }
  func.func @transform_0(%arg0: i32) -> (i32, i32, i32) {
    %c0_i32 = arith.constant 0 : i32
    %c0_i32_0 = arith.constant 0 : i32
    %c0_i32_1 = arith.constant 0 : i32
    return %c0_i32, %arg0, %c0_i32_0 : i32, i32, i32
  }
  func.func @transform_1(%arg0: i32) -> (i32, i32) {
    %c0_i32 = arith.constant 0 : i32
    %c0_i32_0 = arith.constant 0 : i32
    %c0_i32_1 = arith.constant 0 : i32
    return %c0_i32, %c0_i32_0 : i32, i32
  }
  func.func @transform_2(%arg0: i32) -> (i32, i32) {
    %c0_i32 = arith.constant 0 : i32
    %c0_i32_0 = arith.constant 0 : i32
    %c0_i32_1 = arith.constant 0 : i32
    return %c0_i32, %c0_i32_0 : i32, i32
  }
  func.func @transform_3(%arg0: i32) -> (i32, i32, i32) {
    %c0_i32 = arith.constant 0 : i32
    %c0_i32_0 = arith.constant 0 : i32
    %c0_i32_1 = arith.constant 0 : i32
    return %c0_i32, %arg0, %c0_i32_0 : i32, i32, i32
  }
}

module attributes {stable_mosaic.version = 11 : i64} {
  func.func @kernel(%arg0: i32, %arg1: memref<8x2x96xf32, #tpu.memory_space<vmem>>, %arg2: memref<2x32xf32, #tpu.memory_space<vmem>>, %arg3: memref<32x64xf32, #tpu.memory_space<vmem>>, %arg4: memref<32x32xf32, #tpu.memory_space<vmem>>, %arg5: memref<32x96xf32, #tpu.memory_space<vmem>>, %arg6: memref<1x96xf32, #tpu.memory_space<vmem>>, %arg7: memref<32x64xf32, #tpu.memory_space<vmem>>, %arg8: memref<32x32xf32, #tpu.memory_space<vmem>>, %arg9: memref<2x8x32xf32, #tpu.memory_space<vmem>>, %arg10: memref<2x2x32xf32, #tpu.memory_space<vmem>>) attributes {dimension_semantics = [#tpu.dimension_semantics<arbitrary>], iteration_bounds = array<i64: 1>, scalar_prefetch = 0 : i64, scratch_operands = 0 : i64, tpu.core_type = #tpu.core_type<tc>, window_params = [{transform_indices = @transform_0, window_bounds = array<i64: 8, 2, 96>}, {pipeline_mode = #tpu.pipeline_mode<synchronous>, transform_indices = @transform_1, window_bounds = array<i64: 2, 32>}, {pipeline_mode = #tpu.pipeline_mode<synchronous>, transform_indices = @transform_2, window_bounds = array<i64: 32, 64>}, {pipeline_mode = #tpu.pipeline_mode<synchronous>, transform_indices = @transform_3, window_bounds = array<i64: 32, 32>}, {pipeline_mode = #tpu.pipeline_mode<synchronous>, transform_indices = @transform_4, window_bounds = array<i64: 32, 96>}, {pipeline_mode = #tpu.pipeline_mode<synchronous>, transform_indices = @transform_5, window_bounds = array<i64: 1, 96>}, {pipeline_mode = #tpu.pipeline_mode<synchronous>, transform_indices = @transform_6, window_bounds = array<i64: 32, 64>}, {pipeline_mode = #tpu.pipeline_mode<synchronous>, transform_indices = @transform_7, window_bounds = array<i64: 32, 32>}, {transform_indices = @transform_8, window_bounds = array<i64: 2, 8, 32>}, {pipeline_mode = #tpu.pipeline_mode<synchronous>, transform_indices = @transform_9, window_bounds = array<i64: 2, 2, 32>}]} {
    %c0_i32 = arith.constant 0 : i32
    %0 = arith.cmpi eq, %arg0, %c0_i32 : i32
    %1 = arith.extui %0 : i1 to i32
    %c0_i32_0 = arith.constant 0 : i32
    %2 = arith.cmpi ne, %1, %c0_i32_0 : i32
    scf.if %2 {
      %c0_236 = arith.constant 0 : index
      %c0_237 = arith.constant 0 : index
      %577 = vector.load %arg2[%c0_236, %c0_237] : memref<2x32xf32, #tpu.memory_space<vmem>>, vector<2x32xf32>
      %c0_238 = arith.constant 0 : index
      %c0_239 = arith.constant 0 : index
      %c0_240 = arith.constant 0 : index
      %578 = vector.load %arg10[%c0_238, %c0_239, %c0_240] : memref<2x2x32xf32, #tpu.memory_space<vmem>>, vector<1x2x32xf32>
      %579 = vector.shape_cast %578 : vector<1x2x32xf32> to vector<2x32xf32>
      %580 = vector.shape_cast %577 : vector<2x32xf32> to vector<1x2x32xf32>
      tpu.vector_store %arg10[%c0_238, %c0_239, %c0_240], %580 {strides = array<i32>} : memref<2x2x32xf32, #tpu.memory_space<vmem>>, vector<1x2x32xf32>,
      %c1_241 = arith.constant 1 : index
      %c0_242 = arith.constant 0 : index
      %c0_243 = arith.constant 0 : index
      %581 = vector.load %arg10[%c1_241, %c0_242, %c0_243] : memref<2x2x32xf32, #tpu.memory_space<vmem>>, vector<1x2x32xf32>
      %582 = vector.shape_cast %581 : vector<1x2x32xf32> to vector<2x32xf32>
      %583 = vector.shape_cast %577 : vector<2x32xf32> to vector<1x2x32xf32>
      tpu.vector_store %arg10[%c1_241, %c0_242, %c0_243], %583 {strides = array<i32>} : memref<2x2x32xf32, #tpu.memory_space<vmem>>, vector<1x2x32xf32>,
    } else {
    }
    %c0 = arith.constant 0 : index
    %c0_1 = arith.constant 0 : index
    %3 = vector.load %arg3[%c0, %c0_1] : memref<32x64xf32, #tpu.memory_space<vmem>>, vector<32x64xf32>
    %c0_2 = arith.constant 0 : index
    %c0_3 = arith.constant 0 : index
    %4 = vector.load %arg4[%c0_2, %c0_3] : memref<32x32xf32, #tpu.memory_space<vmem>>, vector<32x32xf32>
    %c0_4 = arith.constant 0 : index
    %c0_5 = arith.constant 0 : index
    %5 = vector.load %arg5[%c0_4, %c0_5] : memref<32x96xf32, #tpu.memory_space<vmem>>, vector<32x96xf32>
    %c0_6 = arith.constant 0 : index
    %c0_7 = arith.constant 0 : index
    %6 = vector.load %arg6[%c0_6, %c0_7] : memref<1x96xf32, #tpu.memory_space<vmem>>, vector<1x96xf32>
    %c0_8 = arith.constant 0 : index
    %c0_9 = arith.constant 0 : index
    %7 = vector.load %arg7[%c0_8, %c0_9] : memref<32x64xf32, #tpu.memory_space<vmem>>, vector<32x64xf32>
    %c0_10 = arith.constant 0 : index
    %c0_11 = arith.constant 0 : index
    %8 = vector.load %arg8[%c0_10, %c0_11] : memref<32x32xf32, #tpu.memory_space<vmem>>, vector<32x32xf32>
    %c0_12 = arith.constant 0 : index
    %c0_13 = arith.constant 0 : index
    %c0_14 = arith.constant 0 : index
    %9 = vector.load %arg10[%c0_12, %c0_13, %c0_14] : memref<2x2x32xf32, #tpu.memory_space<vmem>>, vector<1x2x32xf32>
    %10 = vector.shape_cast %9 : vector<1x2x32xf32> to vector<2x32xf32>
    %c0_15 = arith.constant 0 : index
    %c0_16 = arith.constant 0 : index
    %c0_17 = arith.constant 0 : index
    %11 = vector.load %arg1[%c0_15, %c0_16, %c0_17] : memref<8x2x96xf32, #tpu.memory_space<vmem>>, vector<1x2x96xf32>
    %12 = vector.shape_cast %11 : vector<1x2x96xf32> to vector<2x96xf32>
    %cst = arith.constant dense<0.000000e+00> : vector<2x64xf32>
    %13 = tpu.matmul %10, %3, %cst {dimension_numbers = #tpu.dot_dimension_numbers<[1], [0], [0], [1], [0, 0, 1, 1], [], []>} : vector<2x32xf32>, vector<32x64xf32>, vector<2x64xf32> -> vector<2x64xf32>
    %14 = vector.extract_strided_slice %12 {offsets = [0, 0], sizes = [2, 32], strides = [1, 1]} : vector<2x96xf32> to vector<2x32xf32>
    %15 = vector.extract_strided_slice %13 {offsets = [0, 0], sizes = [2, 32], strides = [1, 1]} : vector<2x64xf32> to vector<2x32xf32>
    %16 = arith.addf %14, %15 : vector<2x32xf32>
    %17 = arith.negf %16 : vector<2x32xf32>
    %18 = math.exp %17 : vector<2x32xf32>
    %cst_18 = arith.constant 1.000000e+00 : f32
    %19 = vector.broadcast %cst_18 : f32 to vector<2x32xf32>
    %20 = arith.addf %19, %18 : vector<2x32xf32>
    %21 = arith.divf %19, %20 : vector<2x32xf32>
    %22 = vector.extract_strided_slice %12 {offsets = [0, 32], sizes = [2, 32], strides = [1, 1]} : vector<2x96xf32> to vector<2x32xf32>
    %23 = vector.extract_strided_slice %13 {offsets = [0, 32], sizes = [2, 32], strides = [1, 1]} : vector<2x64xf32> to vector<2x32xf32>
    %24 = arith.addf %22, %23 : vector<2x32xf32>
    %25 = arith.negf %24 : vector<2x32xf32>
    %26 = math.exp %25 : vector<2x32xf32>
    %cst_19 = arith.constant 1.000000e+00 : f32
    %27 = vector.broadcast %cst_19 : f32 to vector<2x32xf32>
    %28 = arith.addf %27, %26 : vector<2x32xf32>
    %29 = arith.divf %27, %28 : vector<2x32xf32>
    %30 = vector.extract_strided_slice %12 {offsets = [0, 64], sizes = [2, 32], strides = [1, 1]} : vector<2x96xf32> to vector<2x32xf32>
    %31 = arith.mulf %29, %10 : vector<2x32xf32>
    %cst_20 = arith.constant dense<0.000000e+00> : vector<2x32xf32>
    %32 = tpu.matmul %31, %4, %cst_20 {dimension_numbers = #tpu.dot_dimension_numbers<[1], [0], [0], [1], [0, 0, 1, 1], [], []>} : vector<2x32xf32>, vector<32x32xf32>, vector<2x32xf32> -> vector<2x32xf32>
    %33 = arith.addf %30, %32 : vector<2x32xf32>
    %34 = math.tanh %33 : vector<2x32xf32>
    %35 = arith.mulf %21, %10 : vector<2x32xf32>
    %cst_21 = arith.constant 1.000000e+00 : f32
    %36 = vector.broadcast %cst_21 : f32 to vector<2x32xf32>
    %37 = arith.subf %36, %21 : vector<2x32xf32>
    %38 = arith.mulf %37, %34 : vector<2x32xf32>
    %39 = arith.addf %35, %38 : vector<2x32xf32>
    %c0_22 = arith.constant 0 : index
    %c0_23 = arith.constant 0 : index
    %c0_24 = arith.constant 0 : index
    %40 = vector.load %arg10[%c0_22, %c0_23, %c0_24] : memref<2x2x32xf32, #tpu.memory_space<vmem>>, vector<1x2x32xf32>
    %41 = vector.shape_cast %40 : vector<1x2x32xf32> to vector<2x32xf32>
    %42 = vector.shape_cast %39 : vector<2x32xf32> to vector<1x2x32xf32>
    tpu.vector_store %arg10[%c0_22, %c0_23, %c0_24], %42 {strides = array<i32>} : memref<2x2x32xf32, #tpu.memory_space<vmem>>, vector<1x2x32xf32>,
    %c1 = arith.constant 1 : index
    %c0_25 = arith.constant 0 : index
    %c0_26 = arith.constant 0 : index
    %43 = vector.load %arg10[%c1, %c0_25, %c0_26] : memref<2x2x32xf32, #tpu.memory_space<vmem>>, vector<1x2x32xf32>
    %44 = vector.shape_cast %43 : vector<1x2x32xf32> to vector<2x32xf32>
    %cst_27 = arith.constant dense<0.000000e+00> : vector<2x96xf32>
    %45 = tpu.matmul %39, %5, %cst_27 {dimension_numbers = #tpu.dot_dimension_numbers<[1], [0], [0], [1], [0, 0, 1, 1], [], []>} : vector<2x32xf32>, vector<32x96xf32>, vector<2x96xf32> -> vector<2x96xf32>
    %46 = vector.broadcast %6 : vector<1x96xf32> to vector<2x96xf32>
    %47 = arith.addf %45, %46 : vector<2x96xf32>
    %cst_28 = arith.constant dense<0.000000e+00> : vector<2x64xf32>
    %48 = tpu.matmul %44, %7, %cst_28 {dimension_numbers = #tpu.dot_dimension_numbers<[1], [0], [0], [1], [0, 0, 1, 1], [], []>} : vector<2x32xf32>, vector<32x64xf32>, vector<2x64xf32> -> vector<2x64xf32>
    %49 = vector.extract_strided_slice %47 {offsets = [0, 0], sizes = [2, 32], strides = [1, 1]} : vector<2x96xf32> to vector<2x32xf32>
    %50 = vector.extract_strided_slice %48 {offsets = [0, 0], sizes = [2, 32], strides = [1, 1]} : vector<2x64xf32> to vector<2x32xf32>
    %51 = arith.addf %49, %50 : vector<2x32xf32>
    %52 = arith.negf %51 : vector<2x32xf32>
    %53 = math.exp %52 : vector<2x32xf32>
    %cst_29 = arith.constant 1.000000e+00 : f32
    %54 = vector.broadcast %cst_29 : f32 to vector<2x32xf32>
    %55 = arith.addf %54, %53 : vector<2x32xf32>
    %56 = arith.divf %54, %55 : vector<2x32xf32>
    %57 = vector.extract_strided_slice %47 {offsets = [0, 32], sizes = [2, 32], strides = [1, 1]} : vector<2x96xf32> to vector<2x32xf32>
    %58 = vector.extract_strided_slice %48 {offsets = [0, 32], sizes = [2, 32], strides = [1, 1]} : vector<2x64xf32> to vector<2x32xf32>
    %59 = arith.addf %57, %58 : vector<2x32xf32>
    %60 = arith.negf %59 : vector<2x32xf32>
    %61 = math.exp %60 : vector<2x32xf32>
    %cst_30 = arith.constant 1.000000e+00 : f32
    %62 = vector.broadcast %cst_30 : f32 to vector<2x32xf32>
    %63 = arith.addf %62, %61 : vector<2x32xf32>
    %64 = arith.divf %62, %63 : vector<2x32xf32>
    %65 = vector.extract_strided_slice %47 {offsets = [0, 64], sizes = [2, 32], strides = [1, 1]} : vector<2x96xf32> to vector<2x32xf32>
    %66 = arith.mulf %64, %44 : vector<2x32xf32>
    %cst_31 = arith.constant dense<0.000000e+00> : vector<2x32xf32>
    %67 = tpu.matmul %66, %8, %cst_31 {dimension_numbers = #tpu.dot_dimension_numbers<[1], [0], [0], [1], [0, 0, 1, 1], [], []>} : vector<2x32xf32>, vector<32x32xf32>, vector<2x32xf32> -> vector<2x32xf32>
    %68 = arith.addf %65, %67 : vector<2x32xf32>
    %69 = math.tanh %68 : vector<2x32xf32>
    %70 = arith.mulf %56, %44 : vector<2x32xf32>
    %cst_32 = arith.constant 1.000000e+00 : f32
    %71 = vector.broadcast %cst_32 : f32 to vector<2x32xf32>
    %72 = arith.subf %71, %56 : vector<2x32xf32>
    %73 = arith.mulf %72, %69 : vector<2x32xf32>
    %74 = arith.addf %70, %73 : vector<2x32xf32>
    %c1_33 = arith.constant 1 : index
    %c0_34 = arith.constant 0 : index
    %c0_35 = arith.constant 0 : index
    %75 = vector.load %arg10[%c1_33, %c0_34, %c0_35] : memref<2x2x32xf32, #tpu.memory_space<vmem>>, vector<1x2x32xf32>
    %76 = vector.shape_cast %75 : vector<1x2x32xf32> to vector<2x32xf32>
    %77 = vector.shape_cast %74 : vector<2x32xf32> to vector<1x2x32xf32>
    tpu.vector_store %arg10[%c1_33, %c0_34, %c0_35], %77 {strides = array<i32>} : memref<2x2x32xf32, #tpu.memory_space<vmem>>, vector<1x2x32xf32>,
    %78 = vector.shape_cast %74 : vector<2x32xf32> to vector<2x1x32xf32>
    %c0_36 = arith.constant 0 : index
    %c0_37 = arith.constant 0 : index
    %c0_38 = arith.constant 0 : index
    %79 = vector.load %arg9[%c0_36, %c0_37, %c0_38] : memref<2x8x32xf32, #tpu.memory_space<vmem>>, vector<2x1x32xf32>
    tpu.vector_store %arg9[%c0_36, %c0_37, %c0_38], %78 {strides = array<i32>} : memref<2x8x32xf32, #tpu.memory_space<vmem>>, vector<2x1x32xf32>,
    %c0_39 = arith.constant 0 : index
    %c0_40 = arith.constant 0 : index
    %c0_41 = arith.constant 0 : index
    %80 = vector.load %arg10[%c0_39, %c0_40, %c0_41] : memref<2x2x32xf32, #tpu.memory_space<vmem>>, vector<1x2x32xf32>
    %81 = vector.shape_cast %80 : vector<1x2x32xf32> to vector<2x32xf32>
    %c1_42 = arith.constant 1 : index
    %c0_43 = arith.constant 0 : index
    %c0_44 = arith.constant 0 : index
    %82 = vector.load %arg1[%c1_42, %c0_43, %c0_44] : memref<8x2x96xf32, #tpu.memory_space<vmem>>, vector<1x2x96xf32>
    %83 = vector.shape_cast %82 : vector<1x2x96xf32> to vector<2x96xf32>
    %cst_45 = arith.constant dense<0.000000e+00> : vector<2x64xf32>
    %84 = tpu.matmul %81, %3, %cst_45 {dimension_numbers = #tpu.dot_dimension_numbers<[1], [0], [0], [1], [0, 0, 1, 1], [], []>} : vector<2x32xf32>, vector<32x64xf32>, vector<2x64xf32> -> vector<2x64xf32>
    %85 = vector.extract_strided_slice %83 {offsets = [0, 0], sizes = [2, 32], strides = [1, 1]} : vector<2x96xf32> to vector<2x32xf32>
    %86 = vector.extract_strided_slice %84 {offsets = [0, 0], sizes = [2, 32], strides = [1, 1]} : vector<2x64xf32> to vector<2x32xf32>
    %87 = arith.addf %85, %86 : vector<2x32xf32>
    %88 = arith.negf %87 : vector<2x32xf32>
    %89 = math.exp %88 : vector<2x32xf32>
    %cst_46 = arith.constant 1.000000e+00 : f32
    %90 = vector.broadcast %cst_46 : f32 to vector<2x32xf32>
    %91 = arith.addf %90, %89 : vector<2x32xf32>
    %92 = arith.divf %90, %91 : vector<2x32xf32>
    %93 = vector.extract_strided_slice %83 {offsets = [0, 32], sizes = [2, 32], strides = [1, 1]} : vector<2x96xf32> to vector<2x32xf32>
    %94 = vector.extract_strided_slice %84 {offsets = [0, 32], sizes = [2, 32], strides = [1, 1]} : vector<2x64xf32> to vector<2x32xf32>
    %95 = arith.addf %93, %94 : vector<2x32xf32>
    %96 = arith.negf %95 : vector<2x32xf32>
    %97 = math.exp %96 : vector<2x32xf32>
    %cst_47 = arith.constant 1.000000e+00 : f32
    %98 = vector.broadcast %cst_47 : f32 to vector<2x32xf32>
    %99 = arith.addf %98, %97 : vector<2x32xf32>
    %100 = arith.divf %98, %99 : vector<2x32xf32>
    %101 = vector.extract_strided_slice %83 {offsets = [0, 64], sizes = [2, 32], strides = [1, 1]} : vector<2x96xf32> to vector<2x32xf32>
    %102 = arith.mulf %100, %81 : vector<2x32xf32>
    %cst_48 = arith.constant dense<0.000000e+00> : vector<2x32xf32>
    %103 = tpu.matmul %102, %4, %cst_48 {dimension_numbers = #tpu.dot_dimension_numbers<[1], [0], [0], [1], [0, 0, 1, 1], [], []>} : vector<2x32xf32>, vector<32x32xf32>, vector<2x32xf32> -> vector<2x32xf32>
    %104 = arith.addf %101, %103 : vector<2x32xf32>
    %105 = math.tanh %104 : vector<2x32xf32>
    %106 = arith.mulf %92, %81 : vector<2x32xf32>
    %cst_49 = arith.constant 1.000000e+00 : f32
    %107 = vector.broadcast %cst_49 : f32 to vector<2x32xf32>
    %108 = arith.subf %107, %92 : vector<2x32xf32>
    %109 = arith.mulf %108, %105 : vector<2x32xf32>
    %110 = arith.addf %106, %109 : vector<2x32xf32>
    %c0_50 = arith.constant 0 : index
    %c0_51 = arith.constant 0 : index
    %c0_52 = arith.constant 0 : index
    %111 = vector.load %arg10[%c0_50, %c0_51, %c0_52] : memref<2x2x32xf32, #tpu.memory_space<vmem>>, vector<1x2x32xf32>
    %112 = vector.shape_cast %111 : vector<1x2x32xf32> to vector<2x32xf32>
    %113 = vector.shape_cast %110 : vector<2x32xf32> to vector<1x2x32xf32>
    tpu.vector_store %arg10[%c0_50, %c0_51, %c0_52], %113 {strides = array<i32>} : memref<2x2x32xf32, #tpu.memory_space<vmem>>, vector<1x2x32xf32>,
    %c1_53 = arith.constant 1 : index
    %c0_54 = arith.constant 0 : index
    %c0_55 = arith.constant 0 : index
    %114 = vector.load %arg10[%c1_53, %c0_54, %c0_55] : memref<2x2x32xf32, #tpu.memory_space<vmem>>, vector<1x2x32xf32>
    %115 = vector.shape_cast %114 : vector<1x2x32xf32> to vector<2x32xf32>
    %cst_56 = arith.constant dense<0.000000e+00> : vector<2x96xf32>
    %116 = tpu.matmul %110, %5, %cst_56 {dimension_numbers = #tpu.dot_dimension_numbers<[1], [0], [0], [1], [0, 0, 1, 1], [], []>} : vector<2x32xf32>, vector<32x96xf32>, vector<2x96xf32> -> vector<2x96xf32>
    %117 = vector.broadcast %6 : vector<1x96xf32> to vector<2x96xf32>
    %118 = arith.addf %116, %117 : vector<2x96xf32>
    %cst_57 = arith.constant dense<0.000000e+00> : vector<2x64xf32>
    %119 = tpu.matmul %115, %7, %cst_57 {dimension_numbers = #tpu.dot_dimension_numbers<[1], [0], [0], [1], [0, 0, 1, 1], [], []>} : vector<2x32xf32>, vector<32x64xf32>, vector<2x64xf32> -> vector<2x64xf32>
    %120 = vector.extract_strided_slice %118 {offsets = [0, 0], sizes = [2, 32], strides = [1, 1]} : vector<2x96xf32> to vector<2x32xf32>
    %121 = vector.extract_strided_slice %119 {offsets = [0, 0], sizes = [2, 32], strides = [1, 1]} : vector<2x64xf32> to vector<2x32xf32>
    %122 = arith.addf %120, %121 : vector<2x32xf32>
    %123 = arith.negf %122 : vector<2x32xf32>
    %124 = math.exp %123 : vector<2x32xf32>
    %cst_58 = arith.constant 1.000000e+00 : f32
    %125 = vector.broadcast %cst_58 : f32 to vector<2x32xf32>
    %126 = arith.addf %125, %124 : vector<2x32xf32>
    %127 = arith.divf %125, %126 : vector<2x32xf32>
    %128 = vector.extract_strided_slice %118 {offsets = [0, 32], sizes = [2, 32], strides = [1, 1]} : vector<2x96xf32> to vector<2x32xf32>
    %129 = vector.extract_strided_slice %119 {offsets = [0, 32], sizes = [2, 32], strides = [1, 1]} : vector<2x64xf32> to vector<2x32xf32>
    %130 = arith.addf %128, %129 : vector<2x32xf32>
    %131 = arith.negf %130 : vector<2x32xf32>
    %132 = math.exp %131 : vector<2x32xf32>
    %cst_59 = arith.constant 1.000000e+00 : f32
    %133 = vector.broadcast %cst_59 : f32 to vector<2x32xf32>
    %134 = arith.addf %133, %132 : vector<2x32xf32>
    %135 = arith.divf %133, %134 : vector<2x32xf32>
    %136 = vector.extract_strided_slice %118 {offsets = [0, 64], sizes = [2, 32], strides = [1, 1]} : vector<2x96xf32> to vector<2x32xf32>
    %137 = arith.mulf %135, %115 : vector<2x32xf32>
    %cst_60 = arith.constant dense<0.000000e+00> : vector<2x32xf32>
    %138 = tpu.matmul %137, %8, %cst_60 {dimension_numbers = #tpu.dot_dimension_numbers<[1], [0], [0], [1], [0, 0, 1, 1], [], []>} : vector<2x32xf32>, vector<32x32xf32>, vector<2x32xf32> -> vector<2x32xf32>
    %139 = arith.addf %136, %138 : vector<2x32xf32>
    %140 = math.tanh %139 : vector<2x32xf32>
    %141 = arith.mulf %127, %115 : vector<2x32xf32>
    %cst_61 = arith.constant 1.000000e+00 : f32
    %142 = vector.broadcast %cst_61 : f32 to vector<2x32xf32>
    %143 = arith.subf %142, %127 : vector<2x32xf32>
    %144 = arith.mulf %143, %140 : vector<2x32xf32>
    %145 = arith.addf %141, %144 : vector<2x32xf32>
    %c1_62 = arith.constant 1 : index
    %c0_63 = arith.constant 0 : index
    %c0_64 = arith.constant 0 : index
    %146 = vector.load %arg10[%c1_62, %c0_63, %c0_64] : memref<2x2x32xf32, #tpu.memory_space<vmem>>, vector<1x2x32xf32>
    %147 = vector.shape_cast %146 : vector<1x2x32xf32> to vector<2x32xf32>
    %148 = vector.shape_cast %145 : vector<2x32xf32> to vector<1x2x32xf32>
    tpu.vector_store %arg10[%c1_62, %c0_63, %c0_64], %148 {strides = array<i32>} : memref<2x2x32xf32, #tpu.memory_space<vmem>>, vector<1x2x32xf32>,
    %149 = vector.shape_cast %145 : vector<2x32xf32> to vector<2x1x32xf32>
    %c0_65 = arith.constant 0 : index
    %c1_66 = arith.constant 1 : index
    %c0_67 = arith.constant 0 : index
    %150 = vector.load %arg9[%c0_65, %c1_66, %c0_67] : memref<2x8x32xf32, #tpu.memory_space<vmem>>, vector<2x1x32xf32>
    tpu.vector_store %arg9[%c0_65, %c1_66, %c0_67], %149 {strides = array<i32>} : memref<2x8x32xf32, #tpu.memory_space<vmem>>, vector<2x1x32xf32>,
    %c0_68 = arith.constant 0 : index
    %c0_69 = arith.constant 0 : index
    %c0_70 = arith.constant 0 : index
    %151 = vector.load %arg10[%c0_68, %c0_69, %c0_70] : memref<2x2x32xf32, #tpu.memory_space<vmem>>, vector<1x2x32xf32>
    %152 = vector.shape_cast %151 : vector<1x2x32xf32> to vector<2x32xf32>
    %c2 = arith.constant 2 : index
    %c0_71 = arith.constant 0 : index
    %c0_72 = arith.constant 0 : index
    %153 = vector.load %arg1[%c2, %c0_71, %c0_72] : memref<8x2x96xf32, #tpu.memory_space<vmem>>, vector<1x2x96xf32>
    %154 = vector.shape_cast %153 : vector<1x2x96xf32> to vector<2x96xf32>
    %cst_73 = arith.constant dense<0.000000e+00> : vector<2x64xf32>
    %155 = tpu.matmul %152, %3, %cst_73 {dimension_numbers = #tpu.dot_dimension_numbers<[1], [0], [0], [1], [0, 0, 1, 1], [], []>} : vector<2x32xf32>, vector<32x64xf32>, vector<2x64xf32> -> vector<2x64xf32>
    %156 = vector.extract_strided_slice %154 {offsets = [0, 0], sizes = [2, 32], strides = [1, 1]} : vector<2x96xf32> to vector<2x32xf32>
    %157 = vector.extract_strided_slice %155 {offsets = [0, 0], sizes = [2, 32], strides = [1, 1]} : vector<2x64xf32> to vector<2x32xf32>
    %158 = arith.addf %156, %157 : vector<2x32xf32>
    %159 = arith.negf %158 : vector<2x32xf32>
    %160 = math.exp %159 : vector<2x32xf32>
    %cst_74 = arith.constant 1.000000e+00 : f32
    %161 = vector.broadcast %cst_74 : f32 to vector<2x32xf32>
    %162 = arith.addf %161, %160 : vector<2x32xf32>
    %163 = arith.divf %161, %162 : vector<2x32xf32>
    %164 = vector.extract_strided_slice %154 {offsets = [0, 32], sizes = [2, 32], strides = [1, 1]} : vector<2x96xf32> to vector<2x32xf32>
    %165 = vector.extract_strided_slice %155 {offsets = [0, 32], sizes = [2, 32], strides = [1, 1]} : vector<2x64xf32> to vector<2x32xf32>
    %166 = arith.addf %164, %165 : vector<2x32xf32>
    %167 = arith.negf %166 : vector<2x32xf32>
    %168 = math.exp %167 : vector<2x32xf32>
    %cst_75 = arith.constant 1.000000e+00 : f32
    %169 = vector.broadcast %cst_75 : f32 to vector<2x32xf32>
    %170 = arith.addf %169, %168 : vector<2x32xf32>
    %171 = arith.divf %169, %170 : vector<2x32xf32>
    %172 = vector.extract_strided_slice %154 {offsets = [0, 64], sizes = [2, 32], strides = [1, 1]} : vector<2x96xf32> to vector<2x32xf32>
    %173 = arith.mulf %171, %152 : vector<2x32xf32>
    %cst_76 = arith.constant dense<0.000000e+00> : vector<2x32xf32>
    %174 = tpu.matmul %173, %4, %cst_76 {dimension_numbers = #tpu.dot_dimension_numbers<[1], [0], [0], [1], [0, 0, 1, 1], [], []>} : vector<2x32xf32>, vector<32x32xf32>, vector<2x32xf32> -> vector<2x32xf32>
    %175 = arith.addf %172, %174 : vector<2x32xf32>
    %176 = math.tanh %175 : vector<2x32xf32>
    %177 = arith.mulf %163, %152 : vector<2x32xf32>
    %cst_77 = arith.constant 1.000000e+00 : f32
    %178 = vector.broadcast %cst_77 : f32 to vector<2x32xf32>
    %179 = arith.subf %178, %163 : vector<2x32xf32>
    %180 = arith.mulf %179, %176 : vector<2x32xf32>
    %181 = arith.addf %177, %180 : vector<2x32xf32>
    %c0_78 = arith.constant 0 : index
    %c0_79 = arith.constant 0 : index
    %c0_80 = arith.constant 0 : index
    %182 = vector.load %arg10[%c0_78, %c0_79, %c0_80] : memref<2x2x32xf32, #tpu.memory_space<vmem>>, vector<1x2x32xf32>
    %183 = vector.shape_cast %182 : vector<1x2x32xf32> to vector<2x32xf32>
    %184 = vector.shape_cast %181 : vector<2x32xf32> to vector<1x2x32xf32>
    tpu.vector_store %arg10[%c0_78, %c0_79, %c0_80], %184 {strides = array<i32>} : memref<2x2x32xf32, #tpu.memory_space<vmem>>, vector<1x2x32xf32>,
    %c1_81 = arith.constant 1 : index
    %c0_82 = arith.constant 0 : index
    %c0_83 = arith.constant 0 : index
    %185 = vector.load %arg10[%c1_81, %c0_82, %c0_83] : memref<2x2x32xf32, #tpu.memory_space<vmem>>, vector<1x2x32xf32>
    %186 = vector.shape_cast %185 : vector<1x2x32xf32> to vector<2x32xf32>
    %cst_84 = arith.constant dense<0.000000e+00> : vector<2x96xf32>
    %187 = tpu.matmul %181, %5, %cst_84 {dimension_numbers = #tpu.dot_dimension_numbers<[1], [0], [0], [1], [0, 0, 1, 1], [], []>} : vector<2x32xf32>, vector<32x96xf32>, vector<2x96xf32> -> vector<2x96xf32>
    %188 = vector.broadcast %6 : vector<1x96xf32> to vector<2x96xf32>
    %189 = arith.addf %187, %188 : vector<2x96xf32>
    %cst_85 = arith.constant dense<0.000000e+00> : vector<2x64xf32>
    %190 = tpu.matmul %186, %7, %cst_85 {dimension_numbers = #tpu.dot_dimension_numbers<[1], [0], [0], [1], [0, 0, 1, 1], [], []>} : vector<2x32xf32>, vector<32x64xf32>, vector<2x64xf32> -> vector<2x64xf32>
    %191 = vector.extract_strided_slice %189 {offsets = [0, 0], sizes = [2, 32], strides = [1, 1]} : vector<2x96xf32> to vector<2x32xf32>
    %192 = vector.extract_strided_slice %190 {offsets = [0, 0], sizes = [2, 32], strides = [1, 1]} : vector<2x64xf32> to vector<2x32xf32>
    %193 = arith.addf %191, %192 : vector<2x32xf32>
    %194 = arith.negf %193 : vector<2x32xf32>
    %195 = math.exp %194 : vector<2x32xf32>
    %cst_86 = arith.constant 1.000000e+00 : f32
    %196 = vector.broadcast %cst_86 : f32 to vector<2x32xf32>
    %197 = arith.addf %196, %195 : vector<2x32xf32>
    %198 = arith.divf %196, %197 : vector<2x32xf32>
    %199 = vector.extract_strided_slice %189 {offsets = [0, 32], sizes = [2, 32], strides = [1, 1]} : vector<2x96xf32> to vector<2x32xf32>
    %200 = vector.extract_strided_slice %190 {offsets = [0, 32], sizes = [2, 32], strides = [1, 1]} : vector<2x64xf32> to vector<2x32xf32>
    %201 = arith.addf %199, %200 : vector<2x32xf32>
    %202 = arith.negf %201 : vector<2x32xf32>
    %203 = math.exp %202 : vector<2x32xf32>
    %cst_87 = arith.constant 1.000000e+00 : f32
    %204 = vector.broadcast %cst_87 : f32 to vector<2x32xf32>
    %205 = arith.addf %204, %203 : vector<2x32xf32>
    %206 = arith.divf %204, %205 : vector<2x32xf32>
    %207 = vector.extract_strided_slice %189 {offsets = [0, 64], sizes = [2, 32], strides = [1, 1]} : vector<2x96xf32> to vector<2x32xf32>
    %208 = arith.mulf %206, %186 : vector<2x32xf32>
    %cst_88 = arith.constant dense<0.000000e+00> : vector<2x32xf32>
    %209 = tpu.matmul %208, %8, %cst_88 {dimension_numbers = #tpu.dot_dimension_numbers<[1], [0], [0], [1], [0, 0, 1, 1], [], []>} : vector<2x32xf32>, vector<32x32xf32>, vector<2x32xf32> -> vector<2x32xf32>
    %210 = arith.addf %207, %209 : vector<2x32xf32>
    %211 = math.tanh %210 : vector<2x32xf32>
    %212 = arith.mulf %198, %186 : vector<2x32xf32>
    %cst_89 = arith.constant 1.000000e+00 : f32
    %213 = vector.broadcast %cst_89 : f32 to vector<2x32xf32>
    %214 = arith.subf %213, %198 : vector<2x32xf32>
    %215 = arith.mulf %214, %211 : vector<2x32xf32>
    %216 = arith.addf %212, %215 : vector<2x32xf32>
    %c1_90 = arith.constant 1 : index
    %c0_91 = arith.constant 0 : index
    %c0_92 = arith.constant 0 : index
    %217 = vector.load %arg10[%c1_90, %c0_91, %c0_92] : memref<2x2x32xf32, #tpu.memory_space<vmem>>, vector<1x2x32xf32>
    %218 = vector.shape_cast %217 : vector<1x2x32xf32> to vector<2x32xf32>
    %219 = vector.shape_cast %216 : vector<2x32xf32> to vector<1x2x32xf32>
    tpu.vector_store %arg10[%c1_90, %c0_91, %c0_92], %219 {strides = array<i32>} : memref<2x2x32xf32, #tpu.memory_space<vmem>>, vector<1x2x32xf32>,
    %220 = vector.shape_cast %216 : vector<2x32xf32> to vector<2x1x32xf32>
    %c0_93 = arith.constant 0 : index
    %c2_94 = arith.constant 2 : index
    %c0_95 = arith.constant 0 : index
    %221 = vector.load %arg9[%c0_93, %c2_94, %c0_95] : memref<2x8x32xf32, #tpu.memory_space<vmem>>, vector<2x1x32xf32>
    tpu.vector_store %arg9[%c0_93, %c2_94, %c0_95], %220 {strides = array<i32>} : memref<2x8x32xf32, #tpu.memory_space<vmem>>, vector<2x1x32xf32>,
    %c0_96 = arith.constant 0 : index
    %c0_97 = arith.constant 0 : index
    %c0_98 = arith.constant 0 : index
    %222 = vector.load %arg10[%c0_96, %c0_97, %c0_98] : memref<2x2x32xf32, #tpu.memory_space<vmem>>, vector<1x2x32xf32>
    %223 = vector.shape_cast %222 : vector<1x2x32xf32> to vector<2x32xf32>
    %c3 = arith.constant 3 : index
    %c0_99 = arith.constant 0 : index
    %c0_100 = arith.constant 0 : index
    %224 = vector.load %arg1[%c3, %c0_99, %c0_100] : memref<8x2x96xf32, #tpu.memory_space<vmem>>, vector<1x2x96xf32>
    %225 = vector.shape_cast %224 : vector<1x2x96xf32> to vector<2x96xf32>
    %cst_101 = arith.constant dense<0.000000e+00> : vector<2x64xf32>
    %226 = tpu.matmul %223, %3, %cst_101 {dimension_numbers = #tpu.dot_dimension_numbers<[1], [0], [0], [1], [0, 0, 1, 1], [], []>} : vector<2x32xf32>, vector<32x64xf32>, vector<2x64xf32> -> vector<2x64xf32>
    %227 = vector.extract_strided_slice %225 {offsets = [0, 0], sizes = [2, 32], strides = [1, 1]} : vector<2x96xf32> to vector<2x32xf32>
    %228 = vector.extract_strided_slice %226 {offsets = [0, 0], sizes = [2, 32], strides = [1, 1]} : vector<2x64xf32> to vector<2x32xf32>
    %229 = arith.addf %227, %228 : vector<2x32xf32>
    %230 = arith.negf %229 : vector<2x32xf32>
    %231 = math.exp %230 : vector<2x32xf32>
    %cst_102 = arith.constant 1.000000e+00 : f32
    %232 = vector.broadcast %cst_102 : f32 to vector<2x32xf32>
    %233 = arith.addf %232, %231 : vector<2x32xf32>
    %234 = arith.divf %232, %233 : vector<2x32xf32>
    %235 = vector.extract_strided_slice %225 {offsets = [0, 32], sizes = [2, 32], strides = [1, 1]} : vector<2x96xf32> to vector<2x32xf32>
    %236 = vector.extract_strided_slice %226 {offsets = [0, 32], sizes = [2, 32], strides = [1, 1]} : vector<2x64xf32> to vector<2x32xf32>
    %237 = arith.addf %235, %236 : vector<2x32xf32>
    %238 = arith.negf %237 : vector<2x32xf32>
    %239 = math.exp %238 : vector<2x32xf32>
    %cst_103 = arith.constant 1.000000e+00 : f32
    %240 = vector.broadcast %cst_103 : f32 to vector<2x32xf32>
    %241 = arith.addf %240, %239 : vector<2x32xf32>
    %242 = arith.divf %240, %241 : vector<2x32xf32>
    %243 = vector.extract_strided_slice %225 {offsets = [0, 64], sizes = [2, 32], strides = [1, 1]} : vector<2x96xf32> to vector<2x32xf32>
    %244 = arith.mulf %242, %223 : vector<2x32xf32>
    %cst_104 = arith.constant dense<0.000000e+00> : vector<2x32xf32>
    %245 = tpu.matmul %244, %4, %cst_104 {dimension_numbers = #tpu.dot_dimension_numbers<[1], [0], [0], [1], [0, 0, 1, 1], [], []>} : vector<2x32xf32>, vector<32x32xf32>, vector<2x32xf32> -> vector<2x32xf32>
    %246 = arith.addf %243, %245 : vector<2x32xf32>
    %247 = math.tanh %246 : vector<2x32xf32>
    %248 = arith.mulf %234, %223 : vector<2x32xf32>
    %cst_105 = arith.constant 1.000000e+00 : f32
    %249 = vector.broadcast %cst_105 : f32 to vector<2x32xf32>
    %250 = arith.subf %249, %234 : vector<2x32xf32>
    %251 = arith.mulf %250, %247 : vector<2x32xf32>
    %252 = arith.addf %248, %251 : vector<2x32xf32>
    %c0_106 = arith.constant 0 : index
    %c0_107 = arith.constant 0 : index
    %c0_108 = arith.constant 0 : index
    %253 = vector.load %arg10[%c0_106, %c0_107, %c0_108] : memref<2x2x32xf32, #tpu.memory_space<vmem>>, vector<1x2x32xf32>
    %254 = vector.shape_cast %253 : vector<1x2x32xf32> to vector<2x32xf32>
    %255 = vector.shape_cast %252 : vector<2x32xf32> to vector<1x2x32xf32>
    tpu.vector_store %arg10[%c0_106, %c0_107, %c0_108], %255 {strides = array<i32>} : memref<2x2x32xf32, #tpu.memory_space<vmem>>, vector<1x2x32xf32>,
    %c1_109 = arith.constant 1 : index
    %c0_110 = arith.constant 0 : index
    %c0_111 = arith.constant 0 : index
    %256 = vector.load %arg10[%c1_109, %c0_110, %c0_111] : memref<2x2x32xf32, #tpu.memory_space<vmem>>, vector<1x2x32xf32>
    %257 = vector.shape_cast %256 : vector<1x2x32xf32> to vector<2x32xf32>
    %cst_112 = arith.constant dense<0.000000e+00> : vector<2x96xf32>
    %258 = tpu.matmul %252, %5, %cst_112 {dimension_numbers = #tpu.dot_dimension_numbers<[1], [0], [0], [1], [0, 0, 1, 1], [], []>} : vector<2x32xf32>, vector<32x96xf32>, vector<2x96xf32> -> vector<2x96xf32>
    %259 = vector.broadcast %6 : vector<1x96xf32> to vector<2x96xf32>
    %260 = arith.addf %258, %259 : vector<2x96xf32>
    %cst_113 = arith.constant dense<0.000000e+00> : vector<2x64xf32>
    %261 = tpu.matmul %257, %7, %cst_113 {dimension_numbers = #tpu.dot_dimension_numbers<[1], [0], [0], [1], [0, 0, 1, 1], [], []>} : vector<2x32xf32>, vector<32x64xf32>, vector<2x64xf32> -> vector<2x64xf32>
    %262 = vector.extract_strided_slice %260 {offsets = [0, 0], sizes = [2, 32], strides = [1, 1]} : vector<2x96xf32> to vector<2x32xf32>
    %263 = vector.extract_strided_slice %261 {offsets = [0, 0], sizes = [2, 32], strides = [1, 1]} : vector<2x64xf32> to vector<2x32xf32>
    %264 = arith.addf %262, %263 : vector<2x32xf32>
    %265 = arith.negf %264 : vector<2x32xf32>
    %266 = math.exp %265 : vector<2x32xf32>
    %cst_114 = arith.constant 1.000000e+00 : f32
    %267 = vector.broadcast %cst_114 : f32 to vector<2x32xf32>
    %268 = arith.addf %267, %266 : vector<2x32xf32>
    %269 = arith.divf %267, %268 : vector<2x32xf32>
    %270 = vector.extract_strided_slice %260 {offsets = [0, 32], sizes = [2, 32], strides = [1, 1]} : vector<2x96xf32> to vector<2x32xf32>
    %271 = vector.extract_strided_slice %261 {offsets = [0, 32], sizes = [2, 32], strides = [1, 1]} : vector<2x64xf32> to vector<2x32xf32>
    %272 = arith.addf %270, %271 : vector<2x32xf32>
    %273 = arith.negf %272 : vector<2x32xf32>
    %274 = math.exp %273 : vector<2x32xf32>
    %cst_115 = arith.constant 1.000000e+00 : f32
    %275 = vector.broadcast %cst_115 : f32 to vector<2x32xf32>
    %276 = arith.addf %275, %274 : vector<2x32xf32>
    %277 = arith.divf %275, %276 : vector<2x32xf32>
    %278 = vector.extract_strided_slice %260 {offsets = [0, 64], sizes = [2, 32], strides = [1, 1]} : vector<2x96xf32> to vector<2x32xf32>
    %279 = arith.mulf %277, %257 : vector<2x32xf32>
    %cst_116 = arith.constant dense<0.000000e+00> : vector<2x32xf32>
    %280 = tpu.matmul %279, %8, %cst_116 {dimension_numbers = #tpu.dot_dimension_numbers<[1], [0], [0], [1], [0, 0, 1, 1], [], []>} : vector<2x32xf32>, vector<32x32xf32>, vector<2x32xf32> -> vector<2x32xf32>
    %281 = arith.addf %278, %280 : vector<2x32xf32>
    %282 = math.tanh %281 : vector<2x32xf32>
    %283 = arith.mulf %269, %257 : vector<2x32xf32>
    %cst_117 = arith.constant 1.000000e+00 : f32
    %284 = vector.broadcast %cst_117 : f32 to vector<2x32xf32>
    %285 = arith.subf %284, %269 : vector<2x32xf32>
    %286 = arith.mulf %285, %282 : vector<2x32xf32>
    %287 = arith.addf %283, %286 : vector<2x32xf32>
    %c1_118 = arith.constant 1 : index
    %c0_119 = arith.constant 0 : index
    %c0_120 = arith.constant 0 : index
    %288 = vector.load %arg10[%c1_118, %c0_119, %c0_120] : memref<2x2x32xf32, #tpu.memory_space<vmem>>, vector<1x2x32xf32>
    %289 = vector.shape_cast %288 : vector<1x2x32xf32> to vector<2x32xf32>
    %290 = vector.shape_cast %287 : vector<2x32xf32> to vector<1x2x32xf32>
    tpu.vector_store %arg10[%c1_118, %c0_119, %c0_120], %290 {strides = array<i32>} : memref<2x2x32xf32, #tpu.memory_space<vmem>>, vector<1x2x32xf32>,
    %291 = vector.shape_cast %287 : vector<2x32xf32> to vector<2x1x32xf32>
    %c0_121 = arith.constant 0 : index
    %c3_122 = arith.constant 3 : index
    %c0_123 = arith.constant 0 : index
    %292 = vector.load %arg9[%c0_121, %c3_122, %c0_123] : memref<2x8x32xf32, #tpu.memory_space<vmem>>, vector<2x1x32xf32>
    tpu.vector_store %arg9[%c0_121, %c3_122, %c0_123], %291 {strides = array<i32>} : memref<2x8x32xf32, #tpu.memory_space<vmem>>, vector<2x1x32xf32>,
    %c0_124 = arith.constant 0 : index
    %c0_125 = arith.constant 0 : index
    %c0_126 = arith.constant 0 : index
    %293 = vector.load %arg10[%c0_124, %c0_125, %c0_126] : memref<2x2x32xf32, #tpu.memory_space<vmem>>, vector<1x2x32xf32>
    %294 = vector.shape_cast %293 : vector<1x2x32xf32> to vector<2x32xf32>
    %c4 = arith.constant 4 : index
    %c0_127 = arith.constant 0 : index
    %c0_128 = arith.constant 0 : index
    %295 = vector.load %arg1[%c4, %c0_127, %c0_128] : memref<8x2x96xf32, #tpu.memory_space<vmem>>, vector<1x2x96xf32>
    %296 = vector.shape_cast %295 : vector<1x2x96xf32> to vector<2x96xf32>
    %cst_129 = arith.constant dense<0.000000e+00> : vector<2x64xf32>
    %297 = tpu.matmul %294, %3, %cst_129 {dimension_numbers = #tpu.dot_dimension_numbers<[1], [0], [0], [1], [0, 0, 1, 1], [], []>} : vector<2x32xf32>, vector<32x64xf32>, vector<2x64xf32> -> vector<2x64xf32>
    %298 = vector.extract_strided_slice %296 {offsets = [0, 0], sizes = [2, 32], strides = [1, 1]} : vector<2x96xf32> to vector<2x32xf32>
    %299 = vector.extract_strided_slice %297 {offsets = [0, 0], sizes = [2, 32], strides = [1, 1]} : vector<2x64xf32> to vector<2x32xf32>
    %300 = arith.addf %298, %299 : vector<2x32xf32>
    %301 = arith.negf %300 : vector<2x32xf32>
    %302 = math.exp %301 : vector<2x32xf32>
    %cst_130 = arith.constant 1.000000e+00 : f32
    %303 = vector.broadcast %cst_130 : f32 to vector<2x32xf32>
    %304 = arith.addf %303, %302 : vector<2x32xf32>
    %305 = arith.divf %303, %304 : vector<2x32xf32>
    %306 = vector.extract_strided_slice %296 {offsets = [0, 32], sizes = [2, 32], strides = [1, 1]} : vector<2x96xf32> to vector<2x32xf32>
    %307 = vector.extract_strided_slice %297 {offsets = [0, 32], sizes = [2, 32], strides = [1, 1]} : vector<2x64xf32> to vector<2x32xf32>
    %308 = arith.addf %306, %307 : vector<2x32xf32>
    %309 = arith.negf %308 : vector<2x32xf32>
    %310 = math.exp %309 : vector<2x32xf32>
    %cst_131 = arith.constant 1.000000e+00 : f32
    %311 = vector.broadcast %cst_131 : f32 to vector<2x32xf32>
    %312 = arith.addf %311, %310 : vector<2x32xf32>
    %313 = arith.divf %311, %312 : vector<2x32xf32>
    %314 = vector.extract_strided_slice %296 {offsets = [0, 64], sizes = [2, 32], strides = [1, 1]} : vector<2x96xf32> to vector<2x32xf32>
    %315 = arith.mulf %313, %294 : vector<2x32xf32>
    %cst_132 = arith.constant dense<0.000000e+00> : vector<2x32xf32>
    %316 = tpu.matmul %315, %4, %cst_132 {dimension_numbers = #tpu.dot_dimension_numbers<[1], [0], [0], [1], [0, 0, 1, 1], [], []>} : vector<2x32xf32>, vector<32x32xf32>, vector<2x32xf32> -> vector<2x32xf32>
    %317 = arith.addf %314, %316 : vector<2x32xf32>
    %318 = math.tanh %317 : vector<2x32xf32>
    %319 = arith.mulf %305, %294 : vector<2x32xf32>
    %cst_133 = arith.constant 1.000000e+00 : f32
    %320 = vector.broadcast %cst_133 : f32 to vector<2x32xf32>
    %321 = arith.subf %320, %305 : vector<2x32xf32>
    %322 = arith.mulf %321, %318 : vector<2x32xf32>
    %323 = arith.addf %319, %322 : vector<2x32xf32>
    %c0_134 = arith.constant 0 : index
    %c0_135 = arith.constant 0 : index
    %c0_136 = arith.constant 0 : index
    %324 = vector.load %arg10[%c0_134, %c0_135, %c0_136] : memref<2x2x32xf32, #tpu.memory_space<vmem>>, vector<1x2x32xf32>
    %325 = vector.shape_cast %324 : vector<1x2x32xf32> to vector<2x32xf32>
    %326 = vector.shape_cast %323 : vector<2x32xf32> to vector<1x2x32xf32>
    tpu.vector_store %arg10[%c0_134, %c0_135, %c0_136], %326 {strides = array<i32>} : memref<2x2x32xf32, #tpu.memory_space<vmem>>, vector<1x2x32xf32>,
    %c1_137 = arith.constant 1 : index
    %c0_138 = arith.constant 0 : index
    %c0_139 = arith.constant 0 : index
    %327 = vector.load %arg10[%c1_137, %c0_138, %c0_139] : memref<2x2x32xf32, #tpu.memory_space<vmem>>, vector<1x2x32xf32>
    %328 = vector.shape_cast %327 : vector<1x2x32xf32> to vector<2x32xf32>
    %cst_140 = arith.constant dense<0.000000e+00> : vector<2x96xf32>
    %329 = tpu.matmul %323, %5, %cst_140 {dimension_numbers = #tpu.dot_dimension_numbers<[1], [0], [0], [1], [0, 0, 1, 1], [], []>} : vector<2x32xf32>, vector<32x96xf32>, vector<2x96xf32> -> vector<2x96xf32>
    %330 = vector.broadcast %6 : vector<1x96xf32> to vector<2x96xf32>
    %331 = arith.addf %329, %330 : vector<2x96xf32>
    %cst_141 = arith.constant dense<0.000000e+00> : vector<2x64xf32>
    %332 = tpu.matmul %328, %7, %cst_141 {dimension_numbers = #tpu.dot_dimension_numbers<[1], [0], [0], [1], [0, 0, 1, 1], [], []>} : vector<2x32xf32>, vector<32x64xf32>, vector<2x64xf32> -> vector<2x64xf32>
    %333 = vector.extract_strided_slice %331 {offsets = [0, 0], sizes = [2, 32], strides = [1, 1]} : vector<2x96xf32> to vector<2x32xf32>
    %334 = vector.extract_strided_slice %332 {offsets = [0, 0], sizes = [2, 32], strides = [1, 1]} : vector<2x64xf32> to vector<2x32xf32>
    %335 = arith.addf %333, %334 : vector<2x32xf32>
    %336 = arith.negf %335 : vector<2x32xf32>
    %337 = math.exp %336 : vector<2x32xf32>
    %cst_142 = arith.constant 1.000000e+00 : f32
    %338 = vector.broadcast %cst_142 : f32 to vector<2x32xf32>
    %339 = arith.addf %338, %337 : vector<2x32xf32>
    %340 = arith.divf %338, %339 : vector<2x32xf32>
    %341 = vector.extract_strided_slice %331 {offsets = [0, 32], sizes = [2, 32], strides = [1, 1]} : vector<2x96xf32> to vector<2x32xf32>
    %342 = vector.extract_strided_slice %332 {offsets = [0, 32], sizes = [2, 32], strides = [1, 1]} : vector<2x64xf32> to vector<2x32xf32>
    %343 = arith.addf %341, %342 : vector<2x32xf32>
    %344 = arith.negf %343 : vector<2x32xf32>
    %345 = math.exp %344 : vector<2x32xf32>
    %cst_143 = arith.constant 1.000000e+00 : f32
    %346 = vector.broadcast %cst_143 : f32 to vector<2x32xf32>
    %347 = arith.addf %346, %345 : vector<2x32xf32>
    %348 = arith.divf %346, %347 : vector<2x32xf32>
    %349 = vector.extract_strided_slice %331 {offsets = [0, 64], sizes = [2, 32], strides = [1, 1]} : vector<2x96xf32> to vector<2x32xf32>
    %350 = arith.mulf %348, %328 : vector<2x32xf32>
    %cst_144 = arith.constant dense<0.000000e+00> : vector<2x32xf32>
    %351 = tpu.matmul %350, %8, %cst_144 {dimension_numbers = #tpu.dot_dimension_numbers<[1], [0], [0], [1], [0, 0, 1, 1], [], []>} : vector<2x32xf32>, vector<32x32xf32>, vector<2x32xf32> -> vector<2x32xf32>
    %352 = arith.addf %349, %351 : vector<2x32xf32>
    %353 = math.tanh %352 : vector<2x32xf32>
    %354 = arith.mulf %340, %328 : vector<2x32xf32>
    %cst_145 = arith.constant 1.000000e+00 : f32
    %355 = vector.broadcast %cst_145 : f32 to vector<2x32xf32>
    %356 = arith.subf %355, %340 : vector<2x32xf32>
    %357 = arith.mulf %356, %353 : vector<2x32xf32>
    %358 = arith.addf %354, %357 : vector<2x32xf32>
    %c1_146 = arith.constant 1 : index
    %c0_147 = arith.constant 0 : index
    %c0_148 = arith.constant 0 : index
    %359 = vector.load %arg10[%c1_146, %c0_147, %c0_148] : memref<2x2x32xf32, #tpu.memory_space<vmem>>, vector<1x2x32xf32>
    %360 = vector.shape_cast %359 : vector<1x2x32xf32> to vector<2x32xf32>
    %361 = vector.shape_cast %358 : vector<2x32xf32> to vector<1x2x32xf32>
    tpu.vector_store %arg10[%c1_146, %c0_147, %c0_148], %361 {strides = array<i32>} : memref<2x2x32xf32, #tpu.memory_space<vmem>>, vector<1x2x32xf32>,
    %362 = vector.shape_cast %358 : vector<2x32xf32> to vector<2x1x32xf32>
    %c0_149 = arith.constant 0 : index
    %c4_150 = arith.constant 4 : index
    %c0_151 = arith.constant 0 : index
    %363 = vector.load %arg9[%c0_149, %c4_150, %c0_151] : memref<2x8x32xf32, #tpu.memory_space<vmem>>, vector<2x1x32xf32>
    tpu.vector_store %arg9[%c0_149, %c4_150, %c0_151], %362 {strides = array<i32>} : memref<2x8x32xf32, #tpu.memory_space<vmem>>, vector<2x1x32xf32>,
    %c0_152 = arith.constant 0 : index
    %c0_153 = arith.constant 0 : index
    %c0_154 = arith.constant 0 : index
    %364 = vector.load %arg10[%c0_152, %c0_153, %c0_154] : memref<2x2x32xf32, #tpu.memory_space<vmem>>, vector<1x2x32xf32>
    %365 = vector.shape_cast %364 : vector<1x2x32xf32> to vector<2x32xf32>
    %c5 = arith.constant 5 : index
    %c0_155 = arith.constant 0 : index
    %c0_156 = arith.constant 0 : index
    %366 = vector.load %arg1[%c5, %c0_155, %c0_156] : memref<8x2x96xf32, #tpu.memory_space<vmem>>, vector<1x2x96xf32>
    %367 = vector.shape_cast %366 : vector<1x2x96xf32> to vector<2x96xf32>
    %cst_157 = arith.constant dense<0.000000e+00> : vector<2x64xf32>
    %368 = tpu.matmul %365, %3, %cst_157 {dimension_numbers = #tpu.dot_dimension_numbers<[1], [0], [0], [1], [0, 0, 1, 1], [], []>} : vector<2x32xf32>, vector<32x64xf32>, vector<2x64xf32> -> vector<2x64xf32>
    %369 = vector.extract_strided_slice %367 {offsets = [0, 0], sizes = [2, 32], strides = [1, 1]} : vector<2x96xf32> to vector<2x32xf32>
    %370 = vector.extract_strided_slice %368 {offsets = [0, 0], sizes = [2, 32], strides = [1, 1]} : vector<2x64xf32> to vector<2x32xf32>
    %371 = arith.addf %369, %370 : vector<2x32xf32>
    %372 = arith.negf %371 : vector<2x32xf32>
    %373 = math.exp %372 : vector<2x32xf32>
    %cst_158 = arith.constant 1.000000e+00 : f32
    %374 = vector.broadcast %cst_158 : f32 to vector<2x32xf32>
    %375 = arith.addf %374, %373 : vector<2x32xf32>
    %376 = arith.divf %374, %375 : vector<2x32xf32>
    %377 = vector.extract_strided_slice %367 {offsets = [0, 32], sizes = [2, 32], strides = [1, 1]} : vector<2x96xf32> to vector<2x32xf32>
    %378 = vector.extract_strided_slice %368 {offsets = [0, 32], sizes = [2, 32], strides = [1, 1]} : vector<2x64xf32> to vector<2x32xf32>
    %379 = arith.addf %377, %378 : vector<2x32xf32>
    %380 = arith.negf %379 : vector<2x32xf32>
    %381 = math.exp %380 : vector<2x32xf32>
    %cst_159 = arith.constant 1.000000e+00 : f32
    %382 = vector.broadcast %cst_159 : f32 to vector<2x32xf32>
    %383 = arith.addf %382, %381 : vector<2x32xf32>
    %384 = arith.divf %382, %383 : vector<2x32xf32>
    %385 = vector.extract_strided_slice %367 {offsets = [0, 64], sizes = [2, 32], strides = [1, 1]} : vector<2x96xf32> to vector<2x32xf32>
    %386 = arith.mulf %384, %365 : vector<2x32xf32>
    %cst_160 = arith.constant dense<0.000000e+00> : vector<2x32xf32>
    %387 = tpu.matmul %386, %4, %cst_160 {dimension_numbers = #tpu.dot_dimension_numbers<[1], [0], [0], [1], [0, 0, 1, 1], [], []>} : vector<2x32xf32>, vector<32x32xf32>, vector<2x32xf32> -> vector<2x32xf32>
    %388 = arith.addf %385, %387 : vector<2x32xf32>
    %389 = math.tanh %388 : vector<2x32xf32>
    %390 = arith.mulf %376, %365 : vector<2x32xf32>
    %cst_161 = arith.constant 1.000000e+00 : f32
    %391 = vector.broadcast %cst_161 : f32 to vector<2x32xf32>
    %392 = arith.subf %391, %376 : vector<2x32xf32>
    %393 = arith.mulf %392, %389 : vector<2x32xf32>
    %394 = arith.addf %390, %393 : vector<2x32xf32>
    %c0_162 = arith.constant 0 : index
    %c0_163 = arith.constant 0 : index
    %c0_164 = arith.constant 0 : index
    %395 = vector.load %arg10[%c0_162, %c0_163, %c0_164] : memref<2x2x32xf32, #tpu.memory_space<vmem>>, vector<1x2x32xf32>
    %396 = vector.shape_cast %395 : vector<1x2x32xf32> to vector<2x32xf32>
    %397 = vector.shape_cast %394 : vector<2x32xf32> to vector<1x2x32xf32>
    tpu.vector_store %arg10[%c0_162, %c0_163, %c0_164], %397 {strides = array<i32>} : memref<2x2x32xf32, #tpu.memory_space<vmem>>, vector<1x2x32xf32>,
    %c1_165 = arith.constant 1 : index
    %c0_166 = arith.constant 0 : index
    %c0_167 = arith.constant 0 : index
    %398 = vector.load %arg10[%c1_165, %c0_166, %c0_167] : memref<2x2x32xf32, #tpu.memory_space<vmem>>, vector<1x2x32xf32>
    %399 = vector.shape_cast %398 : vector<1x2x32xf32> to vector<2x32xf32>
    %cst_168 = arith.constant dense<0.000000e+00> : vector<2x96xf32>
    %400 = tpu.matmul %394, %5, %cst_168 {dimension_numbers = #tpu.dot_dimension_numbers<[1], [0], [0], [1], [0, 0, 1, 1], [], []>} : vector<2x32xf32>, vector<32x96xf32>, vector<2x96xf32> -> vector<2x96xf32>
    %401 = vector.broadcast %6 : vector<1x96xf32> to vector<2x96xf32>
    %402 = arith.addf %400, %401 : vector<2x96xf32>
    %cst_169 = arith.constant dense<0.000000e+00> : vector<2x64xf32>
    %403 = tpu.matmul %399, %7, %cst_169 {dimension_numbers = #tpu.dot_dimension_numbers<[1], [0], [0], [1], [0, 0, 1, 1], [], []>} : vector<2x32xf32>, vector<32x64xf32>, vector<2x64xf32> -> vector<2x64xf32>
    %404 = vector.extract_strided_slice %402 {offsets = [0, 0], sizes = [2, 32], strides = [1, 1]} : vector<2x96xf32> to vector<2x32xf32>
    %405 = vector.extract_strided_slice %403 {offsets = [0, 0], sizes = [2, 32], strides = [1, 1]} : vector<2x64xf32> to vector<2x32xf32>
    %406 = arith.addf %404, %405 : vector<2x32xf32>
    %407 = arith.negf %406 : vector<2x32xf32>
    %408 = math.exp %407 : vector<2x32xf32>
    %cst_170 = arith.constant 1.000000e+00 : f32
    %409 = vector.broadcast %cst_170 : f32 to vector<2x32xf32>
    %410 = arith.addf %409, %408 : vector<2x32xf32>
    %411 = arith.divf %409, %410 : vector<2x32xf32>
    %412 = vector.extract_strided_slice %402 {offsets = [0, 32], sizes = [2, 32], strides = [1, 1]} : vector<2x96xf32> to vector<2x32xf32>
    %413 = vector.extract_strided_slice %403 {offsets = [0, 32], sizes = [2, 32], strides = [1, 1]} : vector<2x64xf32> to vector<2x32xf32>
    %414 = arith.addf %412, %413 : vector<2x32xf32>
    %415 = arith.negf %414 : vector<2x32xf32>
    %416 = math.exp %415 : vector<2x32xf32>
    %cst_171 = arith.constant 1.000000e+00 : f32
    %417 = vector.broadcast %cst_171 : f32 to vector<2x32xf32>
    %418 = arith.addf %417, %416 : vector<2x32xf32>
    %419 = arith.divf %417, %418 : vector<2x32xf32>
    %420 = vector.extract_strided_slice %402 {offsets = [0, 64], sizes = [2, 32], strides = [1, 1]} : vector<2x96xf32> to vector<2x32xf32>
    %421 = arith.mulf %419, %399 : vector<2x32xf32>
    %cst_172 = arith.constant dense<0.000000e+00> : vector<2x32xf32>
    %422 = tpu.matmul %421, %8, %cst_172 {dimension_numbers = #tpu.dot_dimension_numbers<[1], [0], [0], [1], [0, 0, 1, 1], [], []>} : vector<2x32xf32>, vector<32x32xf32>, vector<2x32xf32> -> vector<2x32xf32>
    %423 = arith.addf %420, %422 : vector<2x32xf32>
    %424 = math.tanh %423 : vector<2x32xf32>
    %425 = arith.mulf %411, %399 : vector<2x32xf32>
    %cst_173 = arith.constant 1.000000e+00 : f32
    %426 = vector.broadcast %cst_173 : f32 to vector<2x32xf32>
    %427 = arith.subf %426, %411 : vector<2x32xf32>
    %428 = arith.mulf %427, %424 : vector<2x32xf32>
    %429 = arith.addf %425, %428 : vector<2x32xf32>
    %c1_174 = arith.constant 1 : index
    %c0_175 = arith.constant 0 : index
    %c0_176 = arith.constant 0 : index
    %430 = vector.load %arg10[%c1_174, %c0_175, %c0_176] : memref<2x2x32xf32, #tpu.memory_space<vmem>>, vector<1x2x32xf32>
    %431 = vector.shape_cast %430 : vector<1x2x32xf32> to vector<2x32xf32>
    %432 = vector.shape_cast %429 : vector<2x32xf32> to vector<1x2x32xf32>
    tpu.vector_store %arg10[%c1_174, %c0_175, %c0_176], %432 {strides = array<i32>} : memref<2x2x32xf32, #tpu.memory_space<vmem>>, vector<1x2x32xf32>,
    %433 = vector.shape_cast %429 : vector<2x32xf32> to vector<2x1x32xf32>
    %c0_177 = arith.constant 0 : index
    %c5_178 = arith.constant 5 : index
    %c0_179 = arith.constant 0 : index
    %434 = vector.load %arg9[%c0_177, %c5_178, %c0_179] : memref<2x8x32xf32, #tpu.memory_space<vmem>>, vector<2x1x32xf32>
    tpu.vector_store %arg9[%c0_177, %c5_178, %c0_179], %433 {strides = array<i32>} : memref<2x8x32xf32, #tpu.memory_space<vmem>>, vector<2x1x32xf32>,
    %c0_180 = arith.constant 0 : index
    %c0_181 = arith.constant 0 : index
    %c0_182 = arith.constant 0 : index
    %435 = vector.load %arg10[%c0_180, %c0_181, %c0_182] : memref<2x2x32xf32, #tpu.memory_space<vmem>>, vector<1x2x32xf32>
    %436 = vector.shape_cast %435 : vector<1x2x32xf32> to vector<2x32xf32>
    %c6 = arith.constant 6 : index
    %c0_183 = arith.constant 0 : index
    %c0_184 = arith.constant 0 : index
    %437 = vector.load %arg1[%c6, %c0_183, %c0_184] : memref<8x2x96xf32, #tpu.memory_space<vmem>>, vector<1x2x96xf32>
    %438 = vector.shape_cast %437 : vector<1x2x96xf32> to vector<2x96xf32>
    %cst_185 = arith.constant dense<0.000000e+00> : vector<2x64xf32>
    %439 = tpu.matmul %436, %3, %cst_185 {dimension_numbers = #tpu.dot_dimension_numbers<[1], [0], [0], [1], [0, 0, 1, 1], [], []>} : vector<2x32xf32>, vector<32x64xf32>, vector<2x64xf32> -> vector<2x64xf32>
    %440 = vector.extract_strided_slice %438 {offsets = [0, 0], sizes = [2, 32], strides = [1, 1]} : vector<2x96xf32> to vector<2x32xf32>
    %441 = vector.extract_strided_slice %439 {offsets = [0, 0], sizes = [2, 32], strides = [1, 1]} : vector<2x64xf32> to vector<2x32xf32>
    %442 = arith.addf %440, %441 : vector<2x32xf32>
    %443 = arith.negf %442 : vector<2x32xf32>
    %444 = math.exp %443 : vector<2x32xf32>
    %cst_186 = arith.constant 1.000000e+00 : f32
    %445 = vector.broadcast %cst_186 : f32 to vector<2x32xf32>
    %446 = arith.addf %445, %444 : vector<2x32xf32>
    %447 = arith.divf %445, %446 : vector<2x32xf32>
    %448 = vector.extract_strided_slice %438 {offsets = [0, 32], sizes = [2, 32], strides = [1, 1]} : vector<2x96xf32> to vector<2x32xf32>
    %449 = vector.extract_strided_slice %439 {offsets = [0, 32], sizes = [2, 32], strides = [1, 1]} : vector<2x64xf32> to vector<2x32xf32>
    %450 = arith.addf %448, %449 : vector<2x32xf32>
    %451 = arith.negf %450 : vector<2x32xf32>
    %452 = math.exp %451 : vector<2x32xf32>
    %cst_187 = arith.constant 1.000000e+00 : f32
    %453 = vector.broadcast %cst_187 : f32 to vector<2x32xf32>
    %454 = arith.addf %453, %452 : vector<2x32xf32>
    %455 = arith.divf %453, %454 : vector<2x32xf32>
    %456 = vector.extract_strided_slice %438 {offsets = [0, 64], sizes = [2, 32], strides = [1, 1]} : vector<2x96xf32> to vector<2x32xf32>
    %457 = arith.mulf %455, %436 : vector<2x32xf32>
    %cst_188 = arith.constant dense<0.000000e+00> : vector<2x32xf32>
    %458 = tpu.matmul %457, %4, %cst_188 {dimension_numbers = #tpu.dot_dimension_numbers<[1], [0], [0], [1], [0, 0, 1, 1], [], []>} : vector<2x32xf32>, vector<32x32xf32>, vector<2x32xf32> -> vector<2x32xf32>
    %459 = arith.addf %456, %458 : vector<2x32xf32>
    %460 = math.tanh %459 : vector<2x32xf32>
    %461 = arith.mulf %447, %436 : vector<2x32xf32>
    %cst_189 = arith.constant 1.000000e+00 : f32
    %462 = vector.broadcast %cst_189 : f32 to vector<2x32xf32>
    %463 = arith.subf %462, %447 : vector<2x32xf32>
    %464 = arith.mulf %463, %460 : vector<2x32xf32>
    %465 = arith.addf %461, %464 : vector<2x32xf32>
    %c0_190 = arith.constant 0 : index
    %c0_191 = arith.constant 0 : index
    %c0_192 = arith.constant 0 : index
    %466 = vector.load %arg10[%c0_190, %c0_191, %c0_192] : memref<2x2x32xf32, #tpu.memory_space<vmem>>, vector<1x2x32xf32>
    %467 = vector.shape_cast %466 : vector<1x2x32xf32> to vector<2x32xf32>
    %468 = vector.shape_cast %465 : vector<2x32xf32> to vector<1x2x32xf32>
    tpu.vector_store %arg10[%c0_190, %c0_191, %c0_192], %468 {strides = array<i32>} : memref<2x2x32xf32, #tpu.memory_space<vmem>>, vector<1x2x32xf32>,
    %c1_193 = arith.constant 1 : index
    %c0_194 = arith.constant 0 : index
    %c0_195 = arith.constant 0 : index
    %469 = vector.load %arg10[%c1_193, %c0_194, %c0_195] : memref<2x2x32xf32, #tpu.memory_space<vmem>>, vector<1x2x32xf32>
    %470 = vector.shape_cast %469 : vector<1x2x32xf32> to vector<2x32xf32>
    %cst_196 = arith.constant dense<0.000000e+00> : vector<2x96xf32>
    %471 = tpu.matmul %465, %5, %cst_196 {dimension_numbers = #tpu.dot_dimension_numbers<[1], [0], [0], [1], [0, 0, 1, 1], [], []>} : vector<2x32xf32>, vector<32x96xf32>, vector<2x96xf32> -> vector<2x96xf32>
    %472 = vector.broadcast %6 : vector<1x96xf32> to vector<2x96xf32>
    %473 = arith.addf %471, %472 : vector<2x96xf32>
    %cst_197 = arith.constant dense<0.000000e+00> : vector<2x64xf32>
    %474 = tpu.matmul %470, %7, %cst_197 {dimension_numbers = #tpu.dot_dimension_numbers<[1], [0], [0], [1], [0, 0, 1, 1], [], []>} : vector<2x32xf32>, vector<32x64xf32>, vector<2x64xf32> -> vector<2x64xf32>
    %475 = vector.extract_strided_slice %473 {offsets = [0, 0], sizes = [2, 32], strides = [1, 1]} : vector<2x96xf32> to vector<2x32xf32>
    %476 = vector.extract_strided_slice %474 {offsets = [0, 0], sizes = [2, 32], strides = [1, 1]} : vector<2x64xf32> to vector<2x32xf32>
    %477 = arith.addf %475, %476 : vector<2x32xf32>
    %478 = arith.negf %477 : vector<2x32xf32>
    %479 = math.exp %478 : vector<2x32xf32>
    %cst_198 = arith.constant 1.000000e+00 : f32
    %480 = vector.broadcast %cst_198 : f32 to vector<2x32xf32>
    %481 = arith.addf %480, %479 : vector<2x32xf32>
    %482 = arith.divf %480, %481 : vector<2x32xf32>
    %483 = vector.extract_strided_slice %473 {offsets = [0, 32], sizes = [2, 32], strides = [1, 1]} : vector<2x96xf32> to vector<2x32xf32>
    %484 = vector.extract_strided_slice %474 {offsets = [0, 32], sizes = [2, 32], strides = [1, 1]} : vector<2x64xf32> to vector<2x32xf32>
    %485 = arith.addf %483, %484 : vector<2x32xf32>
    %486 = arith.negf %485 : vector<2x32xf32>
    %487 = math.exp %486 : vector<2x32xf32>
    %cst_199 = arith.constant 1.000000e+00 : f32
    %488 = vector.broadcast %cst_199 : f32 to vector<2x32xf32>
    %489 = arith.addf %488, %487 : vector<2x32xf32>
    %490 = arith.divf %488, %489 : vector<2x32xf32>
    %491 = vector.extract_strided_slice %473 {offsets = [0, 64], sizes = [2, 32], strides = [1, 1]} : vector<2x96xf32> to vector<2x32xf32>
    %492 = arith.mulf %490, %470 : vector<2x32xf32>
    %cst_200 = arith.constant dense<0.000000e+00> : vector<2x32xf32>
    %493 = tpu.matmul %492, %8, %cst_200 {dimension_numbers = #tpu.dot_dimension_numbers<[1], [0], [0], [1], [0, 0, 1, 1], [], []>} : vector<2x32xf32>, vector<32x32xf32>, vector<2x32xf32> -> vector<2x32xf32>
    %494 = arith.addf %491, %493 : vector<2x32xf32>
    %495 = math.tanh %494 : vector<2x32xf32>
    %496 = arith.mulf %482, %470 : vector<2x32xf32>
    %cst_201 = arith.constant 1.000000e+00 : f32
    %497 = vector.broadcast %cst_201 : f32 to vector<2x32xf32>
    %498 = arith.subf %497, %482 : vector<2x32xf32>
    %499 = arith.mulf %498, %495 : vector<2x32xf32>
    %500 = arith.addf %496, %499 : vector<2x32xf32>
    %c1_202 = arith.constant 1 : index
    %c0_203 = arith.constant 0 : index
    %c0_204 = arith.constant 0 : index
    %501 = vector.load %arg10[%c1_202, %c0_203, %c0_204] : memref<2x2x32xf32, #tpu.memory_space<vmem>>, vector<1x2x32xf32>
    %502 = vector.shape_cast %501 : vector<1x2x32xf32> to vector<2x32xf32>
    %503 = vector.shape_cast %500 : vector<2x32xf32> to vector<1x2x32xf32>
    tpu.vector_store %arg10[%c1_202, %c0_203, %c0_204], %503 {strides = array<i32>} : memref<2x2x32xf32, #tpu.memory_space<vmem>>, vector<1x2x32xf32>,
    %504 = vector.shape_cast %500 : vector<2x32xf32> to vector<2x1x32xf32>
    %c0_205 = arith.constant 0 : index
    %c6_206 = arith.constant 6 : index
    %c0_207 = arith.constant 0 : index
    %505 = vector.load %arg9[%c0_205, %c6_206, %c0_207] : memref<2x8x32xf32, #tpu.memory_space<vmem>>, vector<2x1x32xf32>
    tpu.vector_store %arg9[%c0_205, %c6_206, %c0_207], %504 {strides = array<i32>} : memref<2x8x32xf32, #tpu.memory_space<vmem>>, vector<2x1x32xf32>,
    %c0_208 = arith.constant 0 : index
    %c0_209 = arith.constant 0 : index
    %c0_210 = arith.constant 0 : index
    %506 = vector.load %arg10[%c0_208, %c0_209, %c0_210] : memref<2x2x32xf32, #tpu.memory_space<vmem>>, vector<1x2x32xf32>
    %507 = vector.shape_cast %506 : vector<1x2x32xf32> to vector<2x32xf32>
    %c7 = arith.constant 7 : index
    %c0_211 = arith.constant 0 : index
    %c0_212 = arith.constant 0 : index
    %508 = vector.load %arg1[%c7, %c0_211, %c0_212] : memref<8x2x96xf32, #tpu.memory_space<vmem>>, vector<1x2x96xf32>
    %509 = vector.shape_cast %508 : vector<1x2x96xf32> to vector<2x96xf32>
    %cst_213 = arith.constant dense<0.000000e+00> : vector<2x64xf32>
    %510 = tpu.matmul %507, %3, %cst_213 {dimension_numbers = #tpu.dot_dimension_numbers<[1], [0], [0], [1], [0, 0, 1, 1], [], []>} : vector<2x32xf32>, vector<32x64xf32>, vector<2x64xf32> -> vector<2x64xf32>
    %511 = vector.extract_strided_slice %509 {offsets = [0, 0], sizes = [2, 32], strides = [1, 1]} : vector<2x96xf32> to vector<2x32xf32>
    %512 = vector.extract_strided_slice %510 {offsets = [0, 0], sizes = [2, 32], strides = [1, 1]} : vector<2x64xf32> to vector<2x32xf32>
    %513 = arith.addf %511, %512 : vector<2x32xf32>
    %514 = arith.negf %513 : vector<2x32xf32>
    %515 = math.exp %514 : vector<2x32xf32>
    %cst_214 = arith.constant 1.000000e+00 : f32
    %516 = vector.broadcast %cst_214 : f32 to vector<2x32xf32>
    %517 = arith.addf %516, %515 : vector<2x32xf32>
    %518 = arith.divf %516, %517 : vector<2x32xf32>
    %519 = vector.extract_strided_slice %509 {offsets = [0, 32], sizes = [2, 32], strides = [1, 1]} : vector<2x96xf32> to vector<2x32xf32>
    %520 = vector.extract_strided_slice %510 {offsets = [0, 32], sizes = [2, 32], strides = [1, 1]} : vector<2x64xf32> to vector<2x32xf32>
    %521 = arith.addf %519, %520 : vector<2x32xf32>
    %522 = arith.negf %521 : vector<2x32xf32>
    %523 = math.exp %522 : vector<2x32xf32>
    %cst_215 = arith.constant 1.000000e+00 : f32
    %524 = vector.broadcast %cst_215 : f32 to vector<2x32xf32>
    %525 = arith.addf %524, %523 : vector<2x32xf32>
    %526 = arith.divf %524, %525 : vector<2x32xf32>
    %527 = vector.extract_strided_slice %509 {offsets = [0, 64], sizes = [2, 32], strides = [1, 1]} : vector<2x96xf32> to vector<2x32xf32>
    %528 = arith.mulf %526, %507 : vector<2x32xf32>
    %cst_216 = arith.constant dense<0.000000e+00> : vector<2x32xf32>
    %529 = tpu.matmul %528, %4, %cst_216 {dimension_numbers = #tpu.dot_dimension_numbers<[1], [0], [0], [1], [0, 0, 1, 1], [], []>} : vector<2x32xf32>, vector<32x32xf32>, vector<2x32xf32> -> vector<2x32xf32>
    %530 = arith.addf %527, %529 : vector<2x32xf32>
    %531 = math.tanh %530 : vector<2x32xf32>
    %532 = arith.mulf %518, %507 : vector<2x32xf32>
    %cst_217 = arith.constant 1.000000e+00 : f32
    %533 = vector.broadcast %cst_217 : f32 to vector<2x32xf32>
    %534 = arith.subf %533, %518 : vector<2x32xf32>
    %535 = arith.mulf %534, %531 : vector<2x32xf32>
    %536 = arith.addf %532, %535 : vector<2x32xf32>
    %c0_218 = arith.constant 0 : index
    %c0_219 = arith.constant 0 : index
    %c0_220 = arith.constant 0 : index
    %537 = vector.load %arg10[%c0_218, %c0_219, %c0_220] : memref<2x2x32xf32, #tpu.memory_space<vmem>>, vector<1x2x32xf32>
    %538 = vector.shape_cast %537 : vector<1x2x32xf32> to vector<2x32xf32>
    %539 = vector.shape_cast %536 : vector<2x32xf32> to vector<1x2x32xf32>
    tpu.vector_store %arg10[%c0_218, %c0_219, %c0_220], %539 {strides = array<i32>} : memref<2x2x32xf32, #tpu.memory_space<vmem>>, vector<1x2x32xf32>,
    %c1_221 = arith.constant 1 : index
    %c0_222 = arith.constant 0 : index
    %c0_223 = arith.constant 0 : index
    %540 = vector.load %arg10[%c1_221, %c0_222, %c0_223] : memref<2x2x32xf32, #tpu.memory_space<vmem>>, vector<1x2x32xf32>
    %541 = vector.shape_cast %540 : vector<1x2x32xf32> to vector<2x32xf32>
    %cst_224 = arith.constant dense<0.000000e+00> : vector<2x96xf32>
    %542 = tpu.matmul %536, %5, %cst_224 {dimension_numbers = #tpu.dot_dimension_numbers<[1], [0], [0], [1], [0, 0, 1, 1], [], []>} : vector<2x32xf32>, vector<32x96xf32>, vector<2x96xf32> -> vector<2x96xf32>
    %543 = vector.broadcast %6 : vector<1x96xf32> to vector<2x96xf32>
    %544 = arith.addf %542, %543 : vector<2x96xf32>
    %cst_225 = arith.constant dense<0.000000e+00> : vector<2x64xf32>
    %545 = tpu.matmul %541, %7, %cst_225 {dimension_numbers = #tpu.dot_dimension_numbers<[1], [0], [0], [1], [0, 0, 1, 1], [], []>} : vector<2x32xf32>, vector<32x64xf32>, vector<2x64xf32> -> vector<2x64xf32>
    %546 = vector.extract_strided_slice %544 {offsets = [0, 0], sizes = [2, 32], strides = [1, 1]} : vector<2x96xf32> to vector<2x32xf32>
    %547 = vector.extract_strided_slice %545 {offsets = [0, 0], sizes = [2, 32], strides = [1, 1]} : vector<2x64xf32> to vector<2x32xf32>
    %548 = arith.addf %546, %547 : vector<2x32xf32>
    %549 = arith.negf %548 : vector<2x32xf32>
    %550 = math.exp %549 : vector<2x32xf32>
    %cst_226 = arith.constant 1.000000e+00 : f32
    %551 = vector.broadcast %cst_226 : f32 to vector<2x32xf32>
    %552 = arith.addf %551, %550 : vector<2x32xf32>
    %553 = arith.divf %551, %552 : vector<2x32xf32>
    %554 = vector.extract_strided_slice %544 {offsets = [0, 32], sizes = [2, 32], strides = [1, 1]} : vector<2x96xf32> to vector<2x32xf32>
    %555 = vector.extract_strided_slice %545 {offsets = [0, 32], sizes = [2, 32], strides = [1, 1]} : vector<2x64xf32> to vector<2x32xf32>
    %556 = arith.addf %554, %555 : vector<2x32xf32>
    %557 = arith.negf %556 : vector<2x32xf32>
    %558 = math.exp %557 : vector<2x32xf32>
    %cst_227 = arith.constant 1.000000e+00 : f32
    %559 = vector.broadcast %cst_227 : f32 to vector<2x32xf32>
    %560 = arith.addf %559, %558 : vector<2x32xf32>
    %561 = arith.divf %559, %560 : vector<2x32xf32>
    %562 = vector.extract_strided_slice %544 {offsets = [0, 64], sizes = [2, 32], strides = [1, 1]} : vector<2x96xf32> to vector<2x32xf32>
    %563 = arith.mulf %561, %541 : vector<2x32xf32>
    %cst_228 = arith.constant dense<0.000000e+00> : vector<2x32xf32>
    %564 = tpu.matmul %563, %8, %cst_228 {dimension_numbers = #tpu.dot_dimension_numbers<[1], [0], [0], [1], [0, 0, 1, 1], [], []>} : vector<2x32xf32>, vector<32x32xf32>, vector<2x32xf32> -> vector<2x32xf32>
    %565 = arith.addf %562, %564 : vector<2x32xf32>
    %566 = math.tanh %565 : vector<2x32xf32>
    %567 = arith.mulf %553, %541 : vector<2x32xf32>
    %cst_229 = arith.constant 1.000000e+00 : f32
    %568 = vector.broadcast %cst_229 : f32 to vector<2x32xf32>
    %569 = arith.subf %568, %553 : vector<2x32xf32>
    %570 = arith.mulf %569, %566 : vector<2x32xf32>
    %571 = arith.addf %567, %570 : vector<2x32xf32>
    %c1_230 = arith.constant 1 : index
    %c0_231 = arith.constant 0 : index
    %c0_232 = arith.constant 0 : index
    %572 = vector.load %arg10[%c1_230, %c0_231, %c0_232] : memref<2x2x32xf32, #tpu.memory_space<vmem>>, vector<1x2x32xf32>
    %573 = vector.shape_cast %572 : vector<1x2x32xf32> to vector<2x32xf32>
    %574 = vector.shape_cast %571 : vector<2x32xf32> to vector<1x2x32xf32>
    tpu.vector_store %arg10[%c1_230, %c0_231, %c0_232], %574 {strides = array<i32>} : memref<2x2x32xf32, #tpu.memory_space<vmem>>, vector<1x2x32xf32>,
    %575 = vector.shape_cast %571 : vector<2x32xf32> to vector<2x1x32xf32>
    %c0_233 = arith.constant 0 : index
    %c7_234 = arith.constant 7 : index
    %c0_235 = arith.constant 0 : index
    %576 = vector.load %arg9[%c0_233, %c7_234, %c0_235] : memref<2x8x32xf32, #tpu.memory_space<vmem>>, vector<2x1x32xf32>
    tpu.vector_store %arg9[%c0_233, %c7_234, %c0_235], %575 {strides = array<i32>} : memref<2x8x32xf32, #tpu.memory_space<vmem>>, vector<2x1x32xf32>,
    return
  }
  func.func @transform_0(%arg0: i32) -> (i32, i32, i32) {
    %c0_i32 = arith.constant 0 : i32
    %c0_i32_0 = arith.constant 0 : i32
    %c0_i32_1 = arith.constant 0 : i32
    return %arg0, %c0_i32, %c0_i32_0 : i32, i32, i32
  }
  func.func @transform_1(%arg0: i32) -> (i32, i32) {
    %c0_i32 = arith.constant 0 : i32
    %c0_i32_0 = arith.constant 0 : i32
    %c0_i32_1 = arith.constant 0 : i32
    return %c0_i32, %c0_i32_0 : i32, i32
  }
  func.func @transform_2(%arg0: i32) -> (i32, i32) {
    %c0_i32 = arith.constant 0 : i32
    %c0_i32_0 = arith.constant 0 : i32
    %c0_i32_1 = arith.constant 0 : i32
    return %c0_i32, %c0_i32_0 : i32, i32
  }
  func.func @transform_3(%arg0: i32) -> (i32, i32) {
    %c0_i32 = arith.constant 0 : i32
    %c0_i32_0 = arith.constant 0 : i32
    %c0_i32_1 = arith.constant 0 : i32
    return %c0_i32, %c0_i32_0 : i32, i32
  }
  func.func @transform_4(%arg0: i32) -> (i32, i32) {
    %c0_i32 = arith.constant 0 : i32
    %c0_i32_0 = arith.constant 0 : i32
    %c0_i32_1 = arith.constant 0 : i32
    return %c0_i32, %c0_i32_0 : i32, i32
  }
  func.func @transform_5(%arg0: i32) -> (i32, i32) {
    %c0_i32 = arith.constant 0 : i32
    %c0_i32_0 = arith.constant 0 : i32
    %c0_i32_1 = arith.constant 0 : i32
    return %c0_i32, %c0_i32_0 : i32, i32
  }
  func.func @transform_6(%arg0: i32) -> (i32, i32) {
    %c0_i32 = arith.constant 0 : i32
    %c0_i32_0 = arith.constant 0 : i32
    %c0_i32_1 = arith.constant 0 : i32
    return %c0_i32, %c0_i32_0 : i32, i32
  }
  func.func @transform_7(%arg0: i32) -> (i32, i32) {
    %c0_i32 = arith.constant 0 : i32
    %c0_i32_0 = arith.constant 0 : i32
    %c0_i32_1 = arith.constant 0 : i32
    return %c0_i32, %c0_i32_0 : i32, i32
  }
  func.func @transform_8(%arg0: i32) -> (i32, i32, i32) {
    %c0_i32 = arith.constant 0 : i32
    %c0_i32_0 = arith.constant 0 : i32
    %c0_i32_1 = arith.constant 0 : i32
    return %c0_i32, %arg0, %c0_i32_0 : i32, i32, i32
  }
  func.func @transform_9(%arg0: i32) -> (i32, i32, i32) {
    %c0_i32 = arith.constant 0 : i32
    %c0_i32_0 = arith.constant 0 : i32
    %c0_i32_1 = arith.constant 0 : i32
    %c0_i32_2 = arith.constant 0 : i32
    return %c0_i32, %c0_i32_0, %c0_i32_1 : i32, i32, i32
  }
}

</mosaic_0001>

<bundles_post_ra>
// kernel: image_caption_forward.5
= control target key start
LH: loop header
LB: loop body
LE: loop exit
PB: predicated region body
PF: predicated region fallthrough
CT: control target
= control target key end

     0   :  { %vm27_vm0 = vcmask 261120   ;;  %vm109_vm1 = vcmask 785408   ;;  %s191_s1 = inlined_call_operand.vmem [shape: f32[32,96], index: 1, kind: input, shape index: {}]   ;;  %s192_s0 = inlined_call_operand.vmem [shape: f32[16,32], index: 0, kind: input, shape index: {}]   ;;  %s193_s2 = inlined_call_operand.vmem [shape: f32[1,96], index: 2, kind: input, shape index: {}]   ;;  %s194_s3 = inlined_call_operand.vmem [shape: f32[16,96], index: 3, kind: output, shape index: {}]  }
   0x1   :  { %v16_v0 = vld [vmem:[%s191_s1] sm:$0xff]  ;;  %v17_v1 = vld [vmem:[%s191_s1 + $0x8] sm:$0xff]  ;;  %v18_v2 = vld [vmem:[%s191_s1 + $0x10] sm:$0xff] }
   0x2   :  { %v136_v3 = vpack.c.bf16 %v17_v1, %v16_v0  ;;  %v19_v4 = vld [vmem:[%s191_s1 + $0x18] sm:$0xff]  ;;  %v14_v5 = vld [vmem:[%s192_s0] sm:$0xff]  ;;  %v15_v7 = vld [vmem:[%s192_s0 + $0x8] sm:$0xff] }
   0x3   :  { %v140_v6 = vpack.c.bf16 %v19_v4, %v18_v2  ;;  %133 = vmatprep.mubr.msk.f32.mxu0 %vm27_vm0, %v14_v5  ;;  %v116_v8 = vld [vmem:[%s193_s2] ss:$0 sm:$0xff] }
   0x4   :  { %137 = vmatprep.subr.bf16.mxu0 %v136_v3 }
   0x5   :  { %139 = vmatpush3.bf16.msra.mxu0 %v136_v3 }
   0x6   :  { %141 = vmatprep.subr.bf16.mxu0 %v140_v6 }
   0x9   :  { %143 = vmatpush3.bf16.msra.mxu0 %v140_v6 }
   0xc   :  { %134 = vmatmul.mubr.msk.f32.vlgmr.msra.gmra.mrb[0].mxu0 %vm27_vm0, %v15_v7 }
  0xdf   :  { %v135_v9 = vpop.f32.mrb[0].mxu0 }
  0xe0   :  { %v106_v10 = vadd.f32 %v135_v9, %v116_v8  ;;  %v100_v11 = vpop.f32.mrb[1].mxu0 }
  0xe1   :  { %v101_v12 = vadd.f32 %v116_v8, %v100_v11 }
  0xe2   :  { %111 = vst.msk [vmem:[%s194_s3 + $0x8] sm:$0xff] %vm109_vm1, %v106_v10 }
  0xe3   :  { %110 = vst.msk [vmem:[%s194_s3] sm:$0xff] %vm109_vm1, %v101_v12 }

// kernel: image_caption_forward.4
= control target key start
LH: loop header
LB: loop body
LE: loop exit
PB: predicated region body
PF: predicated region fallthrough
CT: control target
= control target key end

     0   :  { %v158_v0 = vmov 0.0|0.0   ;;  %vm159_vm0 = vmmov 0   ;;  %v160_v4 = vmov 0.0   ;;  %vm30_vm1 = vcmask 523264   ;;  %s214_s1 = inlined_call_operand.vmem [shape: f32[64,32], index: 1, kind: input, shape index: {}]   ;;  %s215_s0 = inlined_call_operand.vmem [shape: f32[2,64], index: 0, kind: input, shape index: {}]   ;;  %s216_s2 = inlined_call_operand.vmem [shape: f32[1,32], index: 2, kind: input, shape index: {}]   ;;  %s217_s3 = inlined_call_operand.vmem [shape: f32[2,32], index: 3, kind: output, shape index: {}]  }
   0x1   :  { %141 = vmatprep.subr.bf16.mxu0 %v158_v0  ;;  %v15_v1 = vld [vmem:[%s214_s1] sm:$0xff]  ;;  %v16_v2 = vld [vmem:[%s214_s1 + $0x8] sm:$0xff]  ;;  %v17_v3 = vld [vmem:[%s214_s1 + $0x10] sm:$0xff]  ;;  %138 = vmatprep.mubr.msk.f32.mxu0 %vm159_vm0, %v160_v4  ;;  %vm105_vm2 = vcmask 254976  }
   0x2   :  { %v142_v5 = vpack.c.bf16 %v16_v2, %v15_v1  ;;  %v18_v6 = vld [vmem:[%s214_s1 + $0x18] sm:$0xff]  ;;  %v19_v8 = vld [vmem:[%s214_s1 + $0x20] sm:$0xff]  ;;  %v20_v9 = vld [vmem:[%s214_s1 + $0x28] sm:$0xff] }
   0x3   :  { %v145_v7 = vpack.c.bf16 %v18_v6, %v17_v3  ;;  %v148_v10 = vpack.c.bf16 %v20_v9, %v19_v8  ;;  %v21_v11 = vld [vmem:[%s214_s1 + $0x30] sm:$0xff]  ;;  %v22_v12 = vld [vmem:[%s214_s1 + $0x38] sm:$0xff]  ;;  %v14_v14 = vld [vmem:[%s215_s0] sm:$0x3] }
   0x4   :  { %143 = vmatpush3.bf16.msra.mxu0 %v142_v5  ;;  %v151_v13 = vpack.c.bf16 %v22_v12, %v21_v11  ;;  %v111_v15 = vld [vmem:[%s216_s2] ss:$0 sm:$0xff] }
   0x5   :  { %144 = vmatprep.subr.bf16.mxu0 %v158_v0 }
   0x8   :  { %146 = vmatpush3.bf16.msra.mxu0 %v145_v7 }
   0x9   :  { %147 = vmatprep.subr.bf16.mxu0 %v158_v0 }
   0xc   :  { %149 = vmatpush3.bf16.msra.mxu0 %v148_v10 }
   0xd   :  { %150 = vmatprep.subr.bf16.mxu0 %v158_v0 }
  0x10   :  { %152 = vmatpush3.bf16.msra.mxu0 %v151_v13 }
  0x13   :  { %139 = vmatmul.mubr.msk.f32.vlgmr.msra.gmra.mrb[0].mxu0 %vm30_vm1, %v14_v14 }
  0xe6   :  { %v100_v16 = vpop.f32.mrb[0].mxu0 }
  0xe7   :  { %v101_v17 = vadd.f32 %v111_v15, %v100_v16  ;;  %v140_v18 = vpop.f32.mrb[1].mxu0 }
  0xe9   :  { %156 = vtanh.f32 %v101_v17 }
  0xf3   :  { %v157_v19 = vpop.eup %156 }
  0xf4   :  { %106 = vst.msk [vmem:[%s217_s3] sm:$0x3] %vm105_vm2, %v157_v19 }

// kernel: image_caption_forward.7
= control target key start
LH: loop header
LB: loop body
LE: loop exit
PB: predicated region body
PF: predicated region fallthrough
CT: control target
= control target key end

     0   :  { %v274_v3 = vmov 0.0|0.0   ;;  %vm275_vm0 = vmmov 0   ;;  %v276_v6 = vmov 0.0   ;;  %s333_s0 = inlined_call_operand.vmem [shape: f32[2,8,32], index: 0, kind: input, shape index: {}]   ;;  %s334_s1 = inlined_call_operand.vmem [shape: f32[32,64], index: 1, kind: input, shape index: {}]   ;;  %s335_s2 = inlined_call_operand.vmem [shape: f32[1,64], index: 2, kind: input, shape index: {}]   ;;  %s336_s3 = inlined_call_operand.hbm [shape: f32[2,8,64], index: 3, kind: output, shape index: {}]  }
   0x1   :  { %v15_v0 = vld [vmem:[%s334_s1] sm:$0xff]  ;;  %v16_v1 = vld [vmem:[%s334_s1 + $0x8] sm:$0xff]  ;;  %v17_v2 = vld [vmem:[%s334_s1 + $0x10] sm:$0xff]  ;;  %232 = vmatprep.subr.bf16.mxu0 %v274_v3  ;;  %238 = vmatprep.subr.bf16.mxu1 %v274_v3 }
   0x2   :  { %v233_v4 = vpack.c.bf16 %v16_v1, %v15_v0  ;;  %v18_v5 = vld [vmem:[%s334_s1 + $0x18] sm:$0xff]  ;;  %218 = vmatprep.mubr.msk.f32.mxu0 %vm275_vm0, %v276_v6  ;;  %229 = vmatprep.mubr.msk.f32.mxu1 %vm275_vm0, %v276_v6 }
   0x3   :  { %8 = vsyncpa [#allocation3], 0  ;;  %v236_v7 = vpack.c.bf16 %v18_v5, %v17_v2  ;;  %v20_v8 = vld [vmem:[%s333_s0] sm:$0xff]  ;;  %vm27_vm1 = vcmask 261120   ;;  %v198_v9 = vld [vmem:[%s333_s0 + $0x8] sm:$0xff]  ;;  %s277_s1 = smov [#allocation2]  }
   0x4   :  { %234 = vmatpush3.bf16.msra.mxu0 %v233_v4  ;;  %240 = vmatpush3.bf16.msra.mxu1 %v233_v4  ;;  %s185_s24 = sshll.u32 %s277_s1, 4  ;;  %v196_v10 = vld [vmem:[%s335_s2] ss:$0 sm:$0xff]  ;;  %vm101_vm2 = vcmask 523264   ;;  %s186_s24 = int_to_ptr.vmem [resolvable:$true] %s185_s24 }
   0x5   :  { %235 = vmatprep.subr.bf16.mxu0 %v274_v3  ;;  %241 = vmatprep.subr.bf16.mxu1 %v274_v3  ;;  %s250_s27 = scalar_lea.vmem %s186_s24, 256  ;;  %p255_p1 = scmp.lt.s32.totalorder %s186_s24, %s186_s24 }
   0x6   :  { %p251_p0 = scmp.ne.s32.totalorder %s186_s24, %s250_s27  ;;  %p256_p2 = scmp.lt.s32.totalorder %s250_s27, %s250_s27 }
   0x8   :  { %237 = vmatpush3.bf16.msra.mxu0 %v236_v7  ;;  %243 = vmatpush3.bf16.msra.mxu1 %v236_v7  ;;  %p257_p3 = por %p256_p2, %p255_p1 }
   0xa   :  { %p258_p4 = pnand %p257_p3, %p251_p0 }
   0xb   :  { %219 = vmatmul.mubr.msk.f32.vlgmr.msra.gmra.mrb[0].mxu0 %vm27_vm1, %v20_v8  ;;  %230 = vmatmul.mubr.msk.f32.vlgmr.msra.gmra.mrb[0].mxu1 %vm27_vm1, %v198_v9 }
  0xde   :  { %v97_v11 = vpop.f32.mrb[0].mxu0  ;;  %v174_v12 = vpop.f32.mrb[0].mxu1 }
  0xdf   :  { %v98_v13 = vadd.f32 %v196_v10, %v97_v11  ;;  %v175_v14 = vadd.f32 %v196_v10, %v174_v12  ;;  %v220_v15 = vpop.f32.mrb[1].mxu0  ;;  %v231_v16 = vpop.f32.mrb[1].mxu1 }
  0xe1   :  { %102 = vst.msk [vmem:[#allocation2] sm:$0xff] %vm101_vm2, %v98_v13  ;;  %179 = vst.msk [vmem:[#allocation2 + $0x8] sm:$0xff] %vm101_vm2, %v175_v14 }
  0xe2   :  { %261 = shalt.err (!%p258_p4)
}
  0xe3   :  { %s262_s2 = scalar_lea.hbm %s336_s3, 256 }
  0xe4   :  { %p263_p5 = scmp.ne.s32.totalorder %s336_s3, %s262_s2  ;;  %p266_p6 = scmp.lt.u32.totalorder %s262_s2, %s336_s3 }
  0xe6   :  { %p268_p7 = pnand %p266_p6, %p263_p5 }
  0xe8   :  { %271 = shalt.err (!%p268_p7)
}
  0xe9   :  { %s278_s6 = smov 128   ;;  %s279_s7 = smov 8  }
  0xea   :  { %191 = dma.vmem_to_hbm [thread:$0]  %s186_s24, 256, %s336_s3, [#allocation3], %s278_s6, %s278_s6, %s279_s7  }
  0xeb   :  { %272 = dma.done.wait [#allocation3], 256  }
  0xec   :  { %273 = vsyncadd [#allocation3], 4294967040 }
  0xed   :  { %195 = vsyncpa [#allocation3], 1 }

// kernel: image_caption_forward.6
= control target key start
LH: loop header
LB: loop body
LE: loop exit
PB: predicated region body
PF: predicated region fallthrough
CT: control target
= control target key end

     0   :  { %v4781_v3 = vmov 0.0|0.0   ;;  %vm4782_vm0 = vmmov 0   ;;  %v4783_v6 = vmov 0.0   ;;  %vm37_vm1 = vcmask 254976   ;;  %s5506_s0 = inlined_call_operand.vmem [shape: f32[8,2,96], index: 0, kind: input, shape index: {}]   ;;  %s5507_s1 = inlined_call_operand.vmem [shape: f32[2,32], index: 1, kind: input, shape index: {}]   ;;  %s5508_s2 = inlined_call_operand.vmem [shape: f32[32,64], index: 2, kind: input, shape index: {}]   ;;  %s5509_s3 = inlined_call_operand.vmem [shape: f32[32,32], index: 3, kind: input, shape index: {}]   ;;  %s5510_s4 = inlined_call_operand.vmem [shape: f32[32,96], index: 4, kind: input, shape index: {}]   ;;  %s5511_s5 = inlined_call_operand.vmem [shape: f32[1,96], index: 5, kind: input, shape index: {}]   ;;  %s5512_s6 = inlined_call_operand.vmem [shape: f32[32,64], index: 6, kind: input, shape index: {}]   ;;  %s5513_s7 = inlined_call_operand.vmem [shape: f32[32,32], index: 7, kind: input, shape index: {}]   ;;  %s5514_s8 = inlined_call_operand.vmem [shape: f32[2,8,32], index: 8, kind: output, shape index: {0}]   ;;  %s5515_s9 = inlined_call_operand.hbm [shape: f32[2,2,32], index: 9, kind: output, shape index: {1}]  }
   0x1   :  { %v41_v0 = vld [vmem:[%s5508_s2] sm:$0xff]  ;;  %v42_v1 = vld [vmem:[%s5508_s2 + $0x8] sm:$0xff]  ;;  %v43_v2 = vld [vmem:[%s5508_s2 + $0x10] sm:$0xff]  ;;  %4411 = vmatprep.subr.bf16.mxu0 %v4781_v3  ;;  %3979 = vmatprep.mubr.msk.f32.mxu0 %vm4782_vm0, %v4783_v6 }
   0x2   :  { %v4850_v4 = vpack.c.bf16 %v42_v1, %v41_v0  ;;  %v44_v5 = vld [vmem:[%s5508_s2 + $0x18] sm:$0xff]  ;;  %v36_v7 = vld [vmem:[%s5507_s1] sm:$0x3]  ;;  %4417 = vmatprep.subr.bf16.mxu1 %v4781_v3  ;;  %3990 = vmatprep.mubr.msk.f32.mxu1 %vm4782_vm0, %v4783_v6 }
   0x3   :  { %38 = vst.msk [vmem:[#allocation2] sm:$0x3] %vm37_vm1, %v36_v7  ;;  %40 = vst.msk [vmem:[#allocation2 + $0x2] sm:$0x3] %vm37_vm1, %v36_v7 }
   0x4   :  { %15 = vsyncpa [#allocation3], 0  ;;  %4413 = vmatpush3.bf16.msra.mxu0 %v4850_v4  ;;  %v4866_v8 = vpack.c.bf16 %v44_v5, %v43_v2  ;;  %vm64_vm2 = vcmask 261120   ;;  %s4784_s1 = smov 32   ;;  %v45_v10 = vld [vmem:[%s5509_s3] sm:$0xff]  ;;  %v46_v11 = vld [vmem:[%s5509_s3 + $0x8] sm:$0xff] }
   0x5   :  { %4414 = vmatprep.subr.bf16.mxu0 %v4781_v3  ;;  %v47_v12 = vld [vmem:[%s5509_s3 + $0x10] sm:$0xff]  ;;  %v4888_v13 = vpack.c.bf16 %v46_v11, %v45_v10  ;;  %v48_v14 = vld [vmem:[%s5509_s3 + $0x18] sm:$0xff]  ;;  %v63_v16 = vld [vmem:[%s5506_s0] sm:$0x3]  ;;  %s4785_s3 = smov 96   ;;  %s4786_s28 = smov 64  }
   0x6   :  { %v4894_v15 = vpack.c.bf16 %v48_v14, %v47_v12  ;;  %v49_v29 = vld [vmem:[%s5510_s4] sm:$0xff]  ;;  %v50_v30 = vld [vmem:[%s5510_s4 + $0x8] sm:$0xff]  ;;  %v51_v35 = vld [vmem:[%s5510_s4 + $0x10] sm:$0xff]  ;;  %vm520_vm3 = vcmask 253952   ;;  %s4788_s25 = smov [#allocation2]  }
   0x7   :  { %4419 = vmatpush3.bf16.msra.mxu1 %v4888_v13  ;;  %v54_v31 = vld [vmem:[%s5512_s6] sm:$0xff]  ;;  %v4916_v32 = vpack.c.bf16 %v50_v30, %v49_v29  ;;  %v55_v33 = vld [vmem:[%s5512_s6 + $0x8] sm:$0xff]  ;;  %v52_v36 = vld [vmem:[%s5510_s4 + $0x18] sm:$0xff]  ;;  %s3694_s26 = sshll.u32 %s4788_s25, 4  ;;  %s3695_s26 = int_to_ptr.vmem [resolvable:$true] %s3694_s26 }
   0x8   :  { %4416 = vmatpush3.bf16.msra.mxu0 %v4866_v8  ;;  %4420 = vmatprep.subr.bf16.mxu1 %v4781_v3  ;;  %v4921_v34 = vpack.c.bf16 %v55_v33, %v54_v31  ;;  %v56_v37 = vld [vmem:[%s5512_s6 + $0x10] sm:$0xff]  ;;  %v4936_v39 = vpack.c.bf16 %v52_v36, %v51_v35  ;;  %v57_v40 = vld [vmem:[%s5512_s6 + $0x18] sm:$0xff]  ;;  %v58_v53 = vld [vmem:[%s5513_s7] sm:$0xff]  ;;  %v4787_v36 = vmov 1966171168   ;;  %p4762_p1 = scmp.lt.s32.totalorder %s3695_s26, %s3695_s26 }
   0x9   :  { %4423 = vmatprep.subr.bf16.mxu0 %v4781_v3  ;;  %v4941_v42 = vpack.c.bf16 %v57_v40, %v56_v37  ;;  %v59_v54 = vld [vmem:[%s5513_s7 + $0x8] sm:$0xff]  ;;  %v60_v55 = vld [vmem:[%s5513_s7 + $0x10] sm:$0xff]  ;;  %v61_v57 = vld [vmem:[%s5513_s7 + $0x18] sm:$0xff]  ;;  %v497_v37 = vunpack.c.l.s4 %v4787_v36 }
   0xa   :  { %v4871_v9 = vld [vmem:[#allocation2] sm:$0x3]  ;;  %v4947_v43 = vld [vmem:[#allocation2 + $0x2] sm:$0x3]  ;;  %v4986_v56 = vpack.c.bf16 %v59_v54, %v58_v53  ;;  %v4992_v58 = vpack.c.bf16 %v61_v57, %v60_v55 }
   0xb   :  { %3980 = vmatmul.mubr.msk.f32.vlgmr.msra.gmra.mrb[0].mxu0 %vm64_vm2, %v4871_v9  ;;  %145 = vrot.lane.b32.xlu0 %v4871_v9, %s4784_s1  ;;  %v5000_v59 = vld [vmem:[%s5511_s5] ss:$0 sm:$0xff]  ;;  %v3715_v1 = vld [vmem:[%s5506_s0 + $0x2] sm:$0x3]  ;;  %v498_v40 = vunpack.c.0.s8 %v497_v37 }
   0xc   :  { %4001 = vmatprep.mubr.msk.f32.mxu0 %vm4782_vm0, %v4783_v6  ;;  %4422 = vmatpush3.bf16.msra.mxu1 %v4894_v15 }
   0xd   :  { %4429 = vmatprep.subr.bf16.mxu1 %v4781_v3  ;;  %4425 = vmatpush3.bf16.msra.mxu0 %v4916_v32 }
   0xe   :  { %4426 = vmatprep.subr.bf16.mxu0 %v4781_v3 }
  0x11   :  { %4428 = vmatpush3.bf16.msra.mxu0 %v4936_v39 }
  0x12   :  { %4435 = vmatprep.subr.bf16.mxu0 %v4781_v3 }
  0x7d   :  { %v146_v23 = vpop.permute.xlu0 %145 }
  0xde   :  { %v134_v17 = vpop.f32.mrb[0].mxu0 }
  0xdf   :  { %v138_v18 = vadd.f32 %v134_v17, %v63_v16  ;;  %v3981_v19 = vpop.f32.mrb[1].mxu0 }
  0xe1   :  { %v3708_v20 = vmul.f32 -1.442695, %v138_v18 }
  0xe3   :  { %4660 = vpow2.f32 %v3708_v20 }
  0xed   :  { %v4661_v21 = vpop.eup %4660 }
  0xee   :  { %v142_v22 = vadd.f32 1.0, %v4661_v21 }
  0xf0   :  { %4662 = vrcp.f32 %v142_v22 }
  0xfa   :  { %v4663_v24 = vpop.eup %4662 }
  0xfb   :  { %v148_v25 = vmul.f32 %v4663_v24, %v146_v23  ;;  %v231_v45 = vsub.f32 1.0, %v4663_v24  ;;  %v230_v47 = vmul.f32 %v4663_v24, %v4871_v9 }
  0xfd   :  { %150 = vrot.lane.b32.xlu0 %v148_v25, %s4785_s3 }
 0x101   :  { %401 = vrot.lane.b32.xlu0 %v4947_v43, %s4784_s1 }
 0x16f   :  { %v151_v26 = vpop.permute.xlu0 %150 }
 0x170   :  { %3991 = vmatmul.mubr.msk.f32.vlgmr.msra.gmra.mrb[0].mxu1 %vm64_vm2, %v151_v26 }
 0x171   :  { %4012 = vmatprep.mubr.msk.f32.mxu1 %vm4782_vm0, %v4783_v6  ;;  %4431 = vmatpush3.bf16.msra.mxu1 %v4921_v34 }
 0x172   :  { %4432 = vmatprep.subr.bf16.mxu1 %v4781_v3 }
 0x175   :  { %4434 = vmatpush3.bf16.msra.mxu1 %v4941_v42 }
 0x176   :  { %4441 = vmatprep.subr.bf16.mxu1 %v4781_v3 }
 0x178   :  { %4013 = vmatmul.mubr.msk.f32.vlgmr.msra.gmra.mrb[2].mxu1 %vm64_vm2, %v4947_v43 }
 0x179   :  { %4443 = vmatpush3.bf16.msra.mxu1 %v4850_v4  ;;  %4034 = vmatprep.mubr.msk.f32.mxu1 %vm4782_vm0, %v4783_v6 }
 0x17a   :  { %4444 = vmatprep.subr.bf16.mxu1 %v4781_v3 }
 0x17d   :  { %4446 = vmatpush3.bf16.msra.mxu1 %v4866_v8 }
 0x17e   :  { %4453 = vmatprep.subr.bf16.mxu1 %v4781_v3 }
 0x243   :  { %v220_v27 = vpop.f32.mrb[0].mxu1 }
 0x244   :  { %225 = vrot.lane.b32.xlu1 %v220_v27, %s4786_s28  ;;  %v3992_v28 = vpop.f32.mrb[1].mxu1 }
 0x24b   :  { %v390_v51 = vpop.f32.mrb[2].mxu1 }
 0x24c   :  { %v4014_v52 = vpop.f32.mrb[3].mxu1 }
 0x2b6   :  { %v226_v38 = vpop.permute.xlu1 %225 }
 0x2b7   :  { %v228_v41 = vadd.f32 %v226_v38, %v63_v16  ;;  %v402_v16 = vpop.permute.xlu0 %401  ;;  %v499_v38 = vlaneseq }
 0x2b9   :  { %4664 = vtanh.f32 %v228_v41  ;;  %v500_v41 = vshrl.u32 %v499_v38, 7 }
 0x2c3   :  { %v4665_v44 = vpop.eup %4664 }
 0x2c4   :  { %233 = vrot.lane.b32.xlu1 %v4665_v44, %s4786_s28 }
 0x336   :  { %v234_v46 = vpop.permute.xlu1 %233 }
 0x337   :  { %v236_v48 = vmul.f32 %v234_v46, %v231_v45 }
 0x339   :  { %v237_v49 = vadd.f32 %v236_v48, %v230_v47  ;;  %v5027_v47 = vsub.s32 %v498_v40, %v500_v41 }
 0x33b   :  { %239 = vst.msk [vmem:[#allocation2] sm:$0x3] %vm37_vm1, %v237_v49  ;;  %4002 = vmatmul.mubr.msk.f32.vlgmr.msra.gmra.mrb[2].mxu0 %vm64_vm2, %v237_v49 }
 0x33c   :  { %4023 = vmatprep.mubr.msk.f32.mxu0 %vm4782_vm0, %v4783_v6  ;;  %4437 = vmatpush3.bf16.msra.mxu0 %v4986_v56 }
 0x33d   :  { %4438 = vmatprep.subr.bf16.mxu0 %v4781_v3 }
 0x340   :  { %4440 = vmatpush3.bf16.msra.mxu0 %v4992_v58 }
 0x341   :  { %4447 = vmatprep.subr.bf16.mxu0 %v4781_v3 }
 0x342   :  { %v4965_v50 = vld [vmem:[#allocation2] sm:$0x3] }
 0x343   :  { %606 = vrot.lane.b32.xlu1 %v4965_v50, %s4784_s1  ;;  %4035 = vmatmul.mubr.msk.f32.vlgmr.msra.gmra.mrb[4].mxu1 %vm64_vm2, %v4965_v50 }
 0x344   :  { %4455 = vmatpush3.bf16.msra.mxu1 %v4916_v32  ;;  %4056 = vmatprep.mubr.msk.f32.mxu1 %vm4782_vm0, %v4783_v6 }
 0x345   :  { %4456 = vmatprep.subr.bf16.mxu1 %v4781_v3 }
 0x348   :  { %4458 = vmatpush3.bf16.msra.mxu1 %v4936_v39 }
 0x349   :  { %4465 = vmatprep.subr.bf16.mxu1 %v4781_v3 }
 0x3b5   :  { %v607_v20 = vpop.permute.xlu1 %606 }
 0x40e   :  { %v317_v60 = vpop.f32.mrb[2].mxu0 }
 0x40f   :  { %v318_v61 = vadd.f32 %v5000_v59, %v317_v60  ;;  %v4003_v62 = vpop.f32.mrb[3].mxu0 }
 0x411   :  { %v394_v63 = vadd.f32 %v390_v51, %v318_v61 }
 0x413   :  { %v3713_v0 = vmul.f32 -1.442695, %v394_v63 }
 0x415   :  { %4666 = vpow2.f32 %v3713_v0 }
 0x416   :  { %v595_v2 = vpop.f32.mrb[4].mxu1 }
 0x417   :  { %v599_v5 = vadd.f32 %v3715_v1, %v595_v2  ;;  %v4036_v7 = vpop.f32.mrb[5].mxu1 }
 0x419   :  { %v3717_v9 = vmul.f32 -1.442695, %v599_v5 }
 0x41b   :  { %4668 = vpow2.f32 %v3717_v9 }
 0x41f   :  { %v4667_v10 = vpop.eup %4666 }
 0x420   :  { %v398_v11 = vadd.f32 1.0, %v4667_v10  ;;  %v3723_v10 = vld [vmem:[%s5506_s0 + $0x4] sm:$0x3] }
 0x422   :  { %4670 = vrcp.f32 %v398_v11 }
 0x425   :  { %v4669_v12 = vpop.eup %4668 }
 0x426   :  { %v603_v14 = vadd.f32 1.0, %v4669_v12 }
 0x428   :  { %4672 = vrcp.f32 %v603_v14 }
 0x42c   :  { %v4671_v17 = vpop.eup %4670 }
 0x42d   :  { %v404_v18 = vmul.f32 %v4671_v17, %v402_v16  ;;  %v487_v44 = vsub.f32 1.0, %v4671_v17  ;;  %v486_v46 = vmul.f32 %v4671_v17, %v4947_v43 }
 0x42f   :  { %406 = vrot.lane.b32.xlu0 %v404_v18, %s4785_s3 }
 0x432   :  { %v4673_v19 = vpop.eup %4672 }
 0x433   :  { %v609_v21 = vmul.f32 %v4673_v19, %v607_v20  ;;  %v692_v54 = vsub.f32 1.0, %v4673_v19  ;;  %v691_v43 = vmul.f32 %v4673_v19, %v4965_v50 }
 0x435   :  { %611 = vrot.lane.b32.xlu1 %v609_v21, %s4785_s3 }
 0x4a1   :  { %v407_v22 = vpop.permute.xlu0 %406 }
 0x4a2   :  { %4024 = vmatmul.mubr.msk.f32.vlgmr.msra.gmra.mrb[4].mxu0 %vm64_vm2, %v407_v22 }
 0x4a3   :  { %4449 = vmatpush3.bf16.msra.mxu0 %v4888_v13  ;;  %4045 = vmatprep.mubr.msk.f32.mxu0 %vm4782_vm0, %v4783_v6 }
 0x4a4   :  { %4450 = vmatprep.subr.bf16.mxu0 %v4781_v3 }
 0x4a7   :  { %4452 = vmatpush3.bf16.msra.mxu0 %v4894_v15  ;;  %v612_v23 = vpop.permute.xlu1 %611 }
 0x4a8   :  { %4459 = vmatprep.subr.bf16.mxu0 %v4781_v3 }
 0x4aa   :  { %4046 = vmatmul.mubr.msk.f32.vlgmr.msra.gmra.mrb[6].mxu0 %vm64_vm2, %v612_v23 }
 0x4ab   :  { %4461 = vmatpush3.bf16.msra.mxu0 %v4921_v34  ;;  %4067 = vmatprep.mubr.msk.f32.mxu0 %vm4782_vm0, %v4783_v6 }
 0x4ac   :  { %4462 = vmatprep.subr.bf16.mxu0 %v4781_v3 }
 0x4af   :  { %4464 = vmatpush3.bf16.msra.mxu0 %v4941_v42 }
 0x4b0   :  { %4471 = vmatprep.subr.bf16.mxu0 %v4781_v3 }
 0x575   :  { %v476_v24 = vpop.f32.mrb[4].mxu0 }
 0x576   :  { %481 = vrot.lane.b32.xlu0 %v476_v24, %s4786_s28  ;;  %v4025_v25 = vpop.f32.mrb[5].mxu0 }
 0x57d   :  { %v681_v26 = vpop.f32.mrb[6].mxu0 }
 0x57e   :  { %686 = vrot.lane.b32.xlu1 %v681_v26, %s4786_s28  ;;  %v4047_v27 = vpop.f32.mrb[7].mxu0 }
 0x5e8   :  { %v482_v28 = vpop.permute.xlu0 %481 }
 0x5e9   :  { %v484_v29 = vadd.f32 %v482_v28, %v318_v61 }
 0x5eb   :  { %4674 = vtanh.f32 %v484_v29 }
 0x5f0   :  { %v687_v30 = vpop.permute.xlu1 %686 }
 0x5f1   :  { %v689_v31 = vadd.f32 %v3715_v1, %v687_v30 }
 0x5f3   :  { %4676 = vtanh.f32 %v689_v31 }
 0x5f5   :  { %v4675_v33 = vpop.eup %4674 }
 0x5f6   :  { %489 = vrot.lane.b32.xlu0 %v4675_v33, %s4786_s28 }
 0x5fd   :  { %v4677_v35 = vpop.eup %4676 }
 0x5fe   :  { %694 = vrot.lane.b32.xlu1 %v4677_v35, %s4786_s28 }
 0x668   :  { %v490_v45 = vpop.permute.xlu0 %489 }
 0x669   :  { %v492_v48 = vmul.f32 %v490_v45, %v487_v44 }
 0x66b   :  { %v493_v49 = vadd.f32 %v492_v48, %v486_v46 }
 0x66d   :  { %494 = vst.msk [vmem:[#allocation2 + $0x2] sm:$0x3] %vm37_vm1, %v493_v49  ;;  %v502_v51 = vrot.slane %v493_v49, %v5027_v47 }
 0x66f   :  { %v503_v52 = vcombine.high %v502_v51, %v502_v51  ;;  %v510_v53 = vrot.slane %v502_v51, %v5027_v47 }
 0x670   :  { %v695_v55 = vpop.permute.xlu1 %694 }
 0x671   :  { %v517_v57 = vrot.slane %v503_v52, %v5027_v47  ;;  %521 = vst.msk [vmem:[%s5514_s8] sm:$0x1] %vm520_vm3, %v510_v53  ;;  %v697_v60 = vmul.f32 %v695_v55, %v692_v54 }
 0x673   :  { %522 = vst.msk [vmem:[%s5514_s8 + $0x8] sm:$0x1] %vm520_vm3, %v517_v57  ;;  %v698_v61 = vadd.f32 %v697_v60, %v691_v43 }
 0x674   :  { %v5042_v62 = vld [vmem:[#allocation2 + $0x2] sm:$0x3] }
 0x675   :  { %699 = vst.msk [vmem:[#allocation2] sm:$0x3] %vm37_vm1, %v698_v61  ;;  %4057 = vmatmul.mubr.msk.f32.vlgmr.msra.gmra.mrb[6].mxu1 %vm64_vm2, %v698_v61  ;;  %854 = vrot.lane.b32.xlu0 %v5042_v62, %s4784_s1 }
 0x676   :  { %4068 = vmatmul.mubr.msk.f32.vlgmr.msra.gmra.mrb[8].mxu0 %vm64_vm2, %v5042_v62  ;;  %4467 = vmatpush3.bf16.msra.mxu1 %v4986_v56 }
 0x677   :  { %4473 = vmatpush3.bf16.msra.mxu0 %v4850_v4  ;;  %4089 = vmatprep.mubr.msk.f32.mxu0 %vm4782_vm0, %v4783_v6 }
 0x678   :  { %4474 = vmatprep.subr.bf16.mxu0 %v4781_v3  ;;  %4468 = vmatprep.subr.bf16.mxu1 %v4781_v3 }
 0x679   :  { %4078 = vmatprep.mubr.msk.f32.mxu1 %vm4782_vm0, %v4783_v6 }
 0x67a   :  { %4470 = vmatpush3.bf16.msra.mxu1 %v4992_v58 }
 0x67b   :  { %4476 = vmatpush3.bf16.msra.mxu0 %v4866_v8  ;;  %4477 = vmatprep.subr.bf16.mxu1 %v4781_v3 }
 0x67c   :  { %v5061_v50 = vld [vmem:[#allocation2] sm:$0x3]  ;;  %4483 = vmatprep.subr.bf16.mxu0 %v4781_v3 }
 0x67d   :  { %1058 = vrot.lane.b32.xlu1 %v5061_v50, %s4784_s1 }
 0x67e   :  { %4090 = vmatmul.mubr.msk.f32.vlgmr.msra.gmra.mrb[10].mxu0 %vm64_vm2, %v5061_v50 }
 0x67f   :  { %4485 = vmatpush3.bf16.msra.mxu0 %v4916_v32  ;;  %4111 = vmatprep.mubr.msk.f32.mxu0 %vm4782_vm0, %v4783_v6 }
 0x680   :  { %4486 = vmatprep.subr.bf16.mxu0 %v4781_v3 }
 0x683   :  { %4488 = vmatpush3.bf16.msra.mxu0 %v4936_v39 }
 0x684   :  { %4495 = vmatprep.subr.bf16.mxu0 %v4781_v3 }
 0x6e7   :  { %v855_v22 = vpop.permute.xlu0 %854 }
 0x6ef   :  { %v1059_v25 = vpop.permute.xlu1 %1058 }
 0x748   :  { %v770_v63 = vpop.f32.mrb[6].mxu1 }
 0x749   :  { %v771_v0 = vadd.f32 %v5000_v59, %v770_v63  ;;  %v4058_v1 = vpop.f32.mrb[7].mxu1  ;;  %v843_v2 = vpop.f32.mrb[8].mxu0 }
 0x74a   :  { %v4069_v5 = vpop.f32.mrb[9].mxu0 }
 0x74b   :  { %v847_v7 = vadd.f32 %v843_v2, %v771_v0 }
 0x74d   :  { %v3721_v9 = vmul.f32 -1.442695, %v847_v7 }
 0x74f   :  { %4678 = vpow2.f32 %v3721_v9 }
 0x751   :  { %v1047_v11 = vpop.f32.mrb[10].mxu0 }
 0x752   :  { %v1051_v12 = vadd.f32 %v3723_v10, %v1047_v11  ;;  %v4091_v14 = vpop.f32.mrb[11].mxu0 }
 0x754   :  { %v3725_v16 = vmul.f32 -1.442695, %v1051_v12 }
 0x756   :  { %4680 = vpow2.f32 %v3725_v16 }
 0x759   :  { %v4679_v17 = vpop.eup %4678 }
 0x75a   :  { %v851_v18 = vadd.f32 1.0, %v4679_v17 }
 0x75c   :  { %4682 = vrcp.f32 %v851_v18 }
 0x760   :  { %v4681_v19 = vpop.eup %4680 }
 0x761   :  { %v1055_v20 = vadd.f32 1.0, %v4681_v19 }
 0x763   :  { %4684 = vrcp.f32 %v1055_v20 }
 0x766   :  { %v4683_v21 = vpop.eup %4682 }
 0x767   :  { %v857_v23 = vmul.f32 %v4683_v21, %v855_v22  ;;  %v940_v44 = vsub.f32 1.0, %v4683_v21  ;;  %v939_v46 = vmul.f32 %v4683_v21, %v5042_v62 }
 0x769   :  { %859 = vrot.lane.b32.xlu0 %v857_v23, %s4785_s3 }
 0x76d   :  { %v4685_v24 = vpop.eup %4684 }
 0x76e   :  { %v1061_v26 = vmul.f32 %v4685_v24, %v1059_v25  ;;  %v1144_v54 = vsub.f32 1.0, %v4685_v24  ;;  %v1143_v43 = vmul.f32 %v4685_v24, %v5061_v50 }
 0x770   :  { %1063 = vrot.lane.b32.xlu1 %v1061_v26, %s4785_s3 }
 0x7db   :  { %v860_v27 = vpop.permute.xlu0 %859 }
 0x7dc   :  { %4079 = vmatmul.mubr.msk.f32.vlgmr.msra.gmra.mrb[8].mxu1 %vm64_vm2, %v860_v27 }
 0x7dd   :  { %4479 = vmatpush3.bf16.msra.mxu1 %v4888_v13  ;;  %4100 = vmatprep.mubr.msk.f32.mxu1 %vm4782_vm0, %v4783_v6 }
 0x7de   :  { %4480 = vmatprep.subr.bf16.mxu1 %v4781_v3 }
 0x7e1   :  { %4482 = vmatpush3.bf16.msra.mxu1 %v4894_v15 }
 0x7e2   :  { %v1064_v28 = vpop.permute.xlu1 %1063  ;;  %4489 = vmatprep.subr.bf16.mxu1 %v4781_v3 }
 0x7e4   :  { %4101 = vmatmul.mubr.msk.f32.vlgmr.msra.gmra.mrb[10].mxu1 %vm64_vm2, %v1064_v28 }
 0x7e5   :  { %4491 = vmatpush3.bf16.msra.mxu1 %v4921_v34  ;;  %4122 = vmatprep.mubr.msk.f32.mxu1 %vm4782_vm0, %v4783_v6 }
 0x7e6   :  { %4492 = vmatprep.subr.bf16.mxu1 %v4781_v3 }
 0x7e9   :  { %4494 = vmatpush3.bf16.msra.mxu1 %v4941_v42 }
 0x7ea   :  { %4501 = vmatprep.subr.bf16.mxu1 %v4781_v3 }
 0x8af   :  { %v929_v29 = vpop.f32.mrb[8].mxu1 }
 0x8b0   :  { %934 = vrot.lane.b32.xlu0 %v929_v29, %s4786_s28  ;;  %v4080_v30 = vpop.f32.mrb[9].mxu1 }
 0x8b7   :  { %v1133_v31 = vpop.f32.mrb[10].mxu1 }
 0x8b8   :  { %1138 = vrot.lane.b32.xlu1 %v1133_v31, %s4786_s28  ;;  %v4102_v33 = vpop.f32.mrb[11].mxu1 }
 0x922   :  { %v935_v35 = vpop.permute.xlu0 %934 }
 0x923   :  { %v937_v36 = vadd.f32 %v935_v35, %v771_v0 }
 0x925   :  { %4686 = vtanh.f32 %v937_v36 }
 0x92a   :  { %v1139_v37 = vpop.permute.xlu1 %1138 }
 0x92b   :  { %v1141_v38 = vadd.f32 %v3723_v10, %v1139_v37  ;;  %v3731_v10 = vld [vmem:[%s5506_s0 + $0x6] sm:$0x3] }
 0x92d   :  { %4688 = vtanh.f32 %v1141_v38 }
 0x92f   :  { %v4687_v40 = vpop.eup %4686 }
 0x930   :  { %942 = vrot.lane.b32.xlu0 %v4687_v40, %s4786_s28 }
 0x937   :  { %v4689_v41 = vpop.eup %4688 }
 0x938   :  { %1146 = vrot.lane.b32.xlu1 %v4689_v41, %s4786_s28 }
 0x9a2   :  { %v943_v45 = vpop.permute.xlu0 %942 }
 0x9a3   :  { %v945_v48 = vmul.f32 %v943_v45, %v940_v44 }
 0x9a5   :  { %v946_v49 = vadd.f32 %v945_v48, %v939_v46 }
 0x9a7   :  { %947 = vst.msk [vmem:[#allocation2 + $0x2] sm:$0x3] %vm37_vm1, %v946_v49  ;;  %v955_v51 = vrot.slane %v946_v49, %v5027_v47 }
 0x9a9   :  { %v956_v52 = vcombine.high %v955_v51, %v955_v51  ;;  %v963_v53 = vrot.slane %v955_v51, %v5027_v47 }
 0x9aa   :  { %v1147_v55 = vpop.permute.xlu1 %1146 }
 0x9ab   :  { %v970_v57 = vrot.slane %v956_v52, %v5027_v47  ;;  %973 = vst.msk [vmem:[%s5514_s8 + $0x1] sm:$0x1] %vm520_vm3, %v963_v53  ;;  %v1149_v60 = vmul.f32 %v1147_v55, %v1144_v54 }
 0x9ad   :  { %974 = vst.msk [vmem:[%s5514_s8 + $0x9] sm:$0x1] %vm520_vm3, %v970_v57  ;;  %v1150_v61 = vadd.f32 %v1149_v60, %v1143_v43 }
 0x9ae   :  { %v5112_v62 = vld [vmem:[#allocation2 + $0x2] sm:$0x3] }
 0x9af   :  { %1151 = vst.msk [vmem:[#allocation2] sm:$0x3] %vm37_vm1, %v1150_v61  ;;  %4112 = vmatmul.mubr.msk.f32.vlgmr.msra.gmra.mrb[12].mxu0 %vm64_vm2, %v1150_v61  ;;  %1306 = vrot.lane.b32.xlu0 %v5112_v62, %s4784_s1 }
 0x9b0   :  { %4123 = vmatmul.mubr.msk.f32.vlgmr.msra.gmra.mrb[12].mxu1 %vm64_vm2, %v5112_v62  ;;  %4497 = vmatpush3.bf16.msra.mxu0 %v4986_v56 }
 0x9b1   :  { %4503 = vmatpush3.bf16.msra.mxu1 %v4850_v4  ;;  %4144 = vmatprep.mubr.msk.f32.mxu1 %vm4782_vm0, %v4783_v6 }
 0x9b2   :  { %4504 = vmatprep.subr.bf16.mxu1 %v4781_v3  ;;  %4498 = vmatprep.subr.bf16.mxu0 %v4781_v3 }
 0x9b3   :  { %4133 = vmatprep.mubr.msk.f32.mxu0 %vm4782_vm0, %v4783_v6 }
 0x9b4   :  { %4500 = vmatpush3.bf16.msra.mxu0 %v4992_v58 }
 0x9b5   :  { %4506 = vmatpush3.bf16.msra.mxu1 %v4866_v8  ;;  %4507 = vmatprep.subr.bf16.mxu0 %v4781_v3 }
 0x9b6   :  { %v5131_v50 = vld [vmem:[#allocation2] sm:$0x3]  ;;  %4513 = vmatprep.subr.bf16.mxu1 %v4781_v3 }
 0x9b7   :  { %1510 = vrot.lane.b32.xlu1 %v5131_v50, %s4784_s1 }
 0x9b8   :  { %4145 = vmatmul.mubr.msk.f32.vlgmr.msra.gmra.mrb[14].mxu1 %vm64_vm2, %v5131_v50 }
 0x9b9   :  { %4515 = vmatpush3.bf16.msra.mxu1 %v4916_v32  ;;  %4166 = vmatprep.mubr.msk.f32.mxu1 %vm4782_vm0, %v4783_v6 }
 0x9ba   :  { %4516 = vmatprep.subr.bf16.mxu1 %v4781_v3 }
 0x9bd   :  { %4518 = vmatpush3.bf16.msra.mxu1 %v4936_v39 }
 0x9be   :  { %4525 = vmatprep.subr.bf16.mxu1 %v4781_v3 }
 0xa21   :  { %v1307_v22 = vpop.permute.xlu0 %1306 }
 0xa29   :  { %v1511_v25 = vpop.permute.xlu1 %1510 }
 0xa82   :  { %v1222_v63 = vpop.f32.mrb[12].mxu0 }
 0xa83   :  { %v1223_v0 = vadd.f32 %v5000_v59, %v1222_v63  ;;  %v4113_v1 = vpop.f32.mrb[13].mxu0  ;;  %v1295_v2 = vpop.f32.mrb[12].mxu1 }
 0xa84   :  { %v4124_v5 = vpop.f32.mrb[13].mxu1 }
 0xa85   :  { %v1299_v7 = vadd.f32 %v1295_v2, %v1223_v0 }
 0xa87   :  { %v3729_v9 = vmul.f32 -1.442695, %v1299_v7 }
 0xa89   :  { %4690 = vpow2.f32 %v3729_v9 }
 0xa8b   :  { %v1499_v11 = vpop.f32.mrb[14].mxu1 }
 0xa8c   :  { %v1503_v12 = vadd.f32 %v3731_v10, %v1499_v11  ;;  %v4146_v14 = vpop.f32.mrb[15].mxu1 }
 0xa8e   :  { %v3733_v16 = vmul.f32 -1.442695, %v1503_v12 }
 0xa90   :  { %4692 = vpow2.f32 %v3733_v16 }
 0xa93   :  { %v4691_v17 = vpop.eup %4690 }
 0xa94   :  { %v1303_v18 = vadd.f32 1.0, %v4691_v17 }
 0xa96   :  { %4694 = vrcp.f32 %v1303_v18 }
 0xa9a   :  { %v4693_v19 = vpop.eup %4692 }
 0xa9b   :  { %v1507_v20 = vadd.f32 1.0, %v4693_v19 }
 0xa9d   :  { %4696 = vrcp.f32 %v1507_v20 }
 0xaa0   :  { %v4695_v21 = vpop.eup %4694 }
 0xaa1   :  { %v1309_v23 = vmul.f32 %v4695_v21, %v1307_v22  ;;  %v1392_v44 = vsub.f32 1.0, %v4695_v21  ;;  %v1391_v46 = vmul.f32 %v4695_v21, %v5112_v62 }
 0xaa3   :  { %1311 = vrot.lane.b32.xlu0 %v1309_v23, %s4785_s3 }
 0xaa7   :  { %v4697_v24 = vpop.eup %4696 }
 0xaa8   :  { %v1513_v26 = vmul.f32 %v4697_v24, %v1511_v25  ;;  %v1596_v54 = vsub.f32 1.0, %v4697_v24  ;;  %v1595_v43 = vmul.f32 %v4697_v24, %v5131_v50 }
 0xaaa   :  { %1515 = vrot.lane.b32.xlu1 %v1513_v26, %s4785_s3 }
 0xb15   :  { %v1312_v27 = vpop.permute.xlu0 %1311 }
 0xb16   :  { %4134 = vmatmul.mubr.msk.f32.vlgmr.msra.gmra.mrb[14].mxu0 %vm64_vm2, %v1312_v27 }
 0xb17   :  { %4509 = vmatpush3.bf16.msra.mxu0 %v4888_v13  ;;  %4155 = vmatprep.mubr.msk.f32.mxu0 %vm4782_vm0, %v4783_v6 }
 0xb18   :  { %4510 = vmatprep.subr.bf16.mxu0 %v4781_v3 }
 0xb1b   :  { %4512 = vmatpush3.bf16.msra.mxu0 %v4894_v15 }
 0xb1c   :  { %v1516_v28 = vpop.permute.xlu1 %1515  ;;  %4519 = vmatprep.subr.bf16.mxu0 %v4781_v3 }
 0xb1e   :  { %4156 = vmatmul.mubr.msk.f32.vlgmr.msra.gmra.mrb[16].mxu0 %vm64_vm2, %v1516_v28 }
 0xb1f   :  { %4521 = vmatpush3.bf16.msra.mxu0 %v4921_v34  ;;  %4177 = vmatprep.mubr.msk.f32.mxu0 %vm4782_vm0, %v4783_v6 }
 0xb20   :  { %4522 = vmatprep.subr.bf16.mxu0 %v4781_v3 }
 0xb23   :  { %4524 = vmatpush3.bf16.msra.mxu0 %v4941_v42 }
 0xb24   :  { %4531 = vmatprep.subr.bf16.mxu0 %v4781_v3 }
 0xbe9   :  { %v1381_v29 = vpop.f32.mrb[14].mxu0 }
 0xbea   :  { %1386 = vrot.lane.b32.xlu0 %v1381_v29, %s4786_s28  ;;  %v4135_v30 = vpop.f32.mrb[15].mxu0 }
 0xbf1   :  { %v1585_v31 = vpop.f32.mrb[16].mxu0 }
 0xbf2   :  { %1590 = vrot.lane.b32.xlu1 %v1585_v31, %s4786_s28  ;;  %v4157_v33 = vpop.f32.mrb[17].mxu0 }
 0xc5c   :  { %v1387_v35 = vpop.permute.xlu0 %1386 }
 0xc5d   :  { %v1389_v36 = vadd.f32 %v1387_v35, %v1223_v0 }
 0xc5f   :  { %4698 = vtanh.f32 %v1389_v36 }
 0xc64   :  { %v1591_v37 = vpop.permute.xlu1 %1590 }
 0xc65   :  { %v1593_v38 = vadd.f32 %v3731_v10, %v1591_v37  ;;  %v3739_v10 = vld [vmem:[%s5506_s0 + $0x8] sm:$0x3] }
 0xc67   :  { %4700 = vtanh.f32 %v1593_v38 }
 0xc69   :  { %v4699_v40 = vpop.eup %4698 }
 0xc6a   :  { %1394 = vrot.lane.b32.xlu0 %v4699_v40, %s4786_s28 }
 0xc71   :  { %v4701_v41 = vpop.eup %4700 }
 0xc72   :  { %1598 = vrot.lane.b32.xlu1 %v4701_v41, %s4786_s28 }
 0xcdc   :  { %v1395_v45 = vpop.permute.xlu0 %1394 }
 0xcdd   :  { %v1397_v48 = vmul.f32 %v1395_v45, %v1392_v44 }
 0xcdf   :  { %v1398_v49 = vadd.f32 %v1397_v48, %v1391_v46 }
 0xce1   :  { %1399 = vst.msk [vmem:[#allocation2 + $0x2] sm:$0x3] %vm37_vm1, %v1398_v49  ;;  %v1407_v51 = vrot.slane %v1398_v49, %v5027_v47 }
 0xce3   :  { %v1408_v52 = vcombine.high %v1407_v51, %v1407_v51  ;;  %v1415_v53 = vrot.slane %v1407_v51, %v5027_v47 }
 0xce4   :  { %v1599_v55 = vpop.permute.xlu1 %1598 }
 0xce5   :  { %v1422_v57 = vrot.slane %v1408_v52, %v5027_v47  ;;  %1425 = vst.msk [vmem:[%s5514_s8 + $0x2] sm:$0x1] %vm520_vm3, %v1415_v53  ;;  %v1601_v60 = vmul.f32 %v1599_v55, %v1596_v54 }
 0xce7   :  { %1426 = vst.msk [vmem:[%s5514_s8 + $0xa] sm:$0x1] %vm520_vm3, %v1422_v57  ;;  %v1602_v61 = vadd.f32 %v1601_v60, %v1595_v43 }
 0xce8   :  { %v5182_v62 = vld [vmem:[#allocation2 + $0x2] sm:$0x3] }
 0xce9   :  { %1603 = vst.msk [vmem:[#allocation2] sm:$0x3] %vm37_vm1, %v1602_v61  ;;  %4167 = vmatmul.mubr.msk.f32.vlgmr.msra.gmra.mrb[16].mxu1 %vm64_vm2, %v1602_v61  ;;  %1758 = vrot.lane.b32.xlu0 %v5182_v62, %s4784_s1 }
 0xcea   :  { %4178 = vmatmul.mubr.msk.f32.vlgmr.msra.gmra.mrb[18].mxu0 %vm64_vm2, %v5182_v62  ;;  %4527 = vmatpush3.bf16.msra.mxu1 %v4986_v56 }
 0xceb   :  { %4533 = vmatpush3.bf16.msra.mxu0 %v4850_v4  ;;  %4199 = vmatprep.mubr.msk.f32.mxu0 %vm4782_vm0, %v4783_v6 }
 0xcec   :  { %4534 = vmatprep.subr.bf16.mxu0 %v4781_v3  ;;  %4528 = vmatprep.subr.bf16.mxu1 %v4781_v3 }
 0xced   :  { %4188 = vmatprep.mubr.msk.f32.mxu1 %vm4782_vm0, %v4783_v6 }
 0xcee   :  { %4530 = vmatpush3.bf16.msra.mxu1 %v4992_v58 }
 0xcef   :  { %4536 = vmatpush3.bf16.msra.mxu0 %v4866_v8  ;;  %4537 = vmatprep.subr.bf16.mxu1 %v4781_v3 }
 0xcf0   :  { %v5201_v50 = vld [vmem:[#allocation2] sm:$0x3]  ;;  %4543 = vmatprep.subr.bf16.mxu0 %v4781_v3 }
 0xcf1   :  { %1962 = vrot.lane.b32.xlu1 %v5201_v50, %s4784_s1 }
 0xcf2   :  { %4200 = vmatmul.mubr.msk.f32.vlgmr.msra.gmra.mrb[20].mxu0 %vm64_vm2, %v5201_v50 }
 0xcf3   :  { %4545 = vmatpush3.bf16.msra.mxu0 %v4916_v32  ;;  %4221 = vmatprep.mubr.msk.f32.mxu0 %vm4782_vm0, %v4783_v6 }
 0xcf4   :  { %4546 = vmatprep.subr.bf16.mxu0 %v4781_v3 }
 0xcf7   :  { %4548 = vmatpush3.bf16.msra.mxu0 %v4936_v39 }
 0xcf8   :  { %4555 = vmatprep.subr.bf16.mxu0 %v4781_v3 }
 0xd5b   :  { %v1759_v22 = vpop.permute.xlu0 %1758 }
 0xd63   :  { %v1963_v25 = vpop.permute.xlu1 %1962 }
 0xdbc   :  { %v1674_v63 = vpop.f32.mrb[16].mxu1 }
 0xdbd   :  { %v1675_v0 = vadd.f32 %v5000_v59, %v1674_v63  ;;  %v4168_v1 = vpop.f32.mrb[17].mxu1  ;;  %v1747_v2 = vpop.f32.mrb[18].mxu0 }
 0xdbe   :  { %v4179_v5 = vpop.f32.mrb[19].mxu0 }
 0xdbf   :  { %v1751_v7 = vadd.f32 %v1747_v2, %v1675_v0 }
 0xdc1   :  { %v3737_v9 = vmul.f32 -1.442695, %v1751_v7 }
 0xdc3   :  { %4702 = vpow2.f32 %v3737_v9 }
 0xdc5   :  { %v1951_v11 = vpop.f32.mrb[20].mxu0 }
 0xdc6   :  { %v1955_v12 = vadd.f32 %v3739_v10, %v1951_v11  ;;  %v4201_v14 = vpop.f32.mrb[21].mxu0 }
 0xdc8   :  { %v3741_v16 = vmul.f32 -1.442695, %v1955_v12 }
 0xdca   :  { %4704 = vpow2.f32 %v3741_v16 }
 0xdcd   :  { %v4703_v17 = vpop.eup %4702 }
 0xdce   :  { %v1755_v18 = vadd.f32 1.0, %v4703_v17 }
 0xdd0   :  { %4706 = vrcp.f32 %v1755_v18 }
 0xdd4   :  { %v4705_v19 = vpop.eup %4704 }
 0xdd5   :  { %v1959_v20 = vadd.f32 1.0, %v4705_v19 }
 0xdd7   :  { %4708 = vrcp.f32 %v1959_v20 }
 0xdda   :  { %v4707_v21 = vpop.eup %4706 }
 0xddb   :  { %v1761_v23 = vmul.f32 %v4707_v21, %v1759_v22  ;;  %v1844_v44 = vsub.f32 1.0, %v4707_v21  ;;  %v1843_v46 = vmul.f32 %v4707_v21, %v5182_v62 }
 0xddd   :  { %1763 = vrot.lane.b32.xlu0 %v1761_v23, %s4785_s3 }
 0xde1   :  { %v4709_v24 = vpop.eup %4708 }
 0xde2   :  { %v1965_v26 = vmul.f32 %v4709_v24, %v1963_v25  ;;  %v2048_v54 = vsub.f32 1.0, %v4709_v24  ;;  %v2047_v43 = vmul.f32 %v4709_v24, %v5201_v50 }
 0xde4   :  { %1967 = vrot.lane.b32.xlu1 %v1965_v26, %s4785_s3 }
 0xe4f   :  { %v1764_v27 = vpop.permute.xlu0 %1763 }
 0xe50   :  { %4189 = vmatmul.mubr.msk.f32.vlgmr.msra.gmra.mrb[18].mxu1 %vm64_vm2, %v1764_v27 }
 0xe51   :  { %4539 = vmatpush3.bf16.msra.mxu1 %v4888_v13  ;;  %4210 = vmatprep.mubr.msk.f32.mxu1 %vm4782_vm0, %v4783_v6 }
 0xe52   :  { %4540 = vmatprep.subr.bf16.mxu1 %v4781_v3 }
 0xe55   :  { %4542 = vmatpush3.bf16.msra.mxu1 %v4894_v15 }
 0xe56   :  { %v1968_v28 = vpop.permute.xlu1 %1967  ;;  %4549 = vmatprep.subr.bf16.mxu1 %v4781_v3 }
 0xe58   :  { %4211 = vmatmul.mubr.msk.f32.vlgmr.msra.gmra.mrb[20].mxu1 %vm64_vm2, %v1968_v28 }
 0xe59   :  { %4551 = vmatpush3.bf16.msra.mxu1 %v4921_v34  ;;  %4232 = vmatprep.mubr.msk.f32.mxu1 %vm4782_vm0, %v4783_v6 }
 0xe5a   :  { %4552 = vmatprep.subr.bf16.mxu1 %v4781_v3 }
 0xe5d   :  { %4554 = vmatpush3.bf16.msra.mxu1 %v4941_v42 }
 0xe5e   :  { %4561 = vmatprep.subr.bf16.mxu1 %v4781_v3 }
 0xf23   :  { %v1833_v29 = vpop.f32.mrb[18].mxu1 }
 0xf24   :  { %1838 = vrot.lane.b32.xlu0 %v1833_v29, %s4786_s28  ;;  %v4190_v30 = vpop.f32.mrb[19].mxu1 }
 0xf2b   :  { %v2037_v31 = vpop.f32.mrb[20].mxu1 }
 0xf2c   :  { %2042 = vrot.lane.b32.xlu1 %v2037_v31, %s4786_s28  ;;  %v4212_v33 = vpop.f32.mrb[21].mxu1 }
 0xf96   :  { %v1839_v35 = vpop.permute.xlu0 %1838 }
 0xf97   :  { %v1841_v36 = vadd.f32 %v1839_v35, %v1675_v0 }
 0xf99   :  { %4710 = vtanh.f32 %v1841_v36 }
 0xf9e   :  { %v2043_v37 = vpop.permute.xlu1 %2042 }
 0xf9f   :  { %v2045_v38 = vadd.f32 %v3739_v10, %v2043_v37  ;;  %v3747_v10 = vld [vmem:[%s5506_s0 + $0xa] sm:$0x3] }
 0xfa1   :  { %4712 = vtanh.f32 %v2045_v38 }
 0xfa3   :  { %v4711_v40 = vpop.eup %4710 }
 0xfa4   :  { %1846 = vrot.lane.b32.xlu0 %v4711_v40, %s4786_s28 }
 0xfab   :  { %v4713_v41 = vpop.eup %4712 }
 0xfac   :  { %2050 = vrot.lane.b32.xlu1 %v4713_v41, %s4786_s28 }
0x1016   :  { %v1847_v45 = vpop.permute.xlu0 %1846 }
0x1017   :  { %v1849_v48 = vmul.f32 %v1847_v45, %v1844_v44 }
0x1019   :  { %v1850_v49 = vadd.f32 %v1849_v48, %v1843_v46 }
0x101b   :  { %1851 = vst.msk [vmem:[#allocation2 + $0x2] sm:$0x3] %vm37_vm1, %v1850_v49  ;;  %v1859_v51 = vrot.slane %v1850_v49, %v5027_v47 }
0x101d   :  { %v1860_v52 = vcombine.high %v1859_v51, %v1859_v51  ;;  %v1867_v53 = vrot.slane %v1859_v51, %v5027_v47 }
0x101e   :  { %v2051_v55 = vpop.permute.xlu1 %2050 }
0x101f   :  { %v1874_v57 = vrot.slane %v1860_v52, %v5027_v47  ;;  %1877 = vst.msk [vmem:[%s5514_s8 + $0x3] sm:$0x1] %vm520_vm3, %v1867_v53  ;;  %v2053_v60 = vmul.f32 %v2051_v55, %v2048_v54 }
0x1021   :  { %1878 = vst.msk [vmem:[%s5514_s8 + $0xb] sm:$0x1] %vm520_vm3, %v1874_v57  ;;  %v2054_v61 = vadd.f32 %v2053_v60, %v2047_v43 }
0x1022   :  { %v5252_v62 = vld [vmem:[#allocation2 + $0x2] sm:$0x3] }
0x1023   :  { %2055 = vst.msk [vmem:[#allocation2] sm:$0x3] %vm37_vm1, %v2054_v61  ;;  %4222 = vmatmul.mubr.msk.f32.vlgmr.msra.gmra.mrb[22].mxu0 %vm64_vm2, %v2054_v61  ;;  %2210 = vrot.lane.b32.xlu0 %v5252_v62, %s4784_s1 }
0x1024   :  { %4233 = vmatmul.mubr.msk.f32.vlgmr.msra.gmra.mrb[22].mxu1 %vm64_vm2, %v5252_v62  ;;  %4557 = vmatpush3.bf16.msra.mxu0 %v4986_v56 }
0x1025   :  { %4563 = vmatpush3.bf16.msra.mxu1 %v4850_v4  ;;  %4254 = vmatprep.mubr.msk.f32.mxu1 %vm4782_vm0, %v4783_v6 }
0x1026   :  { %4564 = vmatprep.subr.bf16.mxu1 %v4781_v3  ;;  %4558 = vmatprep.subr.bf16.mxu0 %v4781_v3 }
0x1027   :  { %4243 = vmatprep.mubr.msk.f32.mxu0 %vm4782_vm0, %v4783_v6 }
0x1028   :  { %4560 = vmatpush3.bf16.msra.mxu0 %v4992_v58 }
0x1029   :  { %4566 = vmatpush3.bf16.msra.mxu1 %v4866_v8  ;;  %4567 = vmatprep.subr.bf16.mxu0 %v4781_v3 }
0x102a   :  { %v5271_v50 = vld [vmem:[#allocation2] sm:$0x3]  ;;  %4573 = vmatprep.subr.bf16.mxu1 %v4781_v3 }
0x102b   :  { %2414 = vrot.lane.b32.xlu1 %v5271_v50, %s4784_s1 }
0x102c   :  { %4255 = vmatmul.mubr.msk.f32.vlgmr.msra.gmra.mrb[24].mxu1 %vm64_vm2, %v5271_v50 }
0x102d   :  { %4575 = vmatpush3.bf16.msra.mxu1 %v4916_v32  ;;  %4276 = vmatprep.mubr.msk.f32.mxu1 %vm4782_vm0, %v4783_v6 }
0x102e   :  { %4576 = vmatprep.subr.bf16.mxu1 %v4781_v3 }
0x1031   :  { %4578 = vmatpush3.bf16.msra.mxu1 %v4936_v39 }
0x1032   :  { %4585 = vmatprep.subr.bf16.mxu1 %v4781_v3 }
0x1095   :  { %v2211_v22 = vpop.permute.xlu0 %2210 }
0x109d   :  { %v2415_v25 = vpop.permute.xlu1 %2414 }
0x10f6   :  { %v2126_v63 = vpop.f32.mrb[22].mxu0 }
0x10f7   :  { %v2127_v0 = vadd.f32 %v5000_v59, %v2126_v63  ;;  %v4223_v1 = vpop.f32.mrb[23].mxu0  ;;  %v2199_v2 = vpop.f32.mrb[22].mxu1 }
0x10f8   :  { %v4234_v5 = vpop.f32.mrb[23].mxu1 }
0x10f9   :  { %v2203_v7 = vadd.f32 %v2199_v2, %v2127_v0 }
0x10fb   :  { %v3745_v9 = vmul.f32 -1.442695, %v2203_v7 }
0x10fd   :  { %4714 = vpow2.f32 %v3745_v9 }
0x10ff   :  { %v2403_v11 = vpop.f32.mrb[24].mxu1 }
0x1100   :  { %v2407_v12 = vadd.f32 %v3747_v10, %v2403_v11  ;;  %v4256_v14 = vpop.f32.mrb[25].mxu1 }
0x1102   :  { %v3749_v16 = vmul.f32 -1.442695, %v2407_v12 }
0x1104   :  { %4716 = vpow2.f32 %v3749_v16 }
0x1107   :  { %v4715_v17 = vpop.eup %4714 }
0x1108   :  { %v2207_v18 = vadd.f32 1.0, %v4715_v17 }
0x110a   :  { %4718 = vrcp.f32 %v2207_v18 }
0x110e   :  { %v4717_v19 = vpop.eup %4716 }
0x110f   :  { %v2411_v20 = vadd.f32 1.0, %v4717_v19 }
0x1111   :  { %4720 = vrcp.f32 %v2411_v20 }
0x1114   :  { %v4719_v21 = vpop.eup %4718 }
0x1115   :  { %v2213_v23 = vmul.f32 %v4719_v21, %v2211_v22  ;;  %v2296_v44 = vsub.f32 1.0, %v4719_v21  ;;  %v2295_v46 = vmul.f32 %v4719_v21, %v5252_v62 }
0x1117   :  { %2215 = vrot.lane.b32.xlu0 %v2213_v23, %s4785_s3 }
0x111b   :  { %v4721_v24 = vpop.eup %4720 }
0x111c   :  { %v2417_v26 = vmul.f32 %v4721_v24, %v2415_v25  ;;  %v2500_v54 = vsub.f32 1.0, %v4721_v24  ;;  %v2499_v43 = vmul.f32 %v4721_v24, %v5271_v50 }
0x111e   :  { %2419 = vrot.lane.b32.xlu1 %v2417_v26, %s4785_s3 }
0x1189   :  { %v2216_v27 = vpop.permute.xlu0 %2215 }
0x118a   :  { %4244 = vmatmul.mubr.msk.f32.vlgmr.msra.gmra.mrb[24].mxu0 %vm64_vm2, %v2216_v27 }
0x118b   :  { %4569 = vmatpush3.bf16.msra.mxu0 %v4888_v13  ;;  %4265 = vmatprep.mubr.msk.f32.mxu0 %vm4782_vm0, %v4783_v6 }
0x118c   :  { %4570 = vmatprep.subr.bf16.mxu0 %v4781_v3 }
0x118f   :  { %4572 = vmatpush3.bf16.msra.mxu0 %v4894_v15 }
0x1190   :  { %v2420_v28 = vpop.permute.xlu1 %2419  ;;  %4579 = vmatprep.subr.bf16.mxu0 %v4781_v3 }
0x1192   :  { %4266 = vmatmul.mubr.msk.f32.vlgmr.msra.gmra.mrb[26].mxu0 %vm64_vm2, %v2420_v28 }
0x1193   :  { %4581 = vmatpush3.bf16.msra.mxu0 %v4921_v34  ;;  %4287 = vmatprep.mubr.msk.f32.mxu0 %vm4782_vm0, %v4783_v6 }
0x1194   :  { %4582 = vmatprep.subr.bf16.mxu0 %v4781_v3 }
0x1197   :  { %4584 = vmatpush3.bf16.msra.mxu0 %v4941_v42 }
0x1198   :  { %4591 = vmatprep.subr.bf16.mxu0 %v4781_v3 }
0x125d   :  { %v2285_v29 = vpop.f32.mrb[24].mxu0 }
0x125e   :  { %2290 = vrot.lane.b32.xlu0 %v2285_v29, %s4786_s28  ;;  %v4245_v30 = vpop.f32.mrb[25].mxu0 }
0x1265   :  { %v2489_v31 = vpop.f32.mrb[26].mxu0 }
0x1266   :  { %2494 = vrot.lane.b32.xlu1 %v2489_v31, %s4786_s28  ;;  %v4267_v33 = vpop.f32.mrb[27].mxu0 }
0x12d0   :  { %v2291_v35 = vpop.permute.xlu0 %2290 }
0x12d1   :  { %v2293_v36 = vadd.f32 %v2291_v35, %v2127_v0 }
0x12d3   :  { %4722 = vtanh.f32 %v2293_v36 }
0x12d8   :  { %v2495_v37 = vpop.permute.xlu1 %2494 }
0x12d9   :  { %v2497_v38 = vadd.f32 %v3747_v10, %v2495_v37  ;;  %v3755_v10 = vld [vmem:[%s5506_s0 + $0xc] sm:$0x3] }
0x12db   :  { %4724 = vtanh.f32 %v2497_v38 }
0x12dd   :  { %v4723_v40 = vpop.eup %4722 }
0x12de   :  { %2298 = vrot.lane.b32.xlu0 %v4723_v40, %s4786_s28 }
0x12e5   :  { %v4725_v41 = vpop.eup %4724 }
0x12e6   :  { %2502 = vrot.lane.b32.xlu1 %v4725_v41, %s4786_s28 }
0x1350   :  { %v2299_v45 = vpop.permute.xlu0 %2298 }
0x1351   :  { %v2301_v48 = vmul.f32 %v2299_v45, %v2296_v44 }
0x1353   :  { %v2302_v49 = vadd.f32 %v2301_v48, %v2295_v46 }
0x1355   :  { %2303 = vst.msk [vmem:[#allocation2 + $0x2] sm:$0x3] %vm37_vm1, %v2302_v49  ;;  %v2311_v51 = vrot.slane %v2302_v49, %v5027_v47 }
0x1357   :  { %v2312_v52 = vcombine.high %v2311_v51, %v2311_v51  ;;  %v2319_v53 = vrot.slane %v2311_v51, %v5027_v47 }
0x1358   :  { %v2503_v55 = vpop.permute.xlu1 %2502 }
0x1359   :  { %v2326_v57 = vrot.slane %v2312_v52, %v5027_v47  ;;  %2329 = vst.msk [vmem:[%s5514_s8 + $0x4] sm:$0x1] %vm520_vm3, %v2319_v53  ;;  %v2505_v60 = vmul.f32 %v2503_v55, %v2500_v54 }
0x135b   :  { %2330 = vst.msk [vmem:[%s5514_s8 + $0xc] sm:$0x1] %vm520_vm3, %v2326_v57  ;;  %v2506_v61 = vadd.f32 %v2505_v60, %v2499_v43 }
0x135c   :  { %v5322_v62 = vld [vmem:[#allocation2 + $0x2] sm:$0x3] }
0x135d   :  { %2507 = vst.msk [vmem:[#allocation2] sm:$0x3] %vm37_vm1, %v2506_v61  ;;  %4277 = vmatmul.mubr.msk.f32.vlgmr.msra.gmra.mrb[26].mxu1 %vm64_vm2, %v2506_v61  ;;  %2662 = vrot.lane.b32.xlu0 %v5322_v62, %s4784_s1 }
0x135e   :  { %4288 = vmatmul.mubr.msk.f32.vlgmr.msra.gmra.mrb[28].mxu0 %vm64_vm2, %v5322_v62  ;;  %4587 = vmatpush3.bf16.msra.mxu1 %v4986_v56 }
0x135f   :  { %4593 = vmatpush3.bf16.msra.mxu0 %v4850_v4  ;;  %4309 = vmatprep.mubr.msk.f32.mxu0 %vm4782_vm0, %v4783_v6 }
0x1360   :  { %4594 = vmatprep.subr.bf16.mxu0 %v4781_v3  ;;  %4588 = vmatprep.subr.bf16.mxu1 %v4781_v3 }
0x1361   :  { %4298 = vmatprep.mubr.msk.f32.mxu1 %vm4782_vm0, %v4783_v6 }
0x1362   :  { %4590 = vmatpush3.bf16.msra.mxu1 %v4992_v58 }
0x1363   :  { %4596 = vmatpush3.bf16.msra.mxu0 %v4866_v8  ;;  %4597 = vmatprep.subr.bf16.mxu1 %v4781_v3 }
0x1364   :  { %v5341_v50 = vld [vmem:[#allocation2] sm:$0x3]  ;;  %4603 = vmatprep.subr.bf16.mxu0 %v4781_v3 }
0x1365   :  { %2866 = vrot.lane.b32.xlu1 %v5341_v50, %s4784_s1 }
0x1366   :  { %4310 = vmatmul.mubr.msk.f32.vlgmr.msra.gmra.mrb[30].mxu0 %vm64_vm2, %v5341_v50 }
0x1367   :  { %4605 = vmatpush3.bf16.msra.mxu0 %v4916_v32  ;;  %4331 = vmatprep.mubr.msk.f32.mxu0 %vm4782_vm0, %v4783_v6 }
0x1368   :  { %4606 = vmatprep.subr.bf16.mxu0 %v4781_v3 }
0x136b   :  { %4608 = vmatpush3.bf16.msra.mxu0 %v4936_v39 }
0x136c   :  { %4615 = vmatprep.subr.bf16.mxu0 %v4781_v3 }
0x13cf   :  { %v2663_v21 = vpop.permute.xlu0 %2662 }
0x13d7   :  { %v2867_v24 = vpop.permute.xlu1 %2866 }
0x1430   :  { %v2578_v63 = vpop.f32.mrb[26].mxu1 }
0x1431   :  { %v2579_v0 = vadd.f32 %v5000_v59, %v2578_v63  ;;  %v4278_v1 = vpop.f32.mrb[27].mxu1  ;;  %v2651_v2 = vpop.f32.mrb[28].mxu0 }
0x1432   :  { %v4289_v5 = vpop.f32.mrb[29].mxu0 }
0x1433   :  { %v2655_v7 = vadd.f32 %v2651_v2, %v2579_v0 }
0x1435   :  { %v3753_v9 = vmul.f32 -1.442695, %v2655_v7 }
0x1437   :  { %4726 = vpow2.f32 %v3753_v9 }
0x1439   :  { %v2855_v11 = vpop.f32.mrb[30].mxu0 }
0x143a   :  { %v2859_v12 = vadd.f32 %v3755_v10, %v2855_v11  ;;  %v4311_v14 = vpop.f32.mrb[31].mxu0 }
0x143c   :  { %v3757_v16 = vmul.f32 -1.442695, %v2859_v12 }
0x143e   :  { %4728 = vpow2.f32 %v3757_v16 }
0x1441   :  { %v4727_v17 = vpop.eup %4726 }
0x1442   :  { %v2659_v18 = vadd.f32 1.0, %v4727_v17 }
0x1444   :  { %4730 = vrcp.f32 %v2659_v18 }
0x1448   :  { %v4729_v19 = vpop.eup %4728 }
0x1449   :  { %v2863_v59 = vadd.f32 1.0, %v4729_v19 }
0x144b   :  { %4732 = vrcp.f32 %v2863_v59 }
0x144e   :  { %v4731_v20 = vpop.eup %4730 }
0x144f   :  { %v2665_v22 = vmul.f32 %v4731_v20, %v2663_v21  ;;  %v2748_v41 = vsub.f32 1.0, %v4731_v20  ;;  %v2747_v45 = vmul.f32 %v4731_v20, %v5322_v62 }
0x1451   :  { %2667 = vrot.lane.b32.xlu0 %v2665_v22, %s4785_s3 }
0x1455   :  { %v4733_v23 = vpop.eup %4732 }
0x1456   :  { %v2869_v25 = vmul.f32 %v4733_v23, %v2867_v24  ;;  %v2952_v53 = vsub.f32 1.0, %v4733_v23  ;;  %v2951_v57 = vmul.f32 %v4733_v23, %v5341_v50 }
0x1458   :  { %2871 = vrot.lane.b32.xlu1 %v2869_v25, %s4785_s3 }
0x14c3   :  { %v2668_v26 = vpop.permute.xlu0 %2667 }
0x14c4   :  { %4299 = vmatmul.mubr.msk.f32.vlgmr.msra.gmra.mrb[28].mxu1 %vm64_vm2, %v2668_v26 }
0x14c5   :  { %4599 = vmatpush3.bf16.msra.mxu1 %v4888_v13  ;;  %4320 = vmatprep.mubr.msk.f32.mxu1 %vm4782_vm0, %v4783_v6 }
0x14c6   :  { %4600 = vmatprep.subr.bf16.mxu1 %v4781_v3 }
0x14c9   :  { %4602 = vmatpush3.bf16.msra.mxu1 %v4894_v15 }
0x14ca   :  { %v2872_v27 = vpop.permute.xlu1 %2871  ;;  %4609 = vmatprep.subr.bf16.mxu1 %v4781_v3 }
0x14cc   :  { %4321 = vmatmul.mubr.msk.f32.vlgmr.msra.gmra.mrb[30].mxu1 %vm64_vm2, %v2872_v27 }
0x14cd   :  { %4611 = vmatpush3.bf16.msra.mxu1 %v4921_v34  ;;  %4342 = vmatprep.mubr.msk.f32.mxu1 %vm4782_vm0, %v4783_v6 }
0x14ce   :  { %4612 = vmatprep.subr.bf16.mxu1 %v4781_v3 }
0x14d1   :  { %4614 = vmatpush3.bf16.msra.mxu1 %v4941_v42 }
0x14d2   :  { %4621 = vmatprep.subr.bf16.mxu1 %v4781_v3 }
0x1597   :  { %v2737_v28 = vpop.f32.mrb[28].mxu1 }
0x1598   :  { %2742 = vrot.lane.b32.xlu0 %v2737_v28, %s4786_s28  ;;  %v4300_v29 = vpop.f32.mrb[29].mxu1 }
0x159f   :  { %v2941_v30 = vpop.f32.mrb[30].mxu1 }
0x15a0   :  { %2946 = vrot.lane.b32.xlu1 %v2941_v30, %s4786_s28  ;;  %v4322_v31 = vpop.f32.mrb[31].mxu1 }
0x160a   :  { %v2743_v33 = vpop.permute.xlu0 %2742 }
0x160b   :  { %v2745_v35 = vadd.f32 %v2743_v33, %v2579_v0 }
0x160d   :  { %4734 = vtanh.f32 %v2745_v35 }
0x1612   :  { %v2947_v36 = vpop.permute.xlu1 %2946 }
0x1613   :  { %v2949_v37 = vadd.f32 %v3755_v10, %v2947_v36 }
0x1615   :  { %4736 = vtanh.f32 %v2949_v37 }
0x1617   :  { %v4735_v38 = vpop.eup %4734 }
0x1618   :  { %2750 = vrot.lane.b32.xlu0 %v4735_v38, %s4786_s28 }
0x161f   :  { %v4737_v40 = vpop.eup %4736 }
0x1620   :  { %2954 = vrot.lane.b32.xlu1 %v4737_v40, %s4786_s28 }
0x168a   :  { %v2751_v44 = vpop.permute.xlu0 %2750 }
0x168b   :  { %v2753_v46 = vmul.f32 %v2751_v44, %v2748_v41 }
0x168d   :  { %v2754_v48 = vadd.f32 %v2753_v46, %v2747_v45 }
0x168f   :  { %v2763_v49 = vrot.slane %v2754_v48, %v5027_v47  ;;  %2755 = vst.msk [vmem:[#allocation2 + $0x2] sm:$0x3] %vm37_vm1, %v2754_v48 }
0x1691   :  { %v2764_v51 = vcombine.high %v2763_v49, %v2763_v49  ;;  %v2771_v52 = vrot.slane %v2763_v49, %v5027_v47 }
0x1692   :  { %v2955_v54 = vpop.permute.xlu1 %2954 }
0x1693   :  { %v2778_v55 = vrot.slane %v2764_v51, %v5027_v47  ;;  %2781 = vst.msk [vmem:[%s5514_s8 + $0x5] sm:$0x1] %vm520_vm3, %v2771_v52  ;;  %v2957_v43 = vmul.f32 %v2955_v54, %v2952_v53 }
0x1695   :  { %2782 = vst.msk [vmem:[%s5514_s8 + $0xd] sm:$0x1] %vm520_vm3, %v2778_v55  ;;  %v2958_v60 = vadd.f32 %v2957_v43, %v2951_v57 }
0x1696   :  { %v5392_v61 = vld [vmem:[#allocation2 + $0x2] sm:$0x3] }
0x1697   :  { %2959 = vst.msk [vmem:[#allocation2] sm:$0x3] %vm37_vm1, %v2958_v60  ;;  %4332 = vmatmul.mubr.msk.f32.vlgmr.msra.gmra.mrb[32].mxu0 %vm64_vm2, %v2958_v60  ;;  %3114 = vrot.lane.b32.xlu0 %v5392_v61, %s4784_s1 }
0x1698   :  { %4343 = vmatmul.mubr.msk.f32.vlgmr.msra.gmra.mrb[32].mxu1 %vm64_vm2, %v5392_v61  ;;  %4617 = vmatpush3.bf16.msra.mxu0 %v4986_v56 }
0x1699   :  { %4623 = vmatpush3.bf16.msra.mxu1 %v4850_v4  ;;  %4364 = vmatprep.mubr.msk.f32.mxu1 %vm4782_vm0, %v4783_v6 }
0x169a   :  { %4624 = vmatprep.subr.bf16.mxu1 %v4781_v3  ;;  %4618 = vmatprep.subr.bf16.mxu0 %v4781_v3 }
0x169b   :  { %4353 = vmatprep.mubr.msk.f32.mxu0 %vm4782_vm0, %v4783_v6 }
0x169c   :  { %4620 = vmatpush3.bf16.msra.mxu0 %v4992_v58 }
0x169d   :  { %4626 = vmatpush3.bf16.msra.mxu1 %v4866_v8  ;;  %4627 = vmatprep.subr.bf16.mxu0 %v4781_v3  ;;  %v5427_v8 = vld [vmem:[%s5511_s5] ss:$0 sm:$0xff] }
0x169e   :  { %v5411_v62 = vld [vmem:[#allocation2] sm:$0x3]  ;;  %4633 = vmatprep.subr.bf16.mxu1 %v4781_v3 }
0x169f   :  { %3318 = vrot.lane.b32.xlu1 %v5411_v62, %s4784_s1 }
0x16a0   :  { %4365 = vmatmul.mubr.msk.f32.vlgmr.msra.gmra.mrb[34].mxu1 %vm64_vm2, %v5411_v62 }
0x16a1   :  { %4635 = vmatpush3.bf16.msra.mxu1 %v4916_v32  ;;  %4386 = vmatprep.mubr.msk.f32.mxu1 %vm4782_vm0, %v4783_v6 }
0x16a2   :  { %4636 = vmatprep.subr.bf16.mxu1 %v4781_v3 }
0x16a5   :  { %4638 = vmatpush3.bf16.msra.mxu1 %v4936_v39  ;;  %v3763_v39 = vld [vmem:[%s5506_s0 + $0xe] sm:$0x3] }
0x16a6   :  { %4645 = vmatprep.subr.bf16.mxu1 %v4781_v3 }
0x1709   :  { %v3115_v18 = vpop.permute.xlu0 %3114 }
0x1711   :  { %v3319_v20 = vpop.permute.xlu1 %3318 }
0x176a   :  { %v3030_v4 = vpop.f32.mrb[32].mxu0 }
0x176b   :  { %v3031_v50 = vadd.f32 %v5427_v8, %v3030_v4  ;;  %v4333_v63 = vpop.f32.mrb[33].mxu0  ;;  %v3103_v0 = vpop.f32.mrb[32].mxu1 }
0x176c   :  { %v4344_v32 = vpop.f32.mrb[33].mxu1 }
0x176d   :  { %v3107_v1 = vadd.f32 %v3103_v0, %v3031_v50 }
0x176f   :  { %v3761_v2 = vmul.f32 -1.442695, %v3107_v1 }
0x1771   :  { %4738 = vpow2.f32 %v3761_v2 }
0x1773   :  { %v3307_v5 = vpop.f32.mrb[34].mxu1 }
0x1774   :  { %v3311_v7 = vadd.f32 %v3763_v39, %v3307_v5  ;;  %v4366_v9 = vpop.f32.mrb[35].mxu1 }
0x1776   :  { %v3765_v10 = vmul.f32 -1.442695, %v3311_v7 }
0x1778   :  { %4740 = vpow2.f32 %v3765_v10 }
0x177b   :  { %v4739_v11 = vpop.eup %4738 }
0x177c   :  { %v3111_v12 = vadd.f32 1.0, %v4739_v11 }
0x177e   :  { %4742 = vrcp.f32 %v3111_v12 }
0x1782   :  { %v4741_v14 = vpop.eup %4740 }
0x1783   :  { %v3315_v16 = vadd.f32 1.0, %v4741_v14 }
0x1785   :  { %4744 = vrcp.f32 %v3315_v16 }
0x1788   :  { %v4743_v17 = vpop.eup %4742 }
0x1789   :  { %v3117_v19 = vmul.f32 %v4743_v17, %v3115_v18  ;;  %v3199_v33 = vmul.f32 %v4743_v17, %v5392_v61 }
0x178b   :  { %3119 = vrot.lane.b32.xlu0 %v3117_v19, %s4785_s3 }
0x178f   :  { %v4745_v59 = vpop.eup %4744 }
0x1790   :  { %v3321_v21 = vmul.f32 %v4745_v59, %v3319_v20  ;;  %v3404_v41 = vsub.f32 1.0, %v4745_v59  ;;  %v3403_v46 = vmul.f32 %v4745_v59, %v5411_v62 }
0x1792   :  { %3323 = vrot.lane.b32.xlu1 %v3321_v21, %s4785_s3 }
0x17fd   :  { %v3120_v22 = vpop.permute.xlu0 %3119 }
0x17fe   :  { %4354 = vmatmul.mubr.msk.f32.vlgmr.msra.gmra.mrb[34].mxu0 %vm64_vm2, %v3120_v22 }
0x17ff   :  { %4629 = vmatpush3.bf16.msra.mxu0 %v4888_v13  ;;  %4375 = vmatprep.mubr.msk.f32.mxu0 %vm4782_vm0, %v4783_v6 }
0x1800   :  { %4630 = vmatprep.subr.bf16.mxu0 %v4781_v3 }
0x1803   :  { %4632 = vmatpush3.bf16.msra.mxu0 %v4894_v15 }
0x1804   :  { %v3324_v23 = vpop.permute.xlu1 %3323  ;;  %4639 = vmatprep.subr.bf16.mxu0 %v4781_v3 }
0x1806   :  { %4376 = vmatmul.mubr.msk.f32.vlgmr.msra.gmra.mrb[36].mxu0 %vm64_vm2, %v3324_v23 }
0x1807   :  { %4641 = vmatpush3.bf16.msra.mxu0 %v4921_v34  ;;  %4397 = vmatprep.mubr.msk.f32.mxu0 %vm4782_vm0, %v4783_v6 }
0x1808   :  { %4642 = vmatprep.subr.bf16.mxu0 %v4781_v3 }
0x180b   :  { %4644 = vmatpush3.bf16.msra.mxu0 %v4941_v42  ;;  %v3200_v42 = vsub.f32 1.0, %v4743_v17 }
0x18d1   :  { %v3189_v13 = vpop.f32.mrb[34].mxu0 }
0x18d2   :  { %3194 = vrot.lane.b32.xlu0 %v3189_v13, %s4786_s28  ;;  %v4355_v24 = vpop.f32.mrb[35].mxu0 }
0x18d9   :  { %v3393_v25 = vpop.f32.mrb[36].mxu0 }
0x18da   :  { %3398 = vrot.lane.b32.xlu1 %v3393_v25, %s4786_s28  ;;  %v4377_v15 = vpop.f32.mrb[37].mxu0 }
0x1944   :  { %v3195_v26 = vpop.permute.xlu0 %3194 }
0x1945   :  { %v3197_v27 = vadd.f32 %v3195_v26, %v3031_v50 }
0x1947   :  { %4746 = vtanh.f32 %v3197_v27 }
0x194c   :  { %v3399_v28 = vpop.permute.xlu1 %3398 }
0x194d   :  { %v3401_v34 = vadd.f32 %v3763_v39, %v3399_v28 }
0x194f   :  { %4748 = vtanh.f32 %v3401_v34 }
0x1951   :  { %v4747_v29 = vpop.eup %4746 }
0x1952   :  { %3202 = vrot.lane.b32.xlu0 %v4747_v29, %s4786_s28 }
0x1959   :  { %v4749_v30 = vpop.eup %4748 }
0x195a   :  { %3406 = vrot.lane.b32.xlu1 %v4749_v30, %s4786_s28 }
0x19c4   :  { %v3203_v31 = vpop.permute.xlu0 %3202 }
0x19c5   :  { %v3205_v35 = vmul.f32 %v3203_v31, %v3200_v42 }
0x19c7   :  { %v3206_v36 = vadd.f32 %v3205_v35, %v3199_v33 }
0x19c9   :  { %v3215_v37 = vrot.slane %v3206_v36, %v5027_v47  ;;  %3207 = vst.msk [vmem:[#allocation2 + $0x2] sm:$0x3] %vm37_vm1, %v3206_v36 }
0x19cb   :  { %v3216_v38 = vcombine.high %v3215_v37, %v3215_v37  ;;  %v3223_v40 = vrot.slane %v3215_v37, %v5027_v47 }
0x19cc   :  { %v3407_v44 = vpop.permute.xlu1 %3406 }
0x19cd   :  { %v3230_v45 = vrot.slane %v3216_v38, %v5027_v47  ;;  %3233 = vst.msk [vmem:[%s5514_s8 + $0x6] sm:$0x1] %vm520_vm3, %v3223_v40  ;;  %v3409_v48 = vmul.f32 %v3407_v44, %v3404_v41 }
0x19cf   :  { %3234 = vst.msk [vmem:[%s5514_s8 + $0xe] sm:$0x1] %vm520_vm3, %v3230_v45  ;;  %v3410_v49 = vadd.f32 %v3409_v48, %v3403_v46 }
0x19d0   :  { %v3412_v51 = vld [vmem:[#allocation2 + $0x2] sm:$0x3] }
0x19d1   :  { %3411 = vst.msk [vmem:[#allocation2] sm:$0x3] %vm37_vm1, %v3410_v49  ;;  %4387 = vmatmul.mubr.msk.f32.vlgmr.msra.gmra.mrb[36].mxu1 %vm64_vm2, %v3410_v49  ;;  %3566 = vrot.lane.b32.xlu0 %v3412_v51, %s4784_s1 }
0x19d2   :  { %4398 = vmatmul.mubr.msk.f32.vlgmr.msra.gmra.mrb[38].mxu0 %vm64_vm2, %v3412_v51  ;;  %4647 = vmatpush3.bf16.msra.mxu1 %v4986_v56 }
0x19d3   :  { %4648 = vmatprep.subr.bf16.mxu1 %v4781_v3  ;;  %4408 = vmatprep.mubr.msk.f32.mxu1 %vm4782_vm0, %v4783_v6 }
0x19d6   :  { %4650 = vmatpush3.bf16.msra.mxu1 %v4992_v58 }
0x1a43   :  { %v3567_v4 = vpop.permute.xlu0 %3566 }
0x1aa4   :  { %v3482_v52 = vpop.f32.mrb[36].mxu1 }
0x1aa5   :  { %v3483_v53 = vadd.f32 %v5427_v8, %v3482_v52  ;;  %v4388_v54 = vpop.f32.mrb[37].mxu1  ;;  %v3555_v55 = vpop.f32.mrb[38].mxu0 }
0x1aa6   :  { %v4399_v57 = vpop.f32.mrb[39].mxu0 }
0x1aa7   :  { %v3559_v43 = vadd.f32 %v3555_v55, %v3483_v53 }
0x1aa9   :  { %v3769_v60 = vmul.f32 -1.442695, %v3559_v43 }
0x1aab   :  { %4750 = vpow2.f32 %v3769_v60 }
0x1ab5   :  { %v4751_v61 = vpop.eup %4750 }
0x1ab6   :  { %v3563_v62 = vadd.f32 1.0, %v4751_v61 }
0x1ab8   :  { %4752 = vrcp.f32 %v3563_v62 }
0x1ac2   :  { %v4753_v56 = vpop.eup %4752 }
0x1ac3   :  { %v3569_v3 = vmul.f32 %v4753_v56, %v3567_v4  ;;  %v3652_v32 = vsub.f32 1.0, %v4753_v56  ;;  %v3651_v2 = vmul.f32 %v4753_v56, %v3412_v51 }
0x1ac5   :  { %3571 = vrot.lane.b32.xlu1 %v3569_v3, %s4785_s3  ;;  %s4757_s3 = scalar_lea.vmem %s3695_s26, 64 }
0x1ac6   :  { %p4758_p0 = scmp.ne.s32.totalorder %s3695_s26, %s4757_s3  ;;  %p4763_p2 = scmp.lt.s32.totalorder %s4757_s3, %s4757_s3 }
0x1ac8   :  { %p4764_p3 = por %p4763_p2, %p4762_p1 }
0x1aca   :  { %p4765_p4 = pnand %p4764_p3, %p4758_p0 }
0x1b37   :  { %v3572_v6 = vpop.permute.xlu1 %3571 }
0x1b38   :  { %4409 = vmatmul.mubr.msk.f32.vlgmr.msra.gmra.mrb[38].mxu1 %vm64_vm2, %v3572_v6 }
0x1c0b   :  { %v3641_v58 = vpop.f32.mrb[38].mxu1 }
0x1c0c   :  { %3646 = vrot.lane.b32.xlu0 %v3641_v58, %s4786_s28  ;;  %v4410_v8 = vpop.f32.mrb[39].mxu1 }
0x1c7e   :  { %v3647_v50 = vpop.permute.xlu0 %3646 }
0x1c7f   :  { %v3649_v63 = vadd.f32 %v3647_v50, %v3483_v53 }
0x1c81   :  { %4754 = vtanh.f32 %v3649_v63 }
0x1c8b   :  { %v4755_v0 = vpop.eup %4754 }
0x1c8c   :  { %3654 = vrot.lane.b32.xlu1 %v4755_v0, %s4786_s28 }
0x1cfe   :  { %v3655_v1 = vpop.permute.xlu1 %3654 }
0x1cff   :  { %v3657_v39 = vmul.f32 %v3655_v1, %v3652_v32 }
0x1d01   :  { %v3658_v5 = vadd.f32 %v3657_v39, %v3651_v2 }
0x1d03   :  { %v3667_v7 = vrot.slane %v3658_v5, %v5027_v47  ;;  %3659 = vst.msk [vmem:[#allocation2 + $0x2] sm:$0x3] %vm37_vm1, %v3658_v5 }
0x1d04   :  { %4768 = shalt.err (!%p4765_p4)
}
0x1d05   :  { %s4769_s29 = scalar_lea.hbm %s5515_s9, 64 }
0x1d06   :  { %p4770_p5 = scmp.ne.s32.totalorder %s5515_s9, %s4769_s29  ;;  %p4773_p6 = scmp.lt.u32.totalorder %s4769_s29, %s5515_s9 }
0x1d08   :  { %p4775_p7 = pnand %p4773_p6, %p4770_p5 }
0x1d0a   :  { %4778 = shalt.err (!%p4775_p7)
}
0x1d0b   :  { %s4789_s12 = smov 2   ;;  %v3668_v9 = vcombine.high %v3667_v7, %v3667_v7  ;;  %v3675_v10 = vrot.slane %v3667_v7, %v5027_v47 }
0x1d0c   :  { %3700 = dma.vmem_to_hbm [thread:$0]  %s3695_s26, 64, %s5515_s9, [#allocation3], %s4784_s1, %s4784_s1, %s4789_s12  }
0x1d0d   :  { %v3682_v11 = vrot.slane %v3668_v9, %v5027_v47  ;;  %3685 = vst.msk [vmem:[%s5514_s8 + $0x7] sm:$0x1] %vm520_vm3, %v3675_v10 }
0x1d0f   :  { %3686 = vst.msk [vmem:[%s5514_s8 + $0xf] sm:$0x1] %vm520_vm3, %v3682_v11 }
0x1d10   :  { %4779 = dma.done.wait [#allocation3], 64  }
0x1d11   :  { %4780 = vsyncadd [#allocation3], 4294967232 }
0x1d12   :  { %3706 = vsyncpa [#allocation3], 1 }

</bundles_post_ra>
